<compile_context>
chip_gen: v5e
topology: v5e:2x2
jax: 0.10.0
libtpu: 0.0.40
codegen_flags: <defaults>
</compile_context>

<pallas_src>
import functools

import numpy as np
import jax
import jax.numpy as jnp
from jax.experimental import pallas as pl
from jax.experimental.pallas import tpu as pltpu

_BN_EPS = 1e-5

_COMPILER_PARAMS = pltpu.CompilerParams(dimension_semantics=("arbitrary",))


def _round_up(x, m):
    return (x + m - 1) // m * m


def _full_spec(shape):
    nd = len(shape)
    return pl.BlockSpec(shape, lambda i, _nd=nd: (0,) * _nd)


# --------------------------- Pallas kernels ---------------------------------

def _proj_kernel(z_ref, w_ref, gam_ref, bet_ref, o_ref, *, n_valid):
    """Linear (f32 MXU, bias cancels under BN) -> BatchNorm1d (two-pass batch
    stats) -> ReLU -> bf16, fully fused in one kernel."""
    y = jnp.dot(z_ref[...], w_ref[...], preferred_element_type=jnp.float32)
    m_pad, feat = y.shape
    r = jax.lax.broadcasted_iota(jnp.int32, (m_pad, feat), 0)
    rmask = (r < n_valid).astype(jnp.float32)
    inv_n = 1.0 / n_valid
    mean = jnp.sum(y * rmask, axis=0, keepdims=True) * inv_n
    d = (y - mean) * rmask
    var = jnp.sum(d * d, axis=0, keepdims=True) * inv_n
    scale = gam_ref[...] * jax.lax.rsqrt(var + _BN_EPS)
    out = jnp.maximum(d * scale + bet_ref[...], 0.0)
    o_ref[...] = out.astype(o_ref.dtype)


def _deconv_bn_elu_kernel(a_ref, b_ref, p_ref, rm_ref, gam_ref, bet_ref,
                          o_ref, *, cout, count):
    """Fused phase-packed ConvTranspose2d matmul -> masked BatchNorm2d
    (two-pass batch stats; phases pooled per channel via the 0/1 combine
    matrix p_ref) -> affine -> ELU -> bf16 store.

    mask[r, c] = prod_i max(rm[r, i], cm_i[c]) is 1 exactly on the valid
    output pixels of the transposed convolution (the out-of-range boundary
    phases and the row/column padding are excluded from the statistics)."""
    y = jnp.dot(a_ref[...], b_ref[...], preferred_element_type=jnp.float32)
    _, npads = y.shape

    # Column (phase) validity factors, built in-kernel from a lane iota.
    # Columns are ordered (dy, dx, co): phase = c // cout, dy = phase // 2,
    # dx = phase % 2 -> expressible with static range compares only.
    c = jax.lax.broadcasted_iota(jnp.int32, (1, npads), 1)
    cm0 = (c >= 2 * cout).astype(jnp.float32)                       # dy != 0
    cm1 = (c < 2 * cout).astype(jnp.float32)                        # dy != 1
    cm2 = (((c >= cout) & (c < 2 * cout)) |
           (c >= 3 * cout)).astype(jnp.float32)                     # dx != 0
    cm3 = ((c < cout) |
           ((c >= 2 * cout) & (c < 3 * cout))).astype(jnp.float32)  # dx != 1
    rm = rm_ref[...]
    mask = (jnp.maximum(rm[:, 0:1], cm0) * jnp.maximum(rm[:, 1:2], cm1) *
            jnp.maximum(rm[:, 2:3], cm2) * jnp.maximum(rm[:, 3:4], cm3))

    inv_count = 1.0 / count
    ym = y * mask
    s = jnp.sum(ym, axis=0, keepdims=True)                          # (1,npads)
    s8 = jnp.broadcast_to(s, (8, npads))
    mean = jnp.dot(s8, p_ref[...],
                   preferred_element_type=jnp.float32)[0:1, :] * inv_count
    d = (y - mean) * mask
    q = jnp.sum(d * d, axis=0, keepdims=True)
    q8 = jnp.broadcast_to(q, (8, npads))
    var = jnp.dot(q8, p_ref[...],
                  preferred_element_type=jnp.float32)[0:1, :] * inv_count
    scale = gam_ref[...] * jax.lax.rsqrt(var + _BN_EPS)
    out = d * scale + bet_ref[...]
    out = jnp.where(out > 0.0, out, jnp.exp(jnp.minimum(out, 0.0)) - 1.0)
    o_ref[...] = out.astype(o_ref.dtype)


def _mm_tanh_kernel(a_ref, b_ref, o_ref):
    """Final phase-packed ConvTranspose2d matmul + tanh (no norm)."""
    y = jnp.dot(a_ref[...], b_ref[...], preferred_element_type=jnp.float32)
    o_ref[...] = jnp.tanh(y)


# --------------------------- pallas_call wrappers ----------------------------

def _call_projector(z, w, gamma, beta, *, n_valid):
    m_pad, lat = z.shape
    feat = w.shape[1]
    return pl.pallas_call(
        functools.partial(_proj_kernel, n_valid=n_valid),
        grid=(1,),
        in_specs=[_full_spec((m_pad, lat)), _full_spec((lat, feat)),
                  _full_spec((1, feat)), _full_spec((1, feat))],
        out_specs=_full_spec((m_pad, feat)),
        out_shape=jax.ShapeDtypeStruct((m_pad, feat), jnp.bfloat16),
        compiler_params=_COMPILER_PARAMS,
    )(z, w, gamma, beta)


def _call_deconv_bn_elu(a, b, p, rm, gamma, beta, *, cout, count):
    m_pad, k = a.shape
    npads = b.shape[1]
    return pl.pallas_call(
        functools.partial(_deconv_bn_elu_kernel, cout=cout, count=count),
        grid=(1,),
        in_specs=[_full_spec((m_pad, k)), _full_spec((k, npads)),
                  _full_spec((npads, npads)), _full_spec((m_pad, 4)),
                  _full_spec((1, npads)), _full_spec((1, npads))],
        out_specs=_full_spec((m_pad, npads)),
        out_shape=jax.ShapeDtypeStruct((m_pad, npads), jnp.bfloat16),
        compiler_params=_COMPILER_PARAMS,
    )(a, b, p, rm, gamma, beta)


def _call_mm_tanh(a, b):
    m_pad, k = a.shape
    npads = b.shape[1]
    return pl.pallas_call(
        _mm_tanh_kernel,
        grid=(1,),
        in_specs=[_full_spec((m_pad, k)), _full_spec((k, npads))],
        out_specs=_full_spec((m_pad, npads)),
        out_shape=jax.ShapeDtypeStruct((m_pad, npads), jnp.float32),
        compiler_params=_COMPILER_PARAMS,
    )(a, b)


# --------------------------- phase decomposition glue -------------------------
# ConvTranspose2d(k=4, s=2, p=1): the 2x2 input window {a, a+1} x {b, b+1}
# of the zero-padded input supplies ALL contributions to the 4 output pixels
# (2a+1+dy, 2b+1+dx), dy,dx in {0,1}.
# TODO(synk): the remaining XLA glue below (patch gather / phase de-interleave
# between blocks) could move in-kernel (manual DMA gather) to chain the whole
# stack in one pallas_call; per-layer fusion already removed the f32 HBM
# round trips, so this is left for a later pass.

def _phase_patches(x, m_pad):
    """(N,H,W,C) NHWC -> (m_pad, 4*C) bf16 2x2 neighborhoods of padded x."""
    n, h, w, c = x.shape
    hp, wp = h + 1, w + 1
    xp = jnp.pad(x, ((0, 0), (1, 1), (1, 1), (0, 0)))
    pats = [xp[:, dy:dy + hp, dx:dx + wp, :] for dy in (0, 1) for dx in (0, 1)]
    a = jnp.concatenate(pats, axis=-1).reshape(n * hp * wp, 4 * c)
    a = jnp.pad(a, ((0, m_pad - n * hp * wp), (0, 0)))
    return a.astype(jnp.bfloat16)


def _deinterleave(y, n, h, w, cout):
    """Phase-packed matmul output -> (N, 2H, 2W, Cout) NHWC."""
    hp, wp = h + 1, w + 1
    yv = y[:n * hp * wp, :4 * cout].reshape(n, hp, wp, 2, 2, cout)
    yv = yv.transpose(0, 1, 3, 2, 4, 5).reshape(n, 2 * hp, 2 * wp, cout)
    return yv[:, 1:2 * h + 1, 1:2 * w + 1, :]


def _row_factors(n, hp, wp, m_pad):
    """Per-row validity factors (a'!=0, a'!=hp-1, b'!=0, b'!=wp-1), zeroed on
    the padded rows.  Static -> a small compile-time constant input."""
    m = n * hp * wp
    r = np.arange(m_pad)
    bp = r % wp
    ap = (r // wp) % hp
    rm = np.stack([ap != 0, ap != hp - 1, bp != 0, bp != wp - 1], axis=1)
    rm &= (r < m)[:, None]
    return jnp.asarray(rm.astype(np.float32))


# --------------------------- one-time weight packing --------------------------

def _phase_weight(w, npads):
    """Torch ConvTranspose2d weight (Cin,Cout,4,4) -> (4*Cin, npads) bf16.

    Rows ordered (dy_in, dx_in, ci) to match _phase_patches; columns ordered
    (dy, dx, co) with zero padding up to npads (multiple of 128)."""
    cin, cout = w.shape[0], w.shape[1]
    wt = jnp.transpose(w, (2, 3, 0, 1))                      # (ky, kx, ci, co)
    kidx = jnp.array([[2, 3], [0, 1]], dtype=jnp.int32)      # [d_in, d_out]
    b6 = wt[kidx[:, :, None, None], kidx[None, None, :, :]]  # (dy_in,dy,dx_in,dx,ci,co)
    b = jnp.transpose(b6, (0, 2, 4, 1, 3, 5)).reshape(4 * cin, 4 * cout)
    b = jnp.pad(b, ((0, 0), (0, npads - 4 * cout)))
    return b.astype(jnp.bfloat16)


def _phase_combine_matrix(cout, npads):
    """0/1 matrix pooling the 4 phase columns of each channel (replicated back
    across the packed columns): P[i, j] = 1 iff i,j < 4*cout and i%cout==j%cout."""
    idx = np.arange(npads)
    valid = idx < 4 * cout
    same = (idx[:, None] % cout) == (idx[None, :] % cout)
    return jnp.asarray((valid[:, None] & valid[None, :] & same).astype(np.float32))


def prepare_gang_params(params):
    """One-time repacking of all weights (runs eagerly, outside the jitted
    forward): phase decomposition + bf16 cast, phase-tiled gamma/beta,
    phase-combine matrices, and the projector column permutation that makes
    its output already NHWC-flattened."""
    lat, feat = params["proj_w"].shape
    c0 = feat // 16
    proj_w = params["proj_w"].reshape(lat, c0, 4, 4).transpose(0, 2, 3, 1)
    proj_w = proj_w.reshape(lat, feat)
    gam = params["proj_gamma"].reshape(c0, 4, 4).transpose(1, 2, 0).reshape(feat)
    bet = params["proj_beta"].reshape(c0, 4, 4).transpose(1, 2, 0).reshape(feat)
    packed = {"proj_w": proj_w,
              "proj_gamma": gam[None, :],
              "proj_beta": bet[None, :]}
    # Linear bias is dropped: it cancels exactly under training-mode BN1d.
    blocks, couts = [], []
    for w, gamma, beta in params["blocks"]:
        cout = int(w.shape[1])
        npads = _round_up(4 * cout, 128)
        blocks.append({
            "w": _phase_weight(w, npads),
            "P": _phase_combine_matrix(cout, npads),
            "gamma": jnp.pad(jnp.tile(gamma, 4), (0, npads - 4 * cout))[None, :],
            "beta": jnp.pad(jnp.tile(beta, 4), (0, npads - 4 * cout))[None, :],
        })
        couts.append(cout)
    packed["blocks"] = blocks
    fw = params["final_w"]
    packed["final_w"] = _phase_weight(fw, _round_up(4 * fw.shape[1], 128))
    return packed, tuple(couts)


# --------------------------- layers ------------------------------------------

def _deconv_bn_elu(x, blk, cout):
    """Phase-decomposed ConvTranspose2d -> BatchNorm2d (batch stats) -> ELU,
    one fused pallas_call."""
    n, h, w, _ = x.shape
    hp, wp = h + 1, w + 1
    m = n * hp * wp
    m_pad = _round_up(m, 16)
    a = _phase_patches(x, m_pad)
    rm = _row_factors(n, hp, wp, m_pad)
    y = _call_deconv_bn_elu(a, blk["w"], blk["P"], rm, blk["gamma"],
                            blk["beta"], cout=cout, count=n * 2 * h * 2 * w)
    return _deinterleave(y, n, h, w, cout)


def _deconv_tanh(x, w_packed, cout):
    n, h, w, _ = x.shape
    m = n * (h + 1) * (w + 1)
    m_pad = _round_up(m, 16)
    a = _phase_patches(x, m_pad)
    y = _call_mm_tanh(a, w_packed)
    return _deinterleave(y, n, h, w, cout)


@functools.partial(jax.jit, static_argnums=(2,))
def gang_forward(z, packed, couts):
    n = z.shape[0]
    feat = packed["proj_w"].shape[1]
    c0 = feat // 16
    m_pad = _round_up(max(n, 8), 8)
    zp = jnp.pad(z, ((0, m_pad - n), (0, 0)))
    h = _call_projector(zp, packed["proj_w"], packed["proj_gamma"],
                        packed["proj_beta"], n_valid=n)
    x = h[:n].reshape(n, 4, 4, c0)           # already NHWC (columns permuted)
    for blk, cout in zip(packed["blocks"], couts):
        x = _deconv_bn_elu(x, blk, cout)
    y = _deconv_tanh(x, packed["final_w"], 3)
    return y.transpose(0, 3, 1, 2).astype(jnp.float32)     # back to NCHW
# TODO(synk): SelfAttention branch (use_SA=True) is not exercised by the
# default GANG config (use_SA=False) and is not implemented here.


# --------------------------- params ------------------------------------------

def _spectral_normalize(w, u0, n_iter=5):
    """PyTorch-style spectral_norm for ConvTranspose2d weights (dim=1)."""
    cout = w.shape[1]
    wm = jnp.transpose(w, (1, 0, 2, 3)).reshape(cout, -1)
    u = u0 / (jnp.linalg.norm(u0) + 1e-12)
    v = wm.T @ u
    for _ in range(n_iter):
        v = wm.T @ u
        v = v / (jnp.linalg.norm(v) + 1e-12)
        u = wm @ v
        u = u / (jnp.linalg.norm(u) + 1e-12)
    sigma = u @ (wm @ v)
    return w / sigma


def init_gang_params(key, lat_dim, hidden_dim, depth):
    init_channels = hidden_dim * 2 ** (depth - 1)
    feat = init_channels * 4 * 4
    ks = jax.random.split(key, 3 + 2 * depth)
    params = {
        "proj_w": 0.05 * jax.random.normal(ks[0], (lat_dim, feat), jnp.float32),
        "proj_b": 0.05 * jax.random.normal(ks[1], (feat,), jnp.float32),
        "proj_gamma": jnp.ones((feat,), jnp.float32),
        "proj_beta": jnp.zeros((feat,), jnp.float32),
    }
    blocks = []
    in_c = init_channels
    ki = 2
    for i in range(depth - 1):
        out_c = hidden_dim * 2 ** (depth - i - 1)
        w = 0.05 * jax.random.normal(ks[ki], (in_c, out_c, 4, 4), jnp.float32)
        u0 = jax.random.normal(ks[ki + 1], (out_c,), jnp.float32)
        ki += 2
        w = _spectral_normalize(w, u0)                    # use_SN=True (default)
        blocks.append((w,
                       jnp.ones((out_c,), jnp.float32),   # BN gamma
                       jnp.zeros((out_c,), jnp.float32))) # BN beta
        in_c = out_c
    params["blocks"] = blocks
    params["final_w"] = 0.05 * jax.random.normal(ks[ki], (in_c, 3, 4, 4),
                                                 jnp.float32)
    return params


# --------------------------- pure-JAX reference -------------------------------

def _convtranspose_ref(x_nhwc, w):
    wf = jnp.transpose(w[:, :, ::-1, ::-1], (2, 3, 0, 1))   # HWIO
    return jax.lax.conv_general_dilated(
        x_nhwc, wf, window_strides=(1, 1), padding=((2, 2), (2, 2)),
        lhs_dilation=(2, 2), dimension_numbers=("NHWC", "HWIO", "NHWC"))


@jax.jit
def gang_forward_ref(z, params):
    n = z.shape[0]
    feat = params["proj_w"].shape[1]
    c0 = feat // 16
    y = z @ params["proj_w"] + params["proj_b"]
    mu = y.mean(0, keepdims=True)
    var = ((y - mu) ** 2).mean(0, keepdims=True)
    y = (y - mu) / jnp.sqrt(var + _BN_EPS)
    y = jnp.maximum(y * params["proj_gamma"] + params["proj_beta"], 0.0)
    x = y.reshape(n, c0, 4, 4).transpose(0, 2, 3, 1)
    for w, gamma, beta in params["blocks"]:
        x = _convtranspose_ref(x, w)
        mu = x.mean((0, 1, 2), keepdims=True)
        var = ((x - mu) ** 2).mean((0, 1, 2), keepdims=True)
        x = (x - mu) / jnp.sqrt(var + _BN_EPS) * gamma + beta
        x = jnp.where(x > 0.0, x, jnp.exp(jnp.minimum(x, 0.0)) - 1.0)
    x = _convtranspose_ref(x, params["final_w"])
    return jnp.tanh(x).transpose(0, 3, 1, 2)


# --------------------------- main ---------------------------------------------

if __name__ == "__main__":
    lat_dim, hidden_dim, depth, batch = 32, 8, 3, 2
    key = jax.random.PRNGKey(0)
    pkey, zkey = jax.random.split(key)
    params = init_gang_params(pkey, lat_dim, hidden_dim, depth)
    packed, couts = prepare_gang_params(params)        # one-time weight prep
    z = jax.random.normal(zkey, (batch, lat_dim), jnp.float32)

    out = jax.block_until_ready(gang_forward(z, packed, couts))
    side = 4 * 2 ** depth
    assert out.shape == (batch, 3, side, side), out.shape

    ref = jax.block_until_ready(gang_forward_ref(z, params))
    max_err = float(jnp.max(jnp.abs(out - ref)))
    # bf16 MXU operands through three batch-stat BatchNorms -> relaxed tolerance
    assert max_err < 5e-2, max_err
    print("KERNEL_OK")
</pallas_src>

<mosaic_0001>
module attributes {stable_mosaic.version = 11 : i64} {
  func.func @_proj_kernel(%arg0: i32, %arg1: memref<8x32xf32, #tpu.memory_space<vmem>>, %arg2: memref<32x512xf32, #tpu.memory_space<vmem>>, %arg3: memref<1x512xf32, #tpu.memory_space<vmem>>, %arg4: memref<1x512xf32, #tpu.memory_space<vmem>>, %arg5: memref<8x512xbf16, #tpu.memory_space<vmem>>) attributes {dimension_semantics = [#tpu.dimension_semantics<arbitrary>], iteration_bounds = array<i64: 1>, scalar_prefetch = 0 : i64, scratch_operands = 0 : i64, tpu.core_type = #tpu.core_type<tc>, window_params = [{pipeline_mode = #tpu.pipeline_mode<synchronous>, transform_indices = @transform_0, window_bounds = array<i64: 8, 32>}, {pipeline_mode = #tpu.pipeline_mode<synchronous>, transform_indices = @transform_1, window_bounds = array<i64: 32, 512>}, {pipeline_mode = #tpu.pipeline_mode<synchronous>, transform_indices = @transform_2, window_bounds = array<i64: 1, 512>}, {pipeline_mode = #tpu.pipeline_mode<synchronous>, transform_indices = @transform_3, window_bounds = array<i64: 1, 512>}, {pipeline_mode = #tpu.pipeline_mode<synchronous>, transform_indices = @transform_4, window_bounds = array<i64: 8, 512>}]} {
    %c0 = arith.constant 0 : index
    %c0_0 = arith.constant 0 : index
    %0 = vector.load %arg1[%c0, %c0_0] : memref<8x32xf32, #tpu.memory_space<vmem>>, vector<8x32xf32>
    %c0_1 = arith.constant 0 : index
    %c0_2 = arith.constant 0 : index
    %1 = vector.load %arg2[%c0_1, %c0_2] : memref<32x512xf32, #tpu.memory_space<vmem>>, vector<32x512xf32>
    %cst = arith.constant dense<0.000000e+00> : vector<8x512xf32>
    %2 = tpu.matmul %0, %1, %cst {dimension_numbers = #tpu.dot_dimension_numbers<[1], [0], [0], [1], [0, 0, 1, 1], [], []>} : vector<8x32xf32>, vector<32x512xf32>, vector<8x512xf32> -> vector<8x512xf32>
    %3 = tpu.iota {dimensions = array<i32: 0>} : vector<8x512xi32>
    %c2_i32 = arith.constant 2 : i32
    %4 = vector.broadcast %c2_i32 : i32 to vector<8x512xi32>
    %5 = arith.cmpi slt, %3, %4 : vector<8x512xi32>
    %6 = arith.extui %5 : vector<8x512xi1> to vector<8x512xi32>
    %7 = arith.sitofp %6 : vector<8x512xi32> to vector<8x512xf32>
    %8 = arith.mulf %2, %7 : vector<8x512xf32>
    %cst_3 = arith.constant dense<0.000000e+00> : vector<512xf32>
    %9 = vector.multi_reduction <add>, %8, %cst_3 [0] : vector<8x512xf32> to vector<512xf32>
    %10 = vector.shape_cast %9 : vector<512xf32> to vector<1x512xf32>
    %cst_4 = arith.constant 5.000000e-01 : f32
    %11 = vector.broadcast %cst_4 : f32 to vector<1x512xf32>
    %12 = arith.mulf %10, %11 : vector<1x512xf32>
    %13 = vector.broadcast %12 : vector<1x512xf32> to vector<8x512xf32>
    %14 = arith.subf %2, %13 : vector<8x512xf32>
    %15 = arith.mulf %14, %7 : vector<8x512xf32>
    %16 = arith.mulf %15, %15 : vector<8x512xf32>
    %cst_5 = arith.constant dense<0.000000e+00> : vector<512xf32>
    %17 = vector.multi_reduction <add>, %16, %cst_5 [0] : vector<8x512xf32> to vector<512xf32>
    %18 = vector.shape_cast %17 : vector<512xf32> to vector<1x512xf32>
    %cst_6 = arith.constant 5.000000e-01 : f32
    %19 = vector.broadcast %cst_6 : f32 to vector<1x512xf32>
    %20 = arith.mulf %18, %19 : vector<1x512xf32>
    %c0_7 = arith.constant 0 : index
    %c0_8 = arith.constant 0 : index
    %21 = vector.load %arg3[%c0_7, %c0_8] : memref<1x512xf32, #tpu.memory_space<vmem>>, vector<1x512xf32>
    %cst_9 = arith.constant 9.99999974E-6 : f32
    %22 = vector.broadcast %cst_9 : f32 to vector<1x512xf32>
    %23 = arith.addf %20, %22 : vector<1x512xf32>
    %24 = math.rsqrt %23 : vector<1x512xf32>
    %25 = arith.mulf %21, %24 : vector<1x512xf32>
    %26 = vector.broadcast %25 : vector<1x512xf32> to vector<8x512xf32>
    %27 = arith.mulf %15, %26 : vector<8x512xf32>
    %c0_10 = arith.constant 0 : index
    %c0_11 = arith.constant 0 : index
    %28 = vector.load %arg4[%c0_10, %c0_11] : memref<1x512xf32, #tpu.memory_space<vmem>>, vector<1x512xf32>
    %29 = vector.broadcast %28 : vector<1x512xf32> to vector<8x512xf32>
    %30 = arith.addf %27, %29 : vector<8x512xf32>
    %cst_12 = arith.constant 0.000000e+00 : f32
    %31 = vector.broadcast %cst_12 : f32 to vector<8x512xf32>
    %32 = arith.maximumf %30, %31 : vector<8x512xf32>
    %33 = arith.truncf %32 : vector<8x512xf32> to vector<8x512xbf16>
    %c0_13 = arith.constant 0 : index
    %c0_14 = arith.constant 0 : index
    %34 = vector.load %arg5[%c0_13, %c0_14] : memref<8x512xbf16, #tpu.memory_space<vmem>>, vector<8x512xbf16>
    tpu.vector_store %arg5[%c0_13, %c0_14], %33 {strides = array<i32>} : memref<8x512xbf16, #tpu.memory_space<vmem>>, vector<8x512xbf16>,
    return
  }
  func.func @transform_0(%arg0: i32) -> (i32, i32) {
    %c0_i32 = arith.constant 0 : i32
    %c0_i32_0 = arith.constant 0 : i32
    %c0_i32_1 = arith.constant 0 : i32
    return %c0_i32, %c0_i32_0 : i32, i32
  }
  func.func @transform_1(%arg0: i32) -> (i32, i32) {
    %c0_i32 = arith.constant 0 : i32
    %c0_i32_0 = arith.constant 0 : i32
    %c0_i32_1 = arith.constant 0 : i32
    return %c0_i32, %c0_i32_0 : i32, i32
  }
  func.func @transform_2(%arg0: i32) -> (i32, i32) {
    %c0_i32 = arith.constant 0 : i32
    %c0_i32_0 = arith.constant 0 : i32
    %c0_i32_1 = arith.constant 0 : i32
    return %c0_i32, %c0_i32_0 : i32, i32
  }
  func.func @transform_3(%arg0: i32) -> (i32, i32) {
    %c0_i32 = arith.constant 0 : i32
    %c0_i32_0 = arith.constant 0 : i32
    %c0_i32_1 = arith.constant 0 : i32
    return %c0_i32, %c0_i32_0 : i32, i32
  }
  func.func @transform_4(%arg0: i32) -> (i32, i32) {
    %c0_i32 = arith.constant 0 : i32
    %c0_i32_0 = arith.constant 0 : i32
    %c0_i32_1 = arith.constant 0 : i32
    return %c0_i32, %c0_i32_0 : i32, i32
  }
}

module attributes {stable_mosaic.version = 11 : i64} {
  func.func @_deconv_bn_elu_kernel(%arg0: i32, %arg1: memref<64x128xbf16, #tpu.memory_space<vmem>>, %arg2: memref<128x128xbf16, #tpu.memory_space<vmem>>, %arg3: memref<128x128xf32, #tpu.memory_space<vmem>>, %arg4: memref<64x4xf32, #tpu.memory_space<vmem>>, %arg5: memref<1x128xf32, #tpu.memory_space<vmem>>, %arg6: memref<1x128xf32, #tpu.memory_space<vmem>>, %arg7: memref<64x128xbf16, #tpu.memory_space<vmem>>) attributes {dimension_semantics = [#tpu.dimension_semantics<arbitrary>], iteration_bounds = array<i64: 1>, scalar_prefetch = 0 : i64, scratch_operands = 0 : i64, tpu.core_type = #tpu.core_type<tc>, window_params = [{pipeline_mode = #tpu.pipeline_mode<synchronous>, transform_indices = @transform_0, window_bounds = array<i64: 64, 128>}, {pipeline_mode = #tpu.pipeline_mode<synchronous>, transform_indices = @transform_1, window_bounds = array<i64: 128, 128>}, {pipeline_mode = #tpu.pipeline_mode<synchronous>, transform_indices = @transform_2, window_bounds = array<i64: 128, 128>}, {pipeline_mode = #tpu.pipeline_mode<synchronous>, transform_indices = @transform_3, window_bounds = array<i64: 64, 4>}, {pipeline_mode = #tpu.pipeline_mode<synchronous>, transform_indices = @transform_4, window_bounds = array<i64: 1, 128>}, {pipeline_mode = #tpu.pipeline_mode<synchronous>, transform_indices = @transform_5, window_bounds = array<i64: 1, 128>}, {pipeline_mode = #tpu.pipeline_mode<synchronous>, transform_indices = @transform_6, window_bounds = array<i64: 64, 128>}]} {
    %c0 = arith.constant 0 : index
    %c0_0 = arith.constant 0 : index
    %0 = vector.load %arg1[%c0, %c0_0] : memref<64x128xbf16, #tpu.memory_space<vmem>>, vector<64x128xbf16>
    %c0_1 = arith.constant 0 : index
    %c0_2 = arith.constant 0 : index
    %1 = vector.load %arg2[%c0_1, %c0_2] : memref<128x128xbf16, #tpu.memory_space<vmem>>, vector<128x128xbf16>
    %cst = arith.constant dense<0.000000e+00> : vector<64x128xf32>
    %2 = tpu.matmul %0, %1, %cst {dimension_numbers = #tpu.dot_dimension_numbers<[1], [0], [0], [1], [0, 0, 1, 1], [], []>} : vector<64x128xbf16>, vector<128x128xbf16>, vector<64x128xf32> -> vector<64x128xf32>
    %3 = tpu.iota {dimensions = array<i32: 1>} : vector<1x128xi32>
    %c64_i32 = arith.constant 64 : i32
    %4 = vector.broadcast %c64_i32 : i32 to vector<1x128xi32>
    %5 = arith.cmpi sge, %3, %4 : vector<1x128xi32>
    %6 = arith.extui %5 : vector<1x128xi1> to vector<1x128xi32>
    %7 = arith.sitofp %6 : vector<1x128xi32> to vector<1x128xf32>
    %c64_i32_3 = arith.constant 64 : i32
    %8 = vector.broadcast %c64_i32_3 : i32 to vector<1x128xi32>
    %9 = arith.cmpi slt, %3, %8 : vector<1x128xi32>
    %10 = arith.extui %9 : vector<1x128xi1> to vector<1x128xi32>
    %11 = arith.sitofp %10 : vector<1x128xi32> to vector<1x128xf32>
    %c32_i32 = arith.constant 32 : i32
    %12 = vector.broadcast %c32_i32 : i32 to vector<1x128xi32>
    %13 = arith.cmpi sge, %3, %12 : vector<1x128xi32>
    %c64_i32_4 = arith.constant 64 : i32
    %14 = vector.broadcast %c64_i32_4 : i32 to vector<1x128xi32>
    %15 = arith.cmpi slt, %3, %14 : vector<1x128xi32>
    %16 = arith.andi %13, %15 : vector<1x128xi1>
    %c96_i32 = arith.constant 96 : i32
    %17 = vector.broadcast %c96_i32 : i32 to vector<1x128xi32>
    %18 = arith.cmpi sge, %3, %17 : vector<1x128xi32>
    %19 = arith.ori %16, %18 : vector<1x128xi1>
    %20 = arith.extui %19 : vector<1x128xi1> to vector<1x128xi32>
    %21 = arith.sitofp %20 : vector<1x128xi32> to vector<1x128xf32>
    %c32_i32_5 = arith.constant 32 : i32
    %22 = vector.broadcast %c32_i32_5 : i32 to vector<1x128xi32>
    %23 = arith.cmpi slt, %3, %22 : vector<1x128xi32>
    %c64_i32_6 = arith.constant 64 : i32
    %24 = vector.broadcast %c64_i32_6 : i32 to vector<1x128xi32>
    %25 = arith.cmpi sge, %3, %24 : vector<1x128xi32>
    %c96_i32_7 = arith.constant 96 : i32
    %26 = vector.broadcast %c96_i32_7 : i32 to vector<1x128xi32>
    %27 = arith.cmpi slt, %3, %26 : vector<1x128xi32>
    %28 = arith.andi %25, %27 : vector<1x128xi1>
    %29 = arith.ori %23, %28 : vector<1x128xi1>
    %30 = arith.extui %29 : vector<1x128xi1> to vector<1x128xi32>
    %31 = arith.sitofp %30 : vector<1x128xi32> to vector<1x128xf32>
    %c0_8 = arith.constant 0 : index
    %c0_9 = arith.constant 0 : index
    %32 = vector.load %arg4[%c0_8, %c0_9] : memref<64x4xf32, #tpu.memory_space<vmem>>, vector<64x4xf32>
    %33 = vector.extract_strided_slice %32 {offsets = [0, 0], sizes = [64, 1], strides = [1, 1]} : vector<64x4xf32> to vector<64x1xf32>
    %34 = vector.broadcast %33 : vector<64x1xf32> to vector<64x128xf32>
    %35 = vector.broadcast %7 : vector<1x128xf32> to vector<64x128xf32>
    %36 = arith.maximumf %34, %35 : vector<64x128xf32>
    %37 = vector.extract_strided_slice %32 {offsets = [0, 1], sizes = [64, 1], strides = [1, 1]} : vector<64x4xf32> to vector<64x1xf32>
    %38 = vector.broadcast %37 : vector<64x1xf32> to vector<64x128xf32>
    %39 = vector.broadcast %11 : vector<1x128xf32> to vector<64x128xf32>
    %40 = arith.maximumf %38, %39 : vector<64x128xf32>
    %41 = arith.mulf %36, %40 : vector<64x128xf32>
    %42 = vector.extract_strided_slice %32 {offsets = [0, 2], sizes = [64, 1], strides = [1, 1]} : vector<64x4xf32> to vector<64x1xf32>
    %43 = vector.broadcast %42 : vector<64x1xf32> to vector<64x128xf32>
    %44 = vector.broadcast %21 : vector<1x128xf32> to vector<64x128xf32>
    %45 = arith.maximumf %43, %44 : vector<64x128xf32>
    %46 = arith.mulf %41, %45 : vector<64x128xf32>
    %47 = vector.extract_strided_slice %32 {offsets = [0, 3], sizes = [64, 1], strides = [1, 1]} : vector<64x4xf32> to vector<64x1xf32>
    %48 = vector.broadcast %47 : vector<64x1xf32> to vector<64x128xf32>
    %49 = vector.broadcast %31 : vector<1x128xf32> to vector<64x128xf32>
    %50 = arith.maximumf %48, %49 : vector<64x128xf32>
    %51 = arith.mulf %46, %50 : vector<64x128xf32>
    %52 = arith.mulf %2, %51 : vector<64x128xf32>
    %cst_10 = arith.constant dense<0.000000e+00> : vector<128xf32>
    %53 = vector.multi_reduction <add>, %52, %cst_10 [0] : vector<64x128xf32> to vector<128xf32>
    %54 = vector.shape_cast %53 : vector<128xf32> to vector<1x128xf32>
    %55 = vector.shape_cast %54 : vector<1x128xf32> to vector<1x128xf32>
    %56 = vector.broadcast %55 : vector<1x128xf32> to vector<8x128xf32>
    %c0_11 = arith.constant 0 : index
    %c0_12 = arith.constant 0 : index
    %57 = vector.load %arg3[%c0_11, %c0_12] : memref<128x128xf32, #tpu.memory_space<vmem>>, vector<128x128xf32>
    %cst_13 = arith.constant dense<0.000000e+00> : vector<8x128xf32>
    %58 = tpu.matmul %56, %57, %cst_13 {dimension_numbers = #tpu.dot_dimension_numbers<[1], [0], [0], [1], [0, 0, 1, 1], [], []>} : vector<8x128xf32>, vector<128x128xf32>, vector<8x128xf32> -> vector<8x128xf32>
    %59 = vector.extract_strided_slice %58 {offsets = [0, 0], sizes = [1, 128], strides = [1, 1]} : vector<8x128xf32> to vector<1x128xf32>
    %cst_14 = arith.constant 7.812500e-03 : f32
    %60 = vector.broadcast %cst_14 : f32 to vector<1x128xf32>
    %61 = arith.mulf %59, %60 : vector<1x128xf32>
    %62 = vector.broadcast %61 : vector<1x128xf32> to vector<64x128xf32>
    %63 = arith.subf %2, %62 : vector<64x128xf32>
    %64 = arith.mulf %63, %51 : vector<64x128xf32>
    %65 = arith.mulf %64, %64 : vector<64x128xf32>
    %cst_15 = arith.constant dense<0.000000e+00> : vector<128xf32>
    %66 = vector.multi_reduction <add>, %65, %cst_15 [0] : vector<64x128xf32> to vector<128xf32>
    %67 = vector.shape_cast %66 : vector<128xf32> to vector<1x128xf32>
    %68 = vector.shape_cast %67 : vector<1x128xf32> to vector<1x128xf32>
    %69 = vector.broadcast %68 : vector<1x128xf32> to vector<8x128xf32>
    %c0_16 = arith.constant 0 : index
    %c0_17 = arith.constant 0 : index
    %70 = vector.load %arg3[%c0_16, %c0_17] : memref<128x128xf32, #tpu.memory_space<vmem>>, vector<128x128xf32>
    %cst_18 = arith.constant dense<0.000000e+00> : vector<8x128xf32>
    %71 = tpu.matmul %69, %70, %cst_18 {dimension_numbers = #tpu.dot_dimension_numbers<[1], [0], [0], [1], [0, 0, 1, 1], [], []>} : vector<8x128xf32>, vector<128x128xf32>, vector<8x128xf32> -> vector<8x128xf32>
    %72 = vector.extract_strided_slice %71 {offsets = [0, 0], sizes = [1, 128], strides = [1, 1]} : vector<8x128xf32> to vector<1x128xf32>
    %cst_19 = arith.constant 7.812500e-03 : f32
    %73 = vector.broadcast %cst_19 : f32 to vector<1x128xf32>
    %74 = arith.mulf %72, %73 : vector<1x128xf32>
    %c0_20 = arith.constant 0 : index
    %c0_21 = arith.constant 0 : index
    %75 = vector.load %arg5[%c0_20, %c0_21] : memref<1x128xf32, #tpu.memory_space<vmem>>, vector<1x128xf32>
    %cst_22 = arith.constant 9.99999974E-6 : f32
    %76 = vector.broadcast %cst_22 : f32 to vector<1x128xf32>
    %77 = arith.addf %74, %76 : vector<1x128xf32>
    %78 = math.rsqrt %77 : vector<1x128xf32>
    %79 = arith.mulf %75, %78 : vector<1x128xf32>
    %80 = vector.broadcast %79 : vector<1x128xf32> to vector<64x128xf32>
    %81 = arith.mulf %64, %80 : vector<64x128xf32>
    %c0_23 = arith.constant 0 : index
    %c0_24 = arith.constant 0 : index
    %82 = vector.load %arg6[%c0_23, %c0_24] : memref<1x128xf32, #tpu.memory_space<vmem>>, vector<1x128xf32>
    %83 = vector.broadcast %82 : vector<1x128xf32> to vector<64x128xf32>
    %84 = arith.addf %81, %83 : vector<64x128xf32>
    %cst_25 = arith.constant 0.000000e+00 : f32
    %85 = vector.broadcast %cst_25 : f32 to vector<64x128xf32>
    %86 = arith.cmpf ogt, %84, %85 : vector<64x128xf32>
    %cst_26 = arith.constant 0.000000e+00 : f32
    %87 = vector.broadcast %cst_26 : f32 to vector<64x128xf32>
    %88 = arith.minimumf %84, %87 : vector<64x128xf32>
    %89 = math.exp %88 : vector<64x128xf32>
    %cst_27 = arith.constant 1.000000e+00 : f32
    %90 = vector.broadcast %cst_27 : f32 to vector<64x128xf32>
    %91 = arith.subf %89, %90 : vector<64x128xf32>
    %92 = arith.select %86, %84, %91 : vector<64x128xi1>, vector<64x128xf32>
    %93 = arith.truncf %92 : vector<64x128xf32> to vector<64x128xbf16>
    %c0_28 = arith.constant 0 : index
    %c0_29 = arith.constant 0 : index
    %94 = vector.load %arg7[%c0_28, %c0_29] : memref<64x128xbf16, #tpu.memory_space<vmem>>, vector<64x128xbf16>
    tpu.vector_store %arg7[%c0_28, %c0_29], %93 {strides = array<i32>} : memref<64x128xbf16, #tpu.memory_space<vmem>>, vector<64x128xbf16>,
    return
  }
  func.func @transform_0(%arg0: i32) -> (i32, i32) {
    %c0_i32 = arith.constant 0 : i32
    %c0_i32_0 = arith.constant 0 : i32
    %c0_i32_1 = arith.constant 0 : i32
    return %c0_i32, %c0_i32_0 : i32, i32
  }
  func.func @transform_1(%arg0: i32) -> (i32, i32) {
    %c0_i32 = arith.constant 0 : i32
    %c0_i32_0 = arith.constant 0 : i32
    %c0_i32_1 = arith.constant 0 : i32
    return %c0_i32, %c0_i32_0 : i32, i32
  }
  func.func @transform_2(%arg0: i32) -> (i32, i32) {
    %c0_i32 = arith.constant 0 : i32
    %c0_i32_0 = arith.constant 0 : i32
    %c0_i32_1 = arith.constant 0 : i32
    return %c0_i32, %c0_i32_0 : i32, i32
  }
  func.func @transform_3(%arg0: i32) -> (i32, i32) {
    %c0_i32 = arith.constant 0 : i32
    %c0_i32_0 = arith.constant 0 : i32
    %c0_i32_1 = arith.constant 0 : i32
    return %c0_i32, %c0_i32_0 : i32, i32
  }
  func.func @transform_4(%arg0: i32) -> (i32, i32) {
    %c0_i32 = arith.constant 0 : i32
    %c0_i32_0 = arith.constant 0 : i32
    %c0_i32_1 = arith.constant 0 : i32
    return %c0_i32, %c0_i32_0 : i32, i32
  }
  func.func @transform_5(%arg0: i32) -> (i32, i32) {
    %c0_i32 = arith.constant 0 : i32
    %c0_i32_0 = arith.constant 0 : i32
    %c0_i32_1 = arith.constant 0 : i32
    return %c0_i32, %c0_i32_0 : i32, i32
  }
  func.func @transform_6(%arg0: i32) -> (i32, i32) {
    %c0_i32 = arith.constant 0 : i32
    %c0_i32_0 = arith.constant 0 : i32
    %c0_i32_1 = arith.constant 0 : i32
    return %c0_i32, %c0_i32_0 : i32, i32
  }
}

module attributes {stable_mosaic.version = 11 : i64} {
  func.func @_deconv_bn_elu_kernel(%arg0: i32, %arg1: memref<176x128xbf16, #tpu.memory_space<vmem>>, %arg2: memref<128x128xbf16, #tpu.memory_space<vmem>>, %arg3: memref<128x128xf32, #tpu.memory_space<vmem>>, %arg4: memref<176x4xf32, #tpu.memory_space<vmem>>, %arg5: memref<1x128xf32, #tpu.memory_space<vmem>>, %arg6: memref<1x128xf32, #tpu.memory_space<vmem>>, %arg7: memref<176x128xbf16, #tpu.memory_space<vmem>>) attributes {dimension_semantics = [#tpu.dimension_semantics<arbitrary>], iteration_bounds = array<i64: 1>, scalar_prefetch = 0 : i64, scratch_operands = 0 : i64, tpu.core_type = #tpu.core_type<tc>, window_params = [{pipeline_mode = #tpu.pipeline_mode<synchronous>, transform_indices = @transform_0, window_bounds = array<i64: 176, 128>}, {pipeline_mode = #tpu.pipeline_mode<synchronous>, transform_indices = @transform_1, window_bounds = array<i64: 128, 128>}, {pipeline_mode = #tpu.pipeline_mode<synchronous>, transform_indices = @transform_2, window_bounds = array<i64: 128, 128>}, {pipeline_mode = #tpu.pipeline_mode<synchronous>, transform_indices = @transform_3, window_bounds = array<i64: 176, 4>}, {pipeline_mode = #tpu.pipeline_mode<synchronous>, transform_indices = @transform_4, window_bounds = array<i64: 1, 128>}, {pipeline_mode = #tpu.pipeline_mode<synchronous>, transform_indices = @transform_5, window_bounds = array<i64: 1, 128>}, {pipeline_mode = #tpu.pipeline_mode<synchronous>, transform_indices = @transform_6, window_bounds = array<i64: 176, 128>}]} {
    %c0 = arith.constant 0 : index
    %c0_0 = arith.constant 0 : index
    %0 = vector.load %arg1[%c0, %c0_0] : memref<176x128xbf16, #tpu.memory_space<vmem>>, vector<176x128xbf16>
    %c0_1 = arith.constant 0 : index
    %c0_2 = arith.constant 0 : index
    %1 = vector.load %arg2[%c0_1, %c0_2] : memref<128x128xbf16, #tpu.memory_space<vmem>>, vector<128x128xbf16>
    %cst = arith.constant dense<0.000000e+00> : vector<176x128xf32>
    %2 = tpu.matmul %0, %1, %cst {dimension_numbers = #tpu.dot_dimension_numbers<[1], [0], [0], [1], [0, 0, 1, 1], [], []>} : vector<176x128xbf16>, vector<128x128xbf16>, vector<176x128xf32> -> vector<176x128xf32>
    %3 = tpu.iota {dimensions = array<i32: 1>} : vector<1x128xi32>
    %c32_i32 = arith.constant 32 : i32
    %4 = vector.broadcast %c32_i32 : i32 to vector<1x128xi32>
    %5 = arith.cmpi sge, %3, %4 : vector<1x128xi32>
    %6 = arith.extui %5 : vector<1x128xi1> to vector<1x128xi32>
    %7 = arith.sitofp %6 : vector<1x128xi32> to vector<1x128xf32>
    %c32_i32_3 = arith.constant 32 : i32
    %8 = vector.broadcast %c32_i32_3 : i32 to vector<1x128xi32>
    %9 = arith.cmpi slt, %3, %8 : vector<1x128xi32>
    %10 = arith.extui %9 : vector<1x128xi1> to vector<1x128xi32>
    %11 = arith.sitofp %10 : vector<1x128xi32> to vector<1x128xf32>
    %c16_i32 = arith.constant 16 : i32
    %12 = vector.broadcast %c16_i32 : i32 to vector<1x128xi32>
    %13 = arith.cmpi sge, %3, %12 : vector<1x128xi32>
    %c32_i32_4 = arith.constant 32 : i32
    %14 = vector.broadcast %c32_i32_4 : i32 to vector<1x128xi32>
    %15 = arith.cmpi slt, %3, %14 : vector<1x128xi32>
    %16 = arith.andi %13, %15 : vector<1x128xi1>
    %c48_i32 = arith.constant 48 : i32
    %17 = vector.broadcast %c48_i32 : i32 to vector<1x128xi32>
    %18 = arith.cmpi sge, %3, %17 : vector<1x128xi32>
    %19 = arith.ori %16, %18 : vector<1x128xi1>
    %20 = arith.extui %19 : vector<1x128xi1> to vector<1x128xi32>
    %21 = arith.sitofp %20 : vector<1x128xi32> to vector<1x128xf32>
    %c16_i32_5 = arith.constant 16 : i32
    %22 = vector.broadcast %c16_i32_5 : i32 to vector<1x128xi32>
    %23 = arith.cmpi slt, %3, %22 : vector<1x128xi32>
    %c32_i32_6 = arith.constant 32 : i32
    %24 = vector.broadcast %c32_i32_6 : i32 to vector<1x128xi32>
    %25 = arith.cmpi sge, %3, %24 : vector<1x128xi32>
    %c48_i32_7 = arith.constant 48 : i32
    %26 = vector.broadcast %c48_i32_7 : i32 to vector<1x128xi32>
    %27 = arith.cmpi slt, %3, %26 : vector<1x128xi32>
    %28 = arith.andi %25, %27 : vector<1x128xi1>
    %29 = arith.ori %23, %28 : vector<1x128xi1>
    %30 = arith.extui %29 : vector<1x128xi1> to vector<1x128xi32>
    %31 = arith.sitofp %30 : vector<1x128xi32> to vector<1x128xf32>
    %c0_8 = arith.constant 0 : index
    %c0_9 = arith.constant 0 : index
    %32 = vector.load %arg4[%c0_8, %c0_9] : memref<176x4xf32, #tpu.memory_space<vmem>>, vector<176x4xf32>
    %33 = vector.extract_strided_slice %32 {offsets = [0, 0], sizes = [176, 1], strides = [1, 1]} : vector<176x4xf32> to vector<176x1xf32>
    %34 = vector.broadcast %33 : vector<176x1xf32> to vector<176x128xf32>
    %35 = vector.broadcast %7 : vector<1x128xf32> to vector<176x128xf32>
    %36 = arith.maximumf %34, %35 : vector<176x128xf32>
    %37 = vector.extract_strided_slice %32 {offsets = [0, 1], sizes = [176, 1], strides = [1, 1]} : vector<176x4xf32> to vector<176x1xf32>
    %38 = vector.broadcast %37 : vector<176x1xf32> to vector<176x128xf32>
    %39 = vector.broadcast %11 : vector<1x128xf32> to vector<176x128xf32>
    %40 = arith.maximumf %38, %39 : vector<176x128xf32>
    %41 = arith.mulf %36, %40 : vector<176x128xf32>
    %42 = vector.extract_strided_slice %32 {offsets = [0, 2], sizes = [176, 1], strides = [1, 1]} : vector<176x4xf32> to vector<176x1xf32>
    %43 = vector.broadcast %42 : vector<176x1xf32> to vector<176x128xf32>
    %44 = vector.broadcast %21 : vector<1x128xf32> to vector<176x128xf32>
    %45 = arith.maximumf %43, %44 : vector<176x128xf32>
    %46 = arith.mulf %41, %45 : vector<176x128xf32>
    %47 = vector.extract_strided_slice %32 {offsets = [0, 3], sizes = [176, 1], strides = [1, 1]} : vector<176x4xf32> to vector<176x1xf32>
    %48 = vector.broadcast %47 : vector<176x1xf32> to vector<176x128xf32>
    %49 = vector.broadcast %31 : vector<1x128xf32> to vector<176x128xf32>
    %50 = arith.maximumf %48, %49 : vector<176x128xf32>
    %51 = arith.mulf %46, %50 : vector<176x128xf32>
    %52 = arith.mulf %2, %51 : vector<176x128xf32>
    %cst_10 = arith.constant dense<0.000000e+00> : vector<128xf32>
    %53 = vector.multi_reduction <add>, %52, %cst_10 [0] : vector<176x128xf32> to vector<128xf32>
    %54 = vector.shape_cast %53 : vector<128xf32> to vector<1x128xf32>
    %55 = vector.shape_cast %54 : vector<1x128xf32> to vector<1x128xf32>
    %56 = vector.broadcast %55 : vector<1x128xf32> to vector<8x128xf32>
    %c0_11 = arith.constant 0 : index
    %c0_12 = arith.constant 0 : index
    %57 = vector.load %arg3[%c0_11, %c0_12] : memref<128x128xf32, #tpu.memory_space<vmem>>, vector<128x128xf32>
    %cst_13 = arith.constant dense<0.000000e+00> : vector<8x128xf32>
    %58 = tpu.matmul %56, %57, %cst_13 {dimension_numbers = #tpu.dot_dimension_numbers<[1], [0], [0], [1], [0, 0, 1, 1], [], []>} : vector<8x128xf32>, vector<128x128xf32>, vector<8x128xf32> -> vector<8x128xf32>
    %59 = vector.extract_strided_slice %58 {offsets = [0, 0], sizes = [1, 128], strides = [1, 1]} : vector<8x128xf32> to vector<1x128xf32>
    %cst_14 = arith.constant 0.001953125 : f32
    %60 = vector.broadcast %cst_14 : f32 to vector<1x128xf32>
    %61 = arith.mulf %59, %60 : vector<1x128xf32>
    %62 = vector.broadcast %61 : vector<1x128xf32> to vector<176x128xf32>
    %63 = arith.subf %2, %62 : vector<176x128xf32>
    %64 = arith.mulf %63, %51 : vector<176x128xf32>
    %65 = arith.mulf %64, %64 : vector<176x128xf32>
    %cst_15 = arith.constant dense<0.000000e+00> : vector<128xf32>
    %66 = vector.multi_reduction <add>, %65, %cst_15 [0] : vector<176x128xf32> to vector<128xf32>
    %67 = vector.shape_cast %66 : vector<128xf32> to vector<1x128xf32>
    %68 = vector.shape_cast %67 : vector<1x128xf32> to vector<1x128xf32>
    %69 = vector.broadcast %68 : vector<1x128xf32> to vector<8x128xf32>
    %c0_16 = arith.constant 0 : index
    %c0_17 = arith.constant 0 : index
    %70 = vector.load %arg3[%c0_16, %c0_17] : memref<128x128xf32, #tpu.memory_space<vmem>>, vector<128x128xf32>
    %cst_18 = arith.constant dense<0.000000e+00> : vector<8x128xf32>
    %71 = tpu.matmul %69, %70, %cst_18 {dimension_numbers = #tpu.dot_dimension_numbers<[1], [0], [0], [1], [0, 0, 1, 1], [], []>} : vector<8x128xf32>, vector<128x128xf32>, vector<8x128xf32> -> vector<8x128xf32>
    %72 = vector.extract_strided_slice %71 {offsets = [0, 0], sizes = [1, 128], strides = [1, 1]} : vector<8x128xf32> to vector<1x128xf32>
    %cst_19 = arith.constant 0.001953125 : f32
    %73 = vector.broadcast %cst_19 : f32 to vector<1x128xf32>
    %74 = arith.mulf %72, %73 : vector<1x128xf32>
    %c0_20 = arith.constant 0 : index
    %c0_21 = arith.constant 0 : index
    %75 = vector.load %arg5[%c0_20, %c0_21] : memref<1x128xf32, #tpu.memory_space<vmem>>, vector<1x128xf32>
    %cst_22 = arith.constant 9.99999974E-6 : f32
    %76 = vector.broadcast %cst_22 : f32 to vector<1x128xf32>
    %77 = arith.addf %74, %76 : vector<1x128xf32>
    %78 = math.rsqrt %77 : vector<1x128xf32>
    %79 = arith.mulf %75, %78 : vector<1x128xf32>
    %80 = vector.broadcast %79 : vector<1x128xf32> to vector<176x128xf32>
    %81 = arith.mulf %64, %80 : vector<176x128xf32>
    %c0_23 = arith.constant 0 : index
    %c0_24 = arith.constant 0 : index
    %82 = vector.load %arg6[%c0_23, %c0_24] : memref<1x128xf32, #tpu.memory_space<vmem>>, vector<1x128xf32>
    %83 = vector.broadcast %82 : vector<1x128xf32> to vector<176x128xf32>
    %84 = arith.addf %81, %83 : vector<176x128xf32>
    %cst_25 = arith.constant 0.000000e+00 : f32
    %85 = vector.broadcast %cst_25 : f32 to vector<176x128xf32>
    %86 = arith.cmpf ogt, %84, %85 : vector<176x128xf32>
    %cst_26 = arith.constant 0.000000e+00 : f32
    %87 = vector.broadcast %cst_26 : f32 to vector<176x128xf32>
    %88 = arith.minimumf %84, %87 : vector<176x128xf32>
    %89 = math.exp %88 : vector<176x128xf32>
    %cst_27 = arith.constant 1.000000e+00 : f32
    %90 = vector.broadcast %cst_27 : f32 to vector<176x128xf32>
    %91 = arith.subf %89, %90 : vector<176x128xf32>
    %92 = arith.select %86, %84, %91 : vector<176x128xi1>, vector<176x128xf32>
    %93 = arith.truncf %92 : vector<176x128xf32> to vector<176x128xbf16>
    %c0_28 = arith.constant 0 : index
    %c0_29 = arith.constant 0 : index
    %94 = vector.load %arg7[%c0_28, %c0_29] : memref<176x128xbf16, #tpu.memory_space<vmem>>, vector<176x128xbf16>
    tpu.vector_store %arg7[%c0_28, %c0_29], %93 {strides = array<i32>} : memref<176x128xbf16, #tpu.memory_space<vmem>>, vector<176x128xbf16>,
    return
  }
  func.func @transform_0(%arg0: i32) -> (i32, i32) {
    %c0_i32 = arith.constant 0 : i32
    %c0_i32_0 = arith.constant 0 : i32
    %c0_i32_1 = arith.constant 0 : i32
    return %c0_i32, %c0_i32_0 : i32, i32
  }
  func.func @transform_1(%arg0: i32) -> (i32, i32) {
    %c0_i32 = arith.constant 0 : i32
    %c0_i32_0 = arith.constant 0 : i32
    %c0_i32_1 = arith.constant 0 : i32
    return %c0_i32, %c0_i32_0 : i32, i32
  }
  func.func @transform_2(%arg0: i32) -> (i32, i32) {
    %c0_i32 = arith.constant 0 : i32
    %c0_i32_0 = arith.constant 0 : i32
    %c0_i32_1 = arith.constant 0 : i32
    return %c0_i32, %c0_i32_0 : i32, i32
  }
  func.func @transform_3(%arg0: i32) -> (i32, i32) {
    %c0_i32 = arith.constant 0 : i32
    %c0_i32_0 = arith.constant 0 : i32
    %c0_i32_1 = arith.constant 0 : i32
    return %c0_i32, %c0_i32_0 : i32, i32
  }
  func.func @transform_4(%arg0: i32) -> (i32, i32) {
    %c0_i32 = arith.constant 0 : i32
    %c0_i32_0 = arith.constant 0 : i32
    %c0_i32_1 = arith.constant 0 : i32
    return %c0_i32, %c0_i32_0 : i32, i32
  }
  func.func @transform_5(%arg0: i32) -> (i32, i32) {
    %c0_i32 = arith.constant 0 : i32
    %c0_i32_0 = arith.constant 0 : i32
    %c0_i32_1 = arith.constant 0 : i32
    return %c0_i32, %c0_i32_0 : i32, i32
  }
  func.func @transform_6(%arg0: i32) -> (i32, i32) {
    %c0_i32 = arith.constant 0 : i32
    %c0_i32_0 = arith.constant 0 : i32
    %c0_i32_1 = arith.constant 0 : i32
    return %c0_i32, %c0_i32_0 : i32, i32
  }
}

module attributes {stable_mosaic.version = 11 : i64} {
  func.func @_mm_tanh_kernel(%arg0: i32, %arg1: memref<592x64xbf16, #tpu.memory_space<vmem>>, %arg2: memref<64x128xbf16, #tpu.memory_space<vmem>>, %arg3: memref<592x128xf32, #tpu.memory_space<vmem>>) attributes {dimension_semantics = [#tpu.dimension_semantics<arbitrary>], iteration_bounds = array<i64: 1>, scalar_prefetch = 0 : i64, scratch_operands = 0 : i64, tpu.core_type = #tpu.core_type<tc>, window_params = [{pipeline_mode = #tpu.pipeline_mode<synchronous>, transform_indices = @transform_0, window_bounds = array<i64: 592, 64>}, {pipeline_mode = #tpu.pipeline_mode<synchronous>, transform_indices = @transform_1, window_bounds = array<i64: 64, 128>}, {pipeline_mode = #tpu.pipeline_mode<synchronous>, transform_indices = @transform_2, window_bounds = array<i64: 592, 128>}]} {
    %c0 = arith.constant 0 : index
    %c0_0 = arith.constant 0 : index
    %0 = vector.load %arg1[%c0, %c0_0] : memref<592x64xbf16, #tpu.memory_space<vmem>>, vector<592x64xbf16>
    %c0_1 = arith.constant 0 : index
    %c0_2 = arith.constant 0 : index
    %1 = vector.load %arg2[%c0_1, %c0_2] : memref<64x128xbf16, #tpu.memory_space<vmem>>, vector<64x128xbf16>
    %cst = arith.constant dense<0.000000e+00> : vector<592x128xf32>
    %2 = tpu.matmul %0, %1, %cst {dimension_numbers = #tpu.dot_dimension_numbers<[1], [0], [0], [1], [0, 0, 1, 1], [], []>} : vector<592x64xbf16>, vector<64x128xbf16>, vector<592x128xf32> -> vector<592x128xf32>
    %3 = math.tanh %2 : vector<592x128xf32>
    %c0_3 = arith.constant 0 : index
    %c0_4 = arith.constant 0 : index
    %4 = vector.load %arg3[%c0_3, %c0_4] : memref<592x128xf32, #tpu.memory_space<vmem>>, vector<592x128xf32>
    tpu.vector_store %arg3[%c0_3, %c0_4], %3 {strides = array<i32>} : memref<592x128xf32, #tpu.memory_space<vmem>>, vector<592x128xf32>,
    return
  }
  func.func @transform_0(%arg0: i32) -> (i32, i32) {
    %c0_i32 = arith.constant 0 : i32
    %c0_i32_0 = arith.constant 0 : i32
    %c0_i32_1 = arith.constant 0 : i32
    return %c0_i32, %c0_i32_0 : i32, i32
  }
  func.func @transform_1(%arg0: i32) -> (i32, i32) {
    %c0_i32 = arith.constant 0 : i32
    %c0_i32_0 = arith.constant 0 : i32
    %c0_i32_1 = arith.constant 0 : i32
    return %c0_i32, %c0_i32_0 : i32, i32
  }
  func.func @transform_2(%arg0: i32) -> (i32, i32) {
    %c0_i32 = arith.constant 0 : i32
    %c0_i32_0 = arith.constant 0 : i32
    %c0_i32_1 = arith.constant 0 : i32
    return %c0_i32, %c0_i32_0 : i32, i32
  }
}

</mosaic_0001>

<bundles_post_ra>
// kernel: gang_forward.4
= control target key start
LH: loop header
LB: loop body
LE: loop exit
PB: predicated region body
PF: predicated region fallthrough
CT: control target
= control target key end

     0   :  { %9 = vsyncpa [#allocation3], 0  ;;  %s503_s0 = inlined_call_operand.vmem [shape: f32[8,32], index: 0, kind: input, shape index: {}]   ;;  %s504_s1 = inlined_call_operand.hbm [shape: f32[32,512], index: 1, kind: input, shape index: {}]   ;;  %s505_s2 = inlined_call_operand.hbm [shape: f32[1,512], index: 2, kind: input, shape index: {}]   ;;  %s506_s3 = inlined_call_operand.hbm [shape: f32[1,512], index: 3, kind: input, shape index: {}]   ;;  %s507_s4 = inlined_call_operand.vmem [shape: bf16[8,512], index: 4, kind: output, shape index: {}]  }
   0x1   :  { %10 = vsyncpa [#allocation5], 0  ;;  %s31_s17 = sshll.u32 %s505_s2, 4  ;;  %s434_s18 = smov [#allocation4]   ;;  %s32_s17 = int_to_ptr.hbm [resolvable:$true] %s31_s17 }
   0x2   :  { %s33_s19 = sshll.u32 %s434_s18, 4  ;;  %s17_s22 = sshll.u32 %s504_s1, 4  ;;  %s34_s19 = int_to_ptr.vmem [resolvable:$true] %s33_s19  ;;  %s18_s22 = int_to_ptr.hbm [resolvable:$true] %s17_s22 }
   0x3   :  { %36 = dma.hbm_to_vmem [thread:$0]  %s32_s17, 64, %s34_s19, [#allocation5]  }
   0x4   :  { %s435_s23 = smov [#allocation2]   ;;  %s436_s25 = smov 512  }
   0x5   :  { %s19_s24 = sshll.u32 %s435_s23, 4  ;;  %s437_s26 = smov 32   ;;  %s20_s24 = int_to_ptr.vmem [resolvable:$true] %s19_s24 }
   0x6   :  { %25 = dma.hbm_to_vmem [thread:$0]  %s18_s22, 2048, %s20_s24, [#allocation3], %s436_s25, %s436_s25, %s437_s26  }
   0x7   :  { %s42_s2 = sshll.u32 %s506_s3, 4  ;;  %s438_s29 = smov [#allocation6]   ;;  %s43_s2 = int_to_ptr.hbm [resolvable:$true] %s42_s2 }
   0x8   :  { %s44_s30 = sshll.u32 %s438_s29, 4  ;;  %s45_s30 = int_to_ptr.vmem [resolvable:$true] %s44_s30 }
   0x9   :  { %47 = dma.hbm_to_vmem [thread:$0]  %s43_s2, 64, %s45_s30, [#allocation5]  }
   0xa   :  { %430 = dma.done.wait [#allocation3], 2048  }
   0xb   :  { %431 = vsyncadd [#allocation3], 4294965248 }
   0xc   :  { %432 = dma.done.wait [#allocation5], 128  }
   0xd   :  { %433 = vsyncadd [#allocation5], 4294967168  ;;  %v73_v0 = vld [vmem:[#allocation2 + $0x60] sm:$0xff]  ;;  %v74_v1 = vld [vmem:[#allocation2 + $0x68] sm:$0xff]  ;;  %vm77_vm0 = vcmask 261120   ;;  %v161_v17 = vlaneseq  ;;  %v439_v19 = vmov 0.0  }
   0xe   :  { %v75_v2 = vld [vmem:[#allocation2 + $0x70] sm:$0xff]  ;;  %93 = vmatpush.msra.mxu0 %v73_v0  ;;  %113 = vmatpush.msra.mxu1 %v74_v1  ;;  %v76_v3 = vld [vmem:[#allocation2 + $0x78] sm:$0xff]  ;;  %v69_v4 = vld [vmem:[#allocation2 + $0x40] sm:$0xff]  ;;  %vm290_vm12 = vcmask 1040384   ;;  %vm292_vm14 = vcmask 1042434  }
   0xf   :  { %v70_v5 = vld [vmem:[#allocation2 + $0x48] sm:$0xff]  ;;  %133 = vmatpush.msra.mxu2 %v75_v2  ;;  %153 = vmatpush.msra.mxu3 %v76_v3  ;;  %v71_v6 = vld [vmem:[#allocation2 + $0x50] sm:$0xff]  ;;  %v72_v7 = vld [vmem:[#allocation2 + $0x58] sm:$0xff]  ;;  %v162_v18 = vshrl.u32 %v161_v17, 7 }
  0x10   :  { %v65_v8 = vld [vmem:[#allocation2 + $0x20] sm:$0xff]  ;;  %94 = vmatpush.msra.mxu0 %v69_v4  ;;  %114 = vmatpush.msra.mxu1 %v70_v5  ;;  %v66_v9 = vld [vmem:[#allocation2 + $0x28] sm:$0xff]  ;;  %v67_v10 = vld [vmem:[#allocation2 + $0x30] sm:$0xff] }
  0x11   :  { %v68_v11 = vld [vmem:[#allocation2 + $0x38] sm:$0xff]  ;;  %134 = vmatpush.msra.mxu2 %v71_v6  ;;  %154 = vmatpush.msra.mxu3 %v72_v7  ;;  %v61_v12 = vld [vmem:[#allocation2] sm:$0xff]  ;;  %v62_v13 = vld [vmem:[#allocation2 + $0x8] sm:$0xff]  ;;  %vm163_vm1 = vcmp.lt.s32.totalorder %v162_v18, 2 }
  0x12   :  { %95 = vmatpush.msra.mxu0 %v65_v8  ;;  %115 = vmatpush.msra.mxu1 %v66_v9  ;;  %v63_v14 = vld [vmem:[#allocation2 + $0x10] sm:$0xff]  ;;  %v64_v15 = vld [vmem:[#allocation2 + $0x18] sm:$0xff]  ;;  %v60_v16 = vld [vmem:[%s503_s0] sm:$0xff]  ;;  %v343_v20 = vsel %vm163_vm1, 1.0, %v439_v19 }
  0x13   :  { %135 = vmatpush.msra.mxu2 %v67_v10  ;;  %155 = vmatpush.msra.mxu3 %v68_v11 }
  0x14   :  { %96 = vmatpush.msra.mxu0 %v61_v12  ;;  %116 = vmatpush.msra.mxu1 %v62_v13 }
  0x15   :  { %136 = vmatpush.msra.mxu2 %v63_v14  ;;  %156 = vmatpush.msra.mxu3 %v64_v15 }
  0x16   :  { %339 = vmatmul.msk.f32.vlgmr.msra.gmra.mxu0 %vm77_vm0, %v60_v16  ;;  %340 = vmatmul.msk.f32.vlgmr.msra.gmra.mxu1 %vm77_vm0, %v60_v16 }
  0x17   :  { %341 = vmatmul.msk.f32.vlgmr.msra.gmra.mxu2 %vm77_vm0, %v60_v16  ;;  %342 = vmatmul.msk.f32.vlgmr.msra.gmra.mxu3 %vm77_vm0, %v60_v16  ;;  %vm294_vm0 = vcmask 1041408  }
  0x93   :  { %v98_v21 = vpop.f32.mrf.mxu0  ;;  %v118_v22 = vpop.f32.mrf.mxu1 }
  0x94   :  { %v166_v23 = vmul.f32 %v343_v20, %v98_v21  ;;  %v167_v24 = vmul.f32 %v343_v20, %v118_v22 }
  0x96   :  { %v170_v25 = vrot.slane %v166_v23, 4  ;;  %v176_v26 = vrot.slane %v167_v24, 4 }
  0x98   :  { %v171_v27 = vadd.f32 %v170_v25, %v166_v23  ;;  %v177_v28 = vadd.f32 %v176_v26, %v167_v24 }
  0x9a   :  { %v172_v29 = vrot.slane %v171_v27, 2  ;;  %v178_v30 = vrot.slane %v177_v28, 2  ;;  %v138_v31 = vpop.f32.mrf.mxu2  ;;  %v158_v32 = vpop.f32.mrf.mxu3 }
  0x9b   :  { %v168_v33 = vmul.f32 %v343_v20, %v138_v31  ;;  %v169_v34 = vmul.f32 %v343_v20, %v158_v32 }
  0x9c   :  { %v173_v35 = vadd.f32 %v172_v29, %v171_v27  ;;  %v179_v36 = vadd.f32 %v178_v30, %v177_v28 }
  0x9d   :  { %v182_v37 = vrot.slane %v168_v33, 4  ;;  %v188_v38 = vrot.slane %v169_v34, 4 }
  0x9e   :  { %v174_v39 = vrot.slane %v173_v35, 1  ;;  %v180_v40 = vrot.slane %v179_v36, 1 }
  0x9f   :  { %v183_v41 = vadd.f32 %v182_v37, %v168_v33  ;;  %v189_v42 = vadd.f32 %v188_v38, %v169_v34 }
  0xa0   :  { %v175_v43 = vadd.f32 %v174_v39, %v173_v35  ;;  %v181_v44 = vadd.f32 %v180_v40, %v179_v36 }
  0xa1   :  { %v184_v45 = vrot.slane %v183_v41, 2  ;;  %v190_v46 = vrot.slane %v189_v42, 2 }
  0xa2   :  { %v194_v47 = vmul.f32 0.5, %v175_v43  ;;  %v195_v48 = vmul.f32 0.5, %v181_v44 }
  0xa3   :  { %v185_v49 = vadd.f32 %v184_v45, %v183_v41  ;;  %v191_v50 = vadd.f32 %v190_v46, %v189_v42 }
  0xa4   :  { %v198_v51 = vsub.f32 %v98_v21, %v194_v47  ;;  %v199_v52 = vsub.f32 %v118_v22, %v195_v48 }
  0xa5   :  { %v186_v53 = vrot.slane %v185_v49, 1  ;;  %v192_v54 = vrot.slane %v191_v50, 1 }
  0xa6   :  { %v477_v55 = vmul.f32 %v343_v20, %v198_v51  ;;  %v479_v56 = vmul.f32 %v343_v20, %v199_v52 }
  0xa7   :  { %v187_v57 = vadd.f32 %v186_v53, %v185_v49  ;;  %v193_v58 = vadd.f32 %v192_v54, %v191_v50 }
  0xa8   :  { %v206_v59 = vmul.f32 %v477_v55, %v477_v55  ;;  %v207_v60 = vmul.f32 %v479_v56, %v479_v56 }
  0xa9   :  { %v196_v61 = vmul.f32 0.5, %v187_v57  ;;  %v197_v62 = vmul.f32 0.5, %v193_v58 }
  0xaa   :  { %v210_v63 = vrot.slane %v206_v59, 4  ;;  %v216_v0 = vrot.slane %v207_v60, 4 }
  0xab   :  { %v200_v1 = vsub.f32 %v138_v31, %v196_v61  ;;  %v201_v2 = vsub.f32 %v158_v32, %v197_v62 }
  0xac   :  { %v211_v3 = vadd.f32 %v210_v63, %v206_v59  ;;  %v217_v4 = vadd.f32 %v216_v0, %v207_v60 }
  0xad   :  { %v485_v5 = vmul.f32 %v343_v20, %v200_v1  ;;  %v487_v6 = vmul.f32 %v343_v20, %v201_v2 }
  0xae   :  { %v212_v7 = vrot.slane %v211_v3, 2  ;;  %v218_v8 = vrot.slane %v217_v4, 2 }
  0xaf   :  { %v208_v9 = vmul.f32 %v485_v5, %v485_v5  ;;  %v209_v10 = vmul.f32 %v487_v6, %v487_v6 }
  0xb0   :  { %v213_v11 = vadd.f32 %v212_v7, %v211_v3  ;;  %v219_v12 = vadd.f32 %v218_v8, %v217_v4  ;;  %v238_v8 = vld [vmem:[#allocation4] sm:$0xf] }
  0xb1   :  { %v222_v13 = vrot.slane %v208_v9, 4  ;;  %v228_v14 = vrot.slane %v209_v10, 4 }
  0xb2   :  { %v214_v15 = vrot.slane %v213_v11, 1  ;;  %v220_v16 = vrot.slane %v219_v12, 1 }
  0xb3   :  { %v223_v17 = vadd.f32 %v222_v13, %v208_v9  ;;  %v229_v18 = vadd.f32 %v228_v14, %v209_v10 }
  0xb4   :  { %v215_v19 = vadd.f32 %v214_v15, %v213_v11  ;;  %v221_v21 = vadd.f32 %v220_v16, %v219_v12  ;;  %v311_v11 = vld [vmem:[#allocation6] sm:$0xf] }
  0xb5   :  { %v224_v20 = vrot.slane %v223_v17, 2  ;;  %v230_v22 = vrot.slane %v229_v18, 2  ;;  %v313_v14 = vperm.slane %v311_v11, 0  ;;  %v314_v15 = vperm.slane %v311_v11, 1 }
  0xb6   :  { %v234_v23 = vmul.f32 0.5, %v215_v19  ;;  %v235_v24 = vmul.f32 0.5, %v221_v21  ;;  %v315_v16 = vperm.slane %v311_v11, 2 }
  0xb7   :  { %v225_v25 = vadd.f32 %v224_v20, %v223_v17  ;;  %v231_v26 = vadd.f32 %v230_v22, %v229_v18  ;;  %v316_v17 = vperm.slane %v311_v11, 3 }
  0xb8   :  { %v239_v27 = vadd.f32 1e-05, %v234_v23  ;;  %v240_v28 = vadd.f32 1e-05, %v235_v24 }
  0xb9   :  { %v226_v29 = vrot.slane %v225_v25, 1  ;;  %v232_v30 = vrot.slane %v231_v26, 1 }
  0xba   :  { %350 = vrsqrt.f32 %v239_v27  ;;  %vm259_vm3 = vweird.f32 %v240_v28  ;;  %vm249_vm13 = vweird.f32 %v239_v27 }
  0xbb   :  { %352 = vrsqrt.f32 %v240_v28  ;;  %v227_v31 = vadd.f32 %v226_v29, %v225_v25  ;;  %v233_v32 = vadd.f32 %v232_v30, %v231_v26 }
  0xbd   :  { %v236_v33 = vmul.f32 0.5, %v227_v31  ;;  %v237_v34 = vmul.f32 0.5, %v233_v32 }
  0xbf   :  { %v241_v35 = vadd.f32 1e-05, %v236_v33  ;;  %v242_v36 = vadd.f32 1e-05, %v237_v34 }
  0xc0   :  { %v351_v37 = vpop.eup %350 }
  0xc1   :  { %v353_v38 = vpop.eup %352  ;;  %v244_v39 = vmul.f32 %v351_v37, %v239_v27  ;;  %354 = vrsqrt.f32 %v241_v35  ;;  %vm269_vm7 = vweird.f32 %v241_v35  ;;  %vm250_vm8 = vweird.f32 %v351_v37 }
  0xc2   :  { %v254_v40 = vmul.f32 %v353_v38, %v240_v28  ;;  %356 = vrsqrt.f32 %v242_v36  ;;  %vm260_vm2 = vweird.f32 %v353_v38  ;;  %vm279_vm10 = vweird.f32 %v242_v36  ;;  %vm251_vm15 = vmor %vm249_vm13, %vm250_vm8 }
  0xc3   :  { %v245_v42 = vmul.f32 %v351_v37, %v244_v39  ;;  %vm261_vm4 = vmor %vm259_vm3, %vm260_vm2 }
  0xc4   :  { %v255_v41 = vmul.f32 %v353_v38, %v254_v40 }
  0xc5   :  { %v246_v48 = vmul.f32 0.5, %v245_v42 }
  0xc6   :  { %v256_v43 = vmul.f32 0.5, %v255_v41 }
  0xc7   :  { %v355_v44 = vpop.eup %354  ;;  %v247_v54 = vsub.f32 1.5, %v246_v48 }
  0xc8   :  { %v357_v45 = vpop.eup %356  ;;  %v257_v46 = vsub.f32 1.5, %v256_v43  ;;  %v264_v47 = vmul.f32 %v355_v44, %v241_v35  ;;  %vm270_vm5 = vweird.f32 %v355_v44 }
  0xc9   :  { %v274_v49 = vmul.f32 %v357_v45, %v242_v36  ;;  %vm280_vm6 = vweird.f32 %v357_v45  ;;  %v248_v62 = vmul.f32 %v351_v37, %v247_v54  ;;  %vm271_vm9 = vmor %vm269_vm7, %vm270_vm5 }
  0xca   :  { %v265_v50 = vmul.f32 %v355_v44, %v264_v47  ;;  %v258_v51 = vmul.f32 %v353_v38, %v257_v46  ;;  %vm281_vm11 = vmor %vm279_vm10, %vm280_vm6 }
  0xcb   :  { %v275_v52 = vmul.f32 %v357_v45, %v274_v49  ;;  %v252_v7 = vsel %vm251_vm15, %v351_v37, %v248_v62 }
  0xcc   :  { %v266_v53 = vmul.f32 0.5, %v265_v50  ;;  %v262_v59 = vsel %vm261_vm4, %v353_v38, %v258_v51 }
  0xcd   :  { %v276_v57 = vmul.f32 0.5, %v275_v52  ;;  %v287_v0 = vrot.slane %v262_v59, 7 }
  0xce   :  { %v267_v58 = vsub.f32 1.5, %v266_v53 }
  0xcf   :  { %v277_v60 = vsub.f32 1.5, %v276_v57  ;;  %v291_v9 = vsel %vm290_vm12, %v252_v7, %v287_v0 }
  0xd0   :  { %v268_v61 = vmul.f32 %v355_v44, %v267_v58 }
  0xd1   :  { %v278_v63 = vmul.f32 %v357_v45, %v277_v60 }
  0xd2   :  { %v272_v1 = vsel %vm271_vm9, %v355_v44, %v268_v61 }
  0xd3   :  { %v288_v2 = vrot.slane %v272_v1, 6  ;;  %v282_v3 = vsel %vm281_vm11, %v357_v45, %v278_v63 }
  0xd4   :  { %v289_v4 = vrot.slane %v282_v3, 5 }
  0xd6   :  { %v293_v10 = vsel %vm292_vm14, %v288_v2, %v289_v4 }
  0xd7   :  { %v295_v12 = vsel %vm294_vm0, %v291_v9, %v293_v10 }
  0xd8   :  { %v297_v13 = vmul.f32 %v295_v12, %v238_v8 }
  0xda   :  { %v299_v18 = vperm.slane %v297_v13, 0  ;;  %v300_v19 = vperm.slane %v297_v13, 1  ;;  %v301_v21 = vperm.slane %v297_v13, 2  ;;  %v302_v20 = vperm.slane %v297_v13, 3 }
  0xdc   :  { %v307_v22 = vmul.f32 %v299_v18, %v477_v55  ;;  %v308_v23 = vmul.f32 %v300_v19, %v479_v56  ;;  %v309_v24 = vmul.f32 %v301_v21, %v485_v5  ;;  %v310_v25 = vmul.f32 %v302_v20, %v487_v6 }
  0xde   :  { %v321_v26 = vadd.f32 %v313_v14, %v307_v22  ;;  %v322_v27 = vadd.f32 %v314_v15, %v308_v23  ;;  %v323_v28 = vadd.f32 %v315_v16, %v309_v24  ;;  %v324_v29 = vadd.f32 %v316_v17, %v310_v25 }
  0xe0   :  { %v325_v30 = vmax.f32 %v321_v26, 0.0  ;;  %v326_v31 = vmax.f32 %v322_v27, 0.0  ;;  %v327_v32 = vmax.f32 %v323_v28, 0.0  ;;  %v328_v33 = vmax.f32 %v324_v29, 0.0 }
  0xe2   :  { %v329_v34 = vpack.c.bf16 %v326_v31, %v325_v30  ;;  %v330_v35 = vpack.c.bf16 %v328_v33, %v327_v32 }
  0xe4   :  { %331 = vst [vmem:[%s507_s4] sm:$0xff] %v329_v34 }
  0xe5   :  { %332 = vst [vmem:[%s507_s4 + $0x8] sm:$0xff] %v330_v35 }
  0xe6   :  { %337 = vsyncpa [#allocation3], 1 }
  0xe7   :  { %338 = vsyncpa [#allocation5], 1 }

// kernel: gang_forward.5
= control target key start
LH: loop header
LB: loop body
LE: loop exit
PB: predicated region body
PF: predicated region fallthrough
CT: control target
= control target key end

     0   :  { %11 = vsyncpa [#allocation3], 0  ;;  %s1237_s0 = inlined_call_operand.vmem [shape: bf16[64,128], index: 0, kind: input, shape index: {}]   ;;  %s1238_s1 = inlined_call_operand.hbm [shape: bf16[128,128], index: 1, kind: input, shape index: {}]   ;;  %s1239_s2 = inlined_call_operand.hbm [shape: f32[128,128], index: 2, kind: input, shape index: {}]   ;;  %s1240_s3 = inlined_call_operand.hbm [shape: f32[64,4], index: 3, kind: input, shape index: {}]   ;;  %s1241_s4 = inlined_call_operand.hbm [shape: f32[1,128], index: 4, kind: input, shape index: {}]   ;;  %s1242_s5 = inlined_call_operand.hbm [shape: f32[1,128], index: 5, kind: input, shape index: {}]   ;;  %s1243_s6 = inlined_call_operand.vmem [shape: bf16[64,128], index: 6, kind: output, shape index: {}]  }
   0x1   :  { %12 = vsyncpa [#allocation5], 0  ;;  %s33_s23 = sshll.u32 %s1239_s2, 4  ;;  %s34_s23 = int_to_ptr.hbm [resolvable:$true] %s33_s23 }
   0x2   :  { %13 = vsyncpa [#allocation8], 0  ;;  %s954_s24 = smov [#allocation4]   ;;  %s60_s28 = sshll.u32 %s1241_s4, 4  ;;  %s61_s28 = int_to_ptr.hbm [resolvable:$true] %s60_s28 }
   0x3   :  { %s35_s25 = sshll.u32 %s954_s24, 4  ;;  %s955_s29 = smov 128   ;;  %s36_s25 = int_to_ptr.vmem [resolvable:$true] %s35_s25 }
   0x4   :  { %s956_s30 = smov 8   ;;  %s957_s7 = smov [#allocation7]  }
   0x5   :  { %41 = dma.hbm_to_vmem [thread:$0]  %s34_s23, 2048, %s36_s25, [#allocation5], %s955_s29, %s955_s29, %s956_s30  }
   0x6   :  { %s62_s8 = sshll.u32 %s957_s7, 4  ;;  %s20_s11 = sshll.u32 %s1238_s1, 4  ;;  %s63_s8 = int_to_ptr.vmem [resolvable:$true] %s62_s8  ;;  %s21_s11 = int_to_ptr.hbm [resolvable:$true] %s20_s11 }
   0x7   :  { %65 = dma.hbm_to_vmem [thread:$0]  %s61_s28, 16, %s63_s8, [#allocation8]  }
   0x8   :  { %s958_s2 = smov [#allocation2]   ;;  %s46_s4 = sshll.u32 %s1240_s3, 4  ;;  %s47_s4 = int_to_ptr.hbm [resolvable:$true] %s46_s4 }
   0x9   :  { %s22_s12 = sshll.u32 %s958_s2, 4  ;;  %s959_s15 = smov 64   ;;  %s23_s12 = int_to_ptr.vmem [resolvable:$true] %s22_s12 }
   0xa   :  { %s960_s16 = smov 4   ;;  %s961_s17 = smov [#allocation6]  }
   0xb   :  { %28 = dma.hbm_to_vmem [thread:$0]  %s21_s11, 1024, %s23_s12, [#allocation3], %s959_s15, %s959_s15, %s960_s16  }
   0xc   :  { %s48_s18 = sshll.u32 %s961_s17, 4  ;;  %s71_s1 = sshll.u32 %s1242_s5, 4  ;;  %s49_s18 = int_to_ptr.vmem [resolvable:$true] %s48_s18  ;;  %s72_s1 = int_to_ptr.hbm [resolvable:$true] %s71_s1 }
   0xd   :  { %54 = dma.hbm_to_vmem [thread:$0]  %s47_s4, 1024, %s49_s18, [#allocation5], %s955_s29, %s955_s29, %s956_s30  }
   0xe   :  { %s962_s21 = smov [#allocation9]  }
   0xf   :  { %s73_s22 = sshll.u32 %s962_s21, 4  ;;  %s74_s22 = int_to_ptr.vmem [resolvable:$true] %s73_s22 }
  0x10   :  { %76 = dma.hbm_to_vmem [thread:$0]  %s72_s1, 16, %s74_s22, [#allocation8]  }
  0x11   :  { %948 = dma.done.wait [#allocation3], 1024  }
  0x12   :  { %949 = vsyncadd [#allocation3], 4294966272 }
  0x13   :  { %950 = dma.done.wait [#allocation5], 3072  }
  0x14   :  { %951 = vsyncadd [#allocation5], 4294964224 }
  0x15   :  { %952 = dma.done.wait [#allocation8], 32  }
  0x16   :  { %953 = vsyncadd [#allocation8], 4294967264  ;;  %v963_v0 = vmov 1   ;;  %v964_v1 = vmov 0   ;;  %v244_v2 = vld [vmem:[#allocation6 + $0x10] sm:$0xff]  ;;  %v242_v3 = vld [vmem:[#allocation6] sm:$0xff]  ;;  %v222_v24 = vlaneseq }
  0x17   :  { %784 = vset.pattern.permute.xlu1 %v963_v0  ;;  %785 = vset.pattern.permute.xlu2 %v964_v1  ;;  %v737_v4 = vld [vmem:[#allocation2 + $0x38] sm:$0xff]  ;;  %v736_v5 = vld [vmem:[#allocation2 + $0x30] sm:$0xff]  ;;  %v243_v6 = vld [vmem:[#allocation6 + $0x8] sm:$0xff]  ;;  %v965_v10 = vmov 2   ;;  %v966_v12 = vmov 3   ;;  %v967_v27 = vmov 0.0  }
  0x18   :  { %783 = vset.pattern.permute.xlu0 %v964_v1  ;;  %262 = vperm.xlu2 %785, %v244_v2   ;;  %v735_v7 = vld [vmem:[#allocation2 + $0x28] sm:$0xff]  ;;  %v734_v8 = vld [vmem:[#allocation2 + $0x20] sm:$0xff]  ;;  %v733_v9 = vld [vmem:[#allocation2 + $0x18] sm:$0xff]  ;;  %v1055_v25 = vand.u32 127, %v222_v24 }
  0x19   :  { %299 = vperm.xlu1 %784, %v242_v3   ;;  %252 = vperm.xlu0 %783, %v242_v3   ;;  %v245_v11 = vld [vmem:[#allocation6 + $0x18] sm:$0xff]  ;;  %v732_v13 = vld [vmem:[#allocation2 + $0x10] sm:$0xff]  ;;  %v731_v14 = vld [vmem:[#allocation2 + $0x8] sm:$0xff] }
  0x1a   :  { %193 = vmatpush.bf16.msra.mxu0 %v737_v4  ;;  %761 = vmatpush.bf16.msra.mxu3 %v737_v4  ;;  %v730_v15 = vld [vmem:[#allocation2] sm:$0xff]  ;;  %v728_v18 = vld [vmem:[%s1237_s0 + $0x10] sm:$0xff]  ;;  %v727_v19 = vld [vmem:[%s1237_s0 + $0x8] sm:$0xff]  ;;  %vm224_vm0 = vcmp.ge.s32.totalorder %v1055_v25, 64  ;;  %vm227_vm1 = vcmp.lt.s32.totalorder %v1055_v25, 64  ;;  %vm230_vm2 = vcmp.ge.s32.totalorder %v1055_v25, 32 }
  0x1b   :  { %v246_v16 = vld [vmem:[#allocation6 + $0x20] sm:$0xff]  ;;  %v729_v20 = vld [vmem:[%s1237_s0 + $0x18] sm:$0xff]  ;;  %v247_v21 = vld [vmem:[#allocation6 + $0x28] sm:$0xff]  ;;  %v1062_v28 = vsel %vm224_vm0, 1.0, %v967_v27  ;;  %v1069_v30 = vsel %vm227_vm1, 1.0, %v967_v27  ;;  %vm232_vm4 = vcmp.ge.s32.totalorder %v1055_v25, 96 }
  0x1c   :  { %v726_v17 = vld [vmem:[%s1237_s0] sm:$0xff]  ;;  %v249_v22 = vld [vmem:[#allocation6 + $0x38] sm:$0xff]  ;;  %v248_v23 = vld [vmem:[#allocation6 + $0x30] sm:$0xff]  ;;  %vm237_vm5 = vcmp.lt.s32.totalorder %v1055_v25, 96  ;;  %vm236_vm7 = vcmp.lt.s32.totalorder %v1055_v25, 32 }
  0x1d   :  { %v478_v52 = vld [vmem:[#allocation4 + $0x78] sm:$0xff]  ;;  %v477_v53 = vld [vmem:[#allocation4 + $0x70] sm:$0xff]  ;;  %v476_v55 = vld [vmem:[#allocation4 + $0x68] sm:$0xff] }
  0x1e   :  { %194 = vmatpush.bf16.msra.mxu0 %v736_v5  ;;  %762 = vmatpush.bf16.msra.mxu3 %v736_v5  ;;  %v475_v57 = vld [vmem:[#allocation4 + $0x60] sm:$0xff]  ;;  %v474_v58 = vld [vmem:[#allocation4 + $0x58] sm:$0xff]  ;;  %vm231_vm3 = vmand %vm230_vm2, %vm227_vm1 }
  0x1f   :  { %479 = vmatpush.msra.mxu1 %v478_v52  ;;  %538 = vmatpush.msra.mxu2 %v478_v52  ;;  %v473_v61 = vld [vmem:[#allocation4 + $0x50] sm:$0xff]  ;;  %vm233_vm6 = vmor %vm231_vm3, %vm232_vm4 }
  0x20   :  { %786 = vset.pattern.permute.xlu2 %v963_v0  ;;  %vm238_vm8 = vmand %vm224_vm0, %vm237_vm5  ;;  %v469_v5 = vld [vmem:[#allocation4 + $0x30] sm:$0xff] }
  0x21   :  { %303 = vperm.xlu1 %784, %v243_v6   ;;  %257 = vperm.xlu0 %783, %v243_v6   ;;  %vm239_vm9 = vmor %vm236_vm7, %vm238_vm8 }
  0x22   :  { %307 = vperm.xlu2 %786, %v244_v2   ;;  %195 = vmatpush.bf16.msra.mxu0 %v735_v7 }
  0x23   :  { %763 = vmatpush.bf16.msra.mxu3 %v735_v7  ;;  %480 = vmatpush.msra.mxu1 %v477_v53 }
  0x24   :  { %539 = vmatpush.msra.mxu2 %v477_v53 }
  0x25   :  { %481 = vmatpush.msra.mxu1 %v476_v55 }
  0x26   :  { %196 = vmatpush.bf16.msra.mxu0 %v734_v8  ;;  %540 = vmatpush.msra.mxu2 %v476_v55 }
  0x27   :  { %764 = vmatpush.bf16.msra.mxu3 %v734_v8  ;;  %482 = vmatpush.msra.mxu1 %v475_v57 }
  0x28   :  { %541 = vmatpush.msra.mxu2 %v475_v57 }
  0x29   :  { %787 = vset.pattern.permute.xlu1 %v965_v10  ;;  %791 = vset.pattern.permute.xlu0 %v966_v12 }
  0x2a   :  { %788 = vset.pattern.permute.xlu2 %v964_v1  ;;  %351 = vperm.xlu1 %787, %v243_v6  }
  0x2b   :  { %395 = vperm.xlu0 %791, %v242_v3   ;;  %267 = vperm.xlu2 %788, %v245_v11  }
  0x2c   :  { %197 = vmatpush.bf16.msra.mxu0 %v733_v9  ;;  %765 = vmatpush.bf16.msra.mxu3 %v733_v9 }
  0x2d   :  { %483 = vmatpush.msra.mxu1 %v474_v58  ;;  %542 = vmatpush.msra.mxu2 %v474_v58 }
  0x2f   :  { %484 = vmatpush.msra.mxu1 %v473_v61  ;;  %543 = vmatpush.msra.mxu2 %v473_v61 }
  0x30   :  { %198 = vmatpush.bf16.msra.mxu0 %v732_v13  ;;  %766 = vmatpush.bf16.msra.mxu3 %v732_v13  ;;  %v468_v13 = vld [vmem:[#allocation4 + $0x28] sm:$0xff] }
  0x32   :  { %789 = vset.pattern.permute.xlu1 %v963_v0 }
  0x33   :  { %403 = vperm.xlu0 %791, %v244_v2   ;;  %790 = vset.pattern.permute.xlu2 %v965_v10 }
  0x34   :  { %311 = vperm.xlu1 %789, %v245_v11   ;;  %199 = vmatpush.bf16.msra.mxu0 %v731_v14 }
  0x35   :  { %355 = vperm.xlu2 %790, %v244_v2   ;;  %767 = vmatpush.bf16.msra.mxu3 %v731_v14  ;;  %v470_v2 = vld [vmem:[#allocation4 + $0x38] sm:$0xff] }
  0x38   :  { %200 = vmatpush.bf16.msra.mxu0 %v730_v15 }
  0x39   :  { %768 = vmatpush.bf16.msra.mxu3 %v730_v15 }
  0x3b   :  { %411 = vperm.xlu0 %791, %v246_v16   ;;  %201 = vmatmul.bf16.vlgmr.msra.gmra.mxu0 %v726_v17 }
  0x3c   :  { %792 = vset.pattern.permute.xlu1 %v966_v12  ;;  %211 = vmatmul.bf16.vlgmr.msra.gmra.mxu3 %v728_v18  ;;  %v1153_v18 = vsel %vm239_vm9, 1.0, %v967_v27 }
  0x3d   :  { %793 = vset.pattern.permute.xlu2 %v964_v1  ;;  %399 = vperm.xlu1 %792, %v243_v6   ;;  %v1133_v6 = vsel %vm233_vm6, 1.0, %v967_v27 }
  0x3e   :  { %272 = vperm.xlu2 %793, %v246_v16  }
  0x43   :  { %802 = vset.pattern.permute.xlu0 %v965_v10 }
  0x44   :  { %347 = vperm.xlu0 %802, %v242_v3  }
  0x45   :  { %794 = vset.pattern.permute.xlu1 %v963_v0 }
  0x46   :  { %795 = vset.pattern.permute.xlu2 %v965_v10  ;;  %315 = vperm.xlu1 %794, %v246_v16  }
  0x47   :  { %359 = vperm.xlu2 %795, %v245_v11  }
  0x4b   :  { %206 = vmatmul.bf16.gmra.mxu0 %v727_v19  ;;  %v467_v19 = vld [vmem:[#allocation4 + $0x20] sm:$0xff] }
  0x4c   :  { %363 = vperm.xlu0 %802, %v246_v16   ;;  %216 = vmatmul.bf16.gmra.mxu3 %v729_v20 }
  0x4e   :  { %796 = vset.pattern.permute.xlu1 %v964_v1 }
  0x4f   :  { %797 = vset.pattern.permute.xlu2 %v963_v0  ;;  %277 = vperm.xlu1 %796, %v247_v21  }
  0x50   :  { %319 = vperm.xlu2 %797, %v247_v21  }
  0x54   :  { %375 = vperm.xlu0 %802, %v249_v22  }
  0x57   :  { %798 = vset.pattern.permute.xlu1 %v966_v12 }
  0x58   :  { %799 = vset.pattern.permute.xlu2 %v964_v1  ;;  %407 = vperm.xlu1 %798, %v245_v11  }
  0x59   :  { %282 = vperm.xlu2 %799, %v248_v23  }
  0x5c   :  { %808 = vset.pattern.permute.xlu0 %v966_v12 }
  0x60   :  { %800 = vset.pattern.permute.xlu1 %v963_v0 }
  0x61   :  { %801 = vset.pattern.permute.xlu2 %v965_v10  ;;  %323 = vperm.xlu1 %800, %v248_v23  }
  0x62   :  { %367 = vperm.xlu2 %801, %v247_v21  }
  0x69   :  { %803 = vset.pattern.permute.xlu1 %v964_v1  ;;  %v471_v1 = vld [vmem:[#allocation4 + $0x40] sm:$0xff] }
  0x6a   :  { %804 = vset.pattern.permute.xlu2 %v963_v0  ;;  %287 = vperm.xlu1 %803, %v249_v22   ;;  %v472_v0 = vld [vmem:[#allocation4 + $0x48] sm:$0xff] }
  0x6b   :  { %327 = vperm.xlu2 %804, %v249_v22   ;;  %485 = vmatpush.msra.mxu1 %v472_v0 }
  0x6c   :  { %544 = vmatpush.msra.mxu2 %v472_v0 }
  0x6d   :  { %486 = vmatpush.msra.mxu1 %v471_v1 }
  0x6e   :  { %545 = vmatpush.msra.mxu2 %v471_v1 }
  0x6f   :  { %487 = vmatpush.msra.mxu1 %v470_v2 }
  0x70   :  { %546 = vmatpush.msra.mxu2 %v470_v2 }
  0x71   :  { %488 = vmatpush.msra.mxu1 %v469_v5 }
  0x72   :  { %805 = vset.pattern.permute.xlu1 %v965_v10  ;;  %v263_v26 = vpop.permute.xlu2 %262  ;;  %547 = vmatpush.msra.mxu2 %v469_v5 }
  0x73   :  { %806 = vset.pattern.permute.xlu2 %v966_v12  ;;  %371 = vperm.xlu1 %805, %v248_v23   ;;  %v292_v29 = vmax.f32 %v263_v26, %v1062_v28 }
  0x74   :  { %415 = vperm.xlu2 %806, %v247_v21   ;;  %489 = vmatpush.msra.mxu1 %v468_v13 }
  0x75   :  { %548 = vmatpush.msra.mxu2 %v468_v13 }
  0x76   :  { %490 = vmatpush.msra.mxu1 %v467_v19 }
  0x77   :  { %549 = vmatpush.msra.mxu2 %v467_v19 }
  0x7b   :  { %807 = vset.pattern.permute.xlu1 %v966_v12 }
  0x7c   :  { %419 = vperm.xlu1 %807, %v248_v23   ;;  %v308_v31 = vpop.permute.xlu2 %307  ;;  %423 = vperm.xlu2 %806, %v249_v22  }
  0x7d   :  { %v332_v32 = vmax.f32 %v308_v31, %v1069_v30  ;;  %v466_v31 = vld [vmem:[#allocation4 + $0x18] sm:$0xff] }
  0x7e   :  { %491 = vmatpush.msra.mxu1 %v466_v31  ;;  %550 = vmatpush.msra.mxu2 %v466_v31 }
  0x7f   :  { %v1072_v33 = vmul.f32 %v332_v32, %v292_v29 }
  0x85   :  { %v1078_v36 = vpop.permute.xlu2 %267 }
  0x86   :  { %v293_v15 = vmax.f32 %v1078_v36, %v1062_v28 }
  0x8b   :  { %v1074_v34 = vpop.permute.xlu1 %299  ;;  %v1084_v39 = vpop.permute.xlu0 %252 }
  0x8c   :  { %v330_v3 = vmax.f32 %v1074_v34, %v1069_v30  ;;  %v290_v4 = vmax.f32 %v1084_v39, %v1062_v28 }
  0x8e   :  { %v338_v16 = vmul.f32 %v330_v3, %v290_v4 }
  0x8f   :  { %v1082_v38 = vpop.permute.xlu2 %355 }
  0x90   :  { %v380_v20 = vmax.f32 %v1082_v38, %v1133_v6  ;;  %v465_v38 = vld [vmem:[#allocation4 + $0x10] sm:$0xff] }
  0x91   :  { %492 = vmatpush.msra.mxu1 %v465_v38  ;;  %551 = vmatpush.msra.mxu2 %v465_v38 }
  0x93   :  { %v1076_v35 = vpop.permute.xlu1 %303  ;;  %v1090_v42 = vpop.permute.xlu0 %257 }
  0x94   :  { %v331_v7 = vmax.f32 %v1076_v35, %v1069_v30  ;;  %v291_v8 = vmax.f32 %v1090_v42, %v1062_v28 }
  0x96   :  { %v339_v21 = vmul.f32 %v331_v7, %v291_v8 }
  0x98   :  { %v1086_v40 = vpop.permute.xlu2 %272 }
  0x99   :  { %v294_v35 = vmax.f32 %v1086_v40, %v1062_v28  ;;  %v388_v40 = vmul.f32 %v380_v20, %v1072_v33  ;;  %v463_v33 = vld [vmem:[#allocation4] sm:$0xff] }
  0x9c   :  { %v1080_v37 = vpop.permute.xlu1 %351 }
  0x9d   :  { %v1096_v45 = vpop.permute.xlu0 %395  ;;  %v379_v17 = vmax.f32 %v1080_v37, %v1133_v6 }
  0x9e   :  { %v426_v22 = vmax.f32 %v1096_v45, %v1153_v18 }
  0x9f   :  { %v387_v34 = vmul.f32 %v379_v17, %v339_v21 }
  0xa1   :  { %v1094_v44 = vpop.permute.xlu2 %359 }
  0xa2   :  { %v381_v24 = vmax.f32 %v1094_v44, %v1133_v6 }
  0xa5   :  { %v1102_v48 = vpop.permute.xlu0 %403 }
  0xa6   :  { %v1088_v41 = vpop.permute.xlu1 %311  ;;  %v428_v36 = vmax.f32 %v1102_v48, %v1153_v18  ;;  %v464_v48 = vld [vmem:[#allocation4 + $0x8] sm:$0xff] }
  0xa7   :  { %v333_v11 = vmax.f32 %v1088_v41, %v1069_v30  ;;  %493 = vmatpush.msra.mxu1 %v464_v48  ;;  %552 = vmatpush.msra.mxu2 %v464_v48 }
  0xa9   :  { %v341_v25 = vmul.f32 %v333_v11, %v293_v15  ;;  %494 = vmatpush.msra.mxu1 %v463_v33  ;;  %553 = vmatpush.msra.mxu2 %v463_v33 }
  0xaa   :  { %v1100_v47 = vpop.permute.xlu2 %319 }
  0xab   :  { %v335_v39 = vmax.f32 %v1100_v47, %v1069_v30  ;;  %v1183_v47 = vmul.f32 %v428_v36, %v388_v40 }
  0xad   :  { %v1110_v54 = vpop.permute.xlu0 %411 }
  0xaf   :  { %v1092_v43 = vpop.permute.xlu1 %399 }
  0xb0   :  { %v427_v26 = vmax.f32 %v1092_v43, %v1153_v18 }
  0xb2   :  { %v1179_v44 = vmul.f32 %v427_v26, %v387_v34 }
  0xb3   :  { %v1106_v50 = vpop.permute.xlu2 %282 }
  0xb4   :  { %v296_v19 = vmax.f32 %v1106_v50, %v1062_v28 }
  0xb6   :  { %v348_v62 = vpop.permute.xlu0 %347 }
  0xb7   :  { %v378_v12 = vmax.f32 %v348_v62, %v1133_v6 }
  0xb8   :  { %v1098_v46 = vpop.permute.xlu1 %315  ;;  %v1108_v51 = vpop.f32.mrf.mxu0 }
  0xb9   :  { %v386_v27 = vmul.f32 %v378_v12, %v338_v16  ;;  %v334_v32 = vmax.f32 %v1098_v46, %v1069_v30  ;;  %v389_v46 = vmul.f32 %v381_v24, %v341_v25 }
  0xbb   :  { %v1181_v45 = vmul.f32 %v426_v22, %v386_v27  ;;  %v342_v52 = vmul.f32 %v334_v32, %v294_v35 }
  0xbc   :  { %v1115_v59 = vpop.permute.xlu2 %367 }
  0xbd   :  { %v383_v57 = vmax.f32 %v1115_v59, %v1133_v6  ;;  %v442_v0 = vmul.f32 %v1181_v45, %v1108_v51 }
  0xbe   :  { %v364_v29 = vpop.permute.xlu0 %363 }
  0xbf   :  { %v1139_v9 = vpop.f32.mrf.mxu3  ;;  %v382_v41 = vmax.f32 %v364_v29, %v1133_v6 }
  0xc0   :  { %v1117_v60 = vpop.f32.mrf.mxu0 }
  0xc1   :  { %v1104_v49 = vpop.permute.xlu1 %277  ;;  %v443_v55 = vmul.f32 %v1179_v44, %v1117_v60  ;;  %v390_v58 = vmul.f32 %v382_v41, %v342_v52 }
  0xc2   :  { %v295_v42 = vmax.f32 %v1104_v49, %v1062_v28  ;;  %v430_v49 = vmax.f32 %v1110_v54, %v1153_v18 }
  0xc3   :  { %v450_v59 = vadd.f32 %v443_v55, %v442_v0 }
  0xc4   :  { %v343_v61 = vmul.f32 %v335_v39, %v295_v42  ;;  %v438_v8 = vmul.f32 %v430_v49, %v390_v58 }
  0xc5   :  { %v1141_v10 = vpop.permute.xlu2 %327 }
  0xc6   :  { %v337_v54 = vmax.f32 %v1141_v10, %v1069_v30  ;;  %v376_v4 = vpop.permute.xlu0 %375  ;;  %v391_v11 = vmul.f32 %v383_v57, %v343_v61 }
  0xc7   :  { %v1176_v43 = vpop.f32.mrf.mxu3  ;;  %v385_v16 = vmax.f32 %v376_v4, %v1133_v6 }
  0xc8   :  { %v1146_v14 = vpop.f32.mrf.mxu0 }
  0xc9   :  { %v444_v1 = vmul.f32 %v1183_v47, %v1146_v14 }
  0xca   :  { %v1112_v56 = vpop.permute.xlu1 %407 }
  0xcb   :  { %v429_v37 = vmax.f32 %v1112_v56, %v1153_v18  ;;  %v451_v13 = vadd.f32 %v450_v59, %v444_v1 }
  0xcd   :  { %v1189_v56 = vmul.f32 %v429_v37, %v389_v46 }
  0xce   :  { %v416_v53 = vpop.permute.xlu2 %415 }
  0xcf   :  { %v431_v5 = vmax.f32 %v416_v53, %v1153_v18  ;;  %v217_v12 = vpop.f32.mrf.mxu3 }
  0xd0   :  { %v1193_v62 = vpop.f32.mrf.mxu0 }
  0xd1   :  { %v445_v7 = vmul.f32 %v1189_v56, %v1193_v62  ;;  %v439_v20 = vmul.f32 %v431_v5, %v391_v11 }
  0xd3   :  { %v1123_v63 = vpop.permute.xlu1 %323  ;;  %v452_v21 = vadd.f32 %v451_v13, %v445_v7 }
  0xd4   :  { %v336_v10 = vmax.f32 %v1123_v63, %v1069_v30  ;;  %v447_v30 = vmul.f32 %v439_v20, %v1176_v43 }
  0xd6   :  { %v424_v17 = vpop.permute.xlu2 %423  ;;  %v344_v24 = vmul.f32 %v336_v10, %v296_v19 }
  0xd7   :  { %v433_v26 = vmax.f32 %v424_v17, %v1153_v18 }
  0xdc   :  { %v288_v23 = vpop.permute.xlu1 %287 }
  0xdd   :  { %v297_v2 = vmax.f32 %v288_v23, %v1062_v28  ;;  %v446_v23 = vmul.f32 %v438_v8, %v1139_v9  ;;  %v219_v28 = vpop.f32.mrf.mxu3 }
  0xdf   :  { %v345_v15 = vmul.f32 %v337_v54, %v297_v2  ;;  %v453_v29 = vadd.f32 %v452_v21, %v446_v23 }
  0xe1   :  { %v393_v25 = vmul.f32 %v385_v16, %v345_v15  ;;  %v454_v50 = vadd.f32 %v453_v29, %v447_v30 }
  0xe3   :  { %v441_v32 = vmul.f32 %v433_v26, %v393_v25 }
  0xe5   :  { %v372_v3 = vpop.permute.xlu1 %371  ;;  %v449_v36 = vmul.f32 %v441_v32, %v219_v28 }
  0xe6   :  { %v384_v22 = vmax.f32 %v372_v3, %v1133_v6 }
  0xe8   :  { %v392_v63 = vmul.f32 %v384_v22, %v344_v24 }
  0xee   :  { %v420_v27 = vpop.permute.xlu1 %419 }
  0xef   :  { %v432_v31 = vmax.f32 %v420_v27, %v1153_v18 }
  0xf1   :  { %v440_v34 = vmul.f32 %v432_v31, %v392_v63  ;;  %v559_v63 = vld [vmem:[#allocation7] sm:$0x1] }
  0xf3   :  { %v448_v35 = vmul.f32 %v440_v34, %v217_v12 }
  0xf5   :  { %v455_v6 = vadd.f32 %v454_v50, %v448_v35  ;;  %v809_v50 = vld [vmem:[#allocation9] ss:$0 sm:$0xff] }
  0xf7   :  { %v456_v37 = vadd.f32 %v455_v6, %v449_v36 }
  0xf9   :  { %v457_v38 = vrot.slane %v456_v37, 4 }
  0xfb   :  { %v458_v39 = vadd.f32 %v457_v38, %v456_v37 }
  0xfd   :  { %v459_v41 = vrot.slane %v458_v39, 2 }
  0xff   :  { %v460_v42 = vadd.f32 %v459_v41, %v458_v39 }
 0x101   :  { %v461_v40 = vrot.slane %v460_v42, 1 }
 0x103   :  { %v462_v46 = vadd.f32 %v461_v40, %v460_v42 }
 0x105   :  { %495 = vmatmul.f32.vlgmr.msra.gmra.mxu1 %v462_v46 }
 0x182   :  { %v496_v48 = vpop.f32.mrf.mxu1 }
 0x183   :  { %v499_v52 = vmul.f32 0.0078125, %v496_v48 }
 0x185   :  { %v500_v53 = vperm.slane %v499_v52, 0 }
 0x187   :  { %v501_v18 = vsub.f32 %v1108_v51, %v500_v53  ;;  %v502_v49 = vsub.f32 %v1117_v60, %v500_v53  ;;  %v503_v55 = vsub.f32 %v1146_v14, %v500_v53  ;;  %v504_v33 = vsub.f32 %v1193_v62, %v500_v53 }
 0x188   :  { %v505_v57 = vsub.f32 %v1139_v9, %v500_v53  ;;  %v506_v54 = vsub.f32 %v1176_v43, %v500_v53  ;;  %v507_v3 = vsub.f32 %v217_v12, %v500_v53  ;;  %v508_v59 = vsub.f32 %v219_v28, %v500_v53 }
 0x189   :  { %v509_v58 = vmul.f32 %v501_v18, %v1181_v45  ;;  %v510_v61 = vmul.f32 %v502_v49, %v1179_v44  ;;  %v511_v0 = vmul.f32 %v503_v55, %v1183_v47  ;;  %v512_v1 = vmul.f32 %v504_v33, %v1189_v56 }
 0x18a   :  { %v513_v60 = vmul.f32 %v505_v57, %v438_v8  ;;  %v514_v62 = vmul.f32 %v506_v54, %v439_v20  ;;  %v515_v7 = vmul.f32 %v507_v3, %v440_v34  ;;  %v516_v44 = vmul.f32 %v508_v59, %v441_v32 }
 0x18b   :  { %v517_v2 = vmul.f32 %v509_v58, %v509_v58  ;;  %v518_v51 = vmul.f32 %v510_v61, %v510_v61  ;;  %v519_v4 = vmul.f32 %v511_v0, %v511_v0  ;;  %v520_v5 = vmul.f32 %v512_v1, %v512_v1 }
 0x18c   :  { %v521_v45 = vmul.f32 %v513_v60, %v513_v60  ;;  %v522_v13 = vmul.f32 %v514_v62, %v514_v62  ;;  %v523_v10 = vmul.f32 %v515_v7, %v515_v7  ;;  %v524_v15 = vmul.f32 %v516_v44, %v516_v44 }
 0x18d   :  { %v525_v14 = vadd.f32 %v518_v51, %v517_v2 }
 0x18f   :  { %v526_v9 = vadd.f32 %v525_v14, %v519_v4 }
 0x191   :  { %v527_v11 = vadd.f32 %v526_v9, %v520_v5 }
 0x193   :  { %v528_v47 = vadd.f32 %v527_v11, %v521_v45 }
 0x195   :  { %v529_v43 = vadd.f32 %v528_v47, %v522_v13 }
 0x197   :  { %v530_v56 = vadd.f32 %v529_v43, %v523_v10 }
 0x199   :  { %v531_v16 = vadd.f32 %v530_v56, %v524_v15 }
 0x19b   :  { %v532_v17 = vrot.slane %v531_v16, 4 }
 0x19d   :  { %v533_v12 = vadd.f32 %v532_v17, %v531_v16 }
 0x19f   :  { %v534_v8 = vrot.slane %v533_v12, 2 }
 0x1a1   :  { %v535_v19 = vadd.f32 %v534_v8, %v533_v12 }
 0x1a3   :  { %v536_v21 = vrot.slane %v535_v19, 1 }
 0x1a5   :  { %v537_v22 = vadd.f32 %v536_v21, %v535_v19 }
 0x1a7   :  { %554 = vmatmul.f32.vlgmr.msra.gmra.mxu2 %v537_v22 }
 0x22a   :  { %v555_v20 = vpop.f32.mrf.mxu2 }
 0x22b   :  { %v558_v23 = vmul.f32 0.0078125, %v555_v20 }
 0x22d   :  { %v560_v24 = vadd.f32 1e-05, %v558_v23 }
 0x22f   :  { %810 = vrsqrt.f32 %v560_v24  ;;  %vm567_vm11 = vweird.f32 %v560_v24 }
 0x235   :  { %v811_v25 = vpop.eup %810 }
 0x236   :  { %v562_v26 = vmul.f32 %v811_v25, %v560_v24  ;;  %vm568_vm10 = vweird.f32 %v811_v25 }
 0x237   :  { %vm569_vm12 = vmor %vm567_vm11, %vm568_vm10 }
 0x238   :  { %v563_v27 = vmul.f32 %v811_v25, %v562_v26 }
 0x23a   :  { %v564_v29 = vmul.f32 0.5, %v563_v27 }
 0x23c   :  { %v565_v30 = vsub.f32 1.5, %v564_v29 }
 0x23e   :  { %v566_v31 = vmul.f32 %v811_v25, %v565_v30 }
 0x240   :  { %v570_v32 = vsel %vm569_vm12, %v811_v25, %v566_v31 }
 0x241   :  { %v571_v34 = vmul.f32 %v570_v32, %v559_v63 }
 0x243   :  { %v573_v28 = vperm.slane %v571_v34, 0 }
 0x245   :  { %v575_v35 = vmul.f32 %v573_v28, %v509_v58  ;;  %v576_v36 = vmul.f32 %v573_v28, %v510_v61  ;;  %v577_v6 = vmul.f32 %v573_v28, %v511_v0  ;;  %v578_v37 = vmul.f32 %v573_v28, %v512_v1 }
 0x246   :  { %v579_v38 = vmul.f32 %v573_v28, %v513_v60  ;;  %v580_v39 = vmul.f32 %v573_v28, %v514_v62  ;;  %v581_v41 = vmul.f32 %v573_v28, %v515_v7  ;;  %v582_v42 = vmul.f32 %v573_v28, %v516_v44 }
 0x247   :  { %v587_v40 = vadd.f32 %v809_v50, %v575_v35  ;;  %v588_v46 = vadd.f32 %v809_v50, %v576_v36  ;;  %v589_v48 = vadd.f32 %v809_v50, %v577_v6  ;;  %v590_v52 = vadd.f32 %v809_v50, %v578_v37 }
 0x248   :  { %v591_v53 = vadd.f32 %v809_v50, %v579_v38  ;;  %v592_v18 = vadd.f32 %v809_v50, %v580_v39  ;;  %v593_v49 = vadd.f32 %v809_v50, %v581_v41  ;;  %v594_v55 = vadd.f32 %v809_v50, %v582_v42 }
 0x249   :  { %v603_v33 = vmin.f32 %v587_v40, 0.0  ;;  %v604_v57 = vmin.f32 %v588_v46, 0.0  ;;  %v605_v54 = vmin.f32 %v589_v48, 0.0  ;;  %v606_v2 = vmin.f32 %v590_v52, 0.0 }
 0x24a   :  { %v607_v58 = vmin.f32 %v591_v53, 0.0  ;;  %v608_v61 = vmin.f32 %v592_v18, 0.0  ;;  %v609_v0 = vmin.f32 %v593_v49, 0.0  ;;  %v610_v60 = vmin.f32 %v594_v55, 0.0 }
 0x24b   :  { %v611_v1 = vmul.f32 1.442695, %v603_v33  ;;  %v613_v51 = vmul.f32 1.442695, %v604_v57  ;;  %v615_v3 = vmul.f32 1.442695, %v605_v54 }
 0x24c   :  { %v617_v4 = vmul.f32 1.442695, %v606_v2  ;;  %v619_v14 = vmul.f32 1.442695, %v607_v58  ;;  %v621_v59 = vmul.f32 1.442695, %v608_v61 }
 0x24d   :  { %812 = vpow2.f32 %v611_v1  ;;  %v623_v62 = vmul.f32 1.442695, %v609_v0  ;;  %v625_v5 = vmul.f32 1.442695, %v610_v60  ;;  %vm595_vm13 = vcmp.gt.f32.partialorder %v587_v40, 0.0 }
 0x24e   :  { %814 = vpow2.f32 %v613_v51  ;;  %vm596_vm14 = vcmp.gt.f32.partialorder %v588_v46, 0.0  ;;  %vm597_vm15 = vcmp.gt.f32.partialorder %v589_v48, 0.0  ;;  %vm598_vm0 = vcmp.gt.f32.partialorder %v590_v52, 0.0 }
 0x24f   :  { %816 = vpow2.f32 %v615_v3  ;;  %vm599_vm1 = vcmp.gt.f32.partialorder %v591_v53, 0.0  ;;  %vm600_vm2 = vcmp.gt.f32.partialorder %v592_v18, 0.0  ;;  %vm601_vm3 = vcmp.gt.f32.partialorder %v593_v49, 0.0 }
 0x250   :  { %818 = vpow2.f32 %v617_v4  ;;  %vm602_vm4 = vcmp.gt.f32.partialorder %v594_v55, 0.0 }
 0x251   :  { %820 = vpow2.f32 %v619_v14 }
 0x252   :  { %822 = vpow2.f32 %v621_v59 }
 0x253   :  { %v813_v9 = vpop.eup %812  ;;  %824 = vpow2.f32 %v623_v62 }
 0x254   :  { %v815_v7 = vpop.eup %814  ;;  %826 = vpow2.f32 %v625_v5  ;;  %v718_v45 = vadd.f32 -1.0, %v813_v9 }
 0x255   :  { %v817_v11 = vpop.eup %816  ;;  %v719_v44 = vadd.f32 -1.0, %v815_v7 }
 0x256   :  { %v819_v13 = vpop.eup %818  ;;  %v720_v47 = vadd.f32 -1.0, %v817_v11  ;;  %v635_v10 = vsel %vm595_vm13, %v587_v40, %v718_v45 }
 0x257   :  { %v821_v43 = vpop.eup %820  ;;  %v721_v15 = vadd.f32 -1.0, %v819_v13  ;;  %v636_v56 = vsel %vm596_vm14, %v588_v46, %v719_v44 }
 0x258   :  { %v823_v16 = vpop.eup %822  ;;  %v722_v17 = vadd.f32 -1.0, %v821_v43  ;;  %v637_v12 = vsel %vm597_vm15, %v589_v48, %v720_v47  ;;  %v741_v8 = vpack.c.bf16 %v636_v56, %v635_v10 }
 0x259   :  { %v825_v19 = vpop.eup %824  ;;  %v723_v21 = vadd.f32 -1.0, %v823_v16  ;;  %v638_v22 = vsel %vm598_vm0, %v590_v52, %v721_v15 }
 0x25a   :  { %v827_v20 = vpop.eup %826  ;;  %v724_v23 = vadd.f32 -1.0, %v825_v19  ;;  %v639_v24 = vsel %vm599_vm1, %v591_v53, %v722_v17  ;;  %742 = vst [vmem:[%s1243_s6] sm:$0xff] %v741_v8   ;;  %v746_v25 = vpack.c.bf16 %v638_v22, %v637_v12 }
 0x25b   :  { %v725_v26 = vadd.f32 -1.0, %v827_v20  ;;  %v640_v27 = vsel %vm600_vm2, %v592_v18, %v723_v21 }
 0x25c   :  { %v641_v29 = vsel %vm601_vm3, %v593_v49, %v724_v23  ;;  %758 = vst [vmem:[%s1243_s6 + $0x8] sm:$0xff] %v746_v25   ;;  %v751_v30 = vpack.c.bf16 %v640_v27, %v639_v24 }
 0x25d   :  { %v642_v63 = vsel %vm602_vm4, %v594_v55, %v725_v26 }
 0x25e   :  { %759 = vst [vmem:[%s1243_s6 + $0x10] sm:$0xff] %v751_v30   ;;  %v756_v31 = vpack.c.bf16 %v642_v63, %v641_v29 }
 0x260   :  { %760 = vst [vmem:[%s1243_s6 + $0x18] sm:$0xff] %v756_v31  }
 0x261   :  { %663 = vsyncpa [#allocation3], 1 }
 0x262   :  { %664 = vsyncpa [#allocation5], 1 }
 0x263   :  { %665 = vsyncpa [#allocation8], 1 }

// kernel: gang_forward.6
= control target key start
LH: loop header
LB: loop body
LE: loop exit
PB: predicated region body
PF: predicated region fallthrough
CT: control target
= control target key end

     0   :  { %v1576_v0 = vmov 2   ;;  %v1577_v1 = vmov 0   ;;  %v1578_v19 = vmov 3   ;;  %v1579_v20 = vmov 1   ;;  %s2624_s3 = inlined_call_operand.vmem [shape: f32[176,4], index: 3, kind: input, shape index: {}]   ;;  %s2625_s1 = inlined_call_operand.vmem [shape: bf16[128,128], index: 1, kind: input, shape index: {}]   ;;  %s2626_s0 = inlined_call_operand.vmem [shape: bf16[176,128], index: 0, kind: input, shape index: {}]   ;;  %s2627_s2 = inlined_call_operand.vmem [shape: f32[128,128], index: 2, kind: input, shape index: {}]   ;;  %s2628_s5 = inlined_call_operand.vmem [shape: f32[1,128], index: 5, kind: input, shape index: {}]   ;;  %s2629_s4 = inlined_call_operand.vmem [shape: f32[1,128], index: 4, kind: input, shape index: {}]   ;;  %s2630_s6 = inlined_call_operand.vmem [shape: bf16[176,128], index: 6, kind: output, shape index: {}]  }
   0x1   :  { %1484 = vset.pattern.permute.xlu0 %v1576_v0  ;;  %1470 = vset.pattern.permute.xlu2 %v1577_v1  ;;  %v1621_v2 = vld [vmem:[%s2624_s3 + $0x38] sm:$0xff]  ;;  %v1626_v3 = vld [vmem:[%s2624_s3 + $0x20] sm:$0xff]  ;;  %v1631_v4 = vld [vmem:[%s2624_s3 + $0x10] sm:$0xff]  ;;  %v239_v43 = vlaneseq  ;;  %v1580_v50 = vmov 0.0  }
   0x2   :  { %1469 = vset.pattern.permute.xlu1 %v1577_v1  ;;  %574 = vperm.xlu0 %1484, %v1621_v2   ;;  %v1374_v5 = vld [vmem:[%s2625_s1 + $0x38] sm:$0xff]  ;;  %v1373_v6 = vld [vmem:[%s2625_s1 + $0x30] sm:$0xff]  ;;  %v1651_v8 = vld [vmem:[%s2624_s3 + $0x28] sm:$0xff] }
   0x3   :  { %303 = vperm.xlu2 %1470, %v1626_v3   ;;  %293 = vperm.xlu1 %1469, %v1631_v4   ;;  %v1646_v7 = vld [vmem:[%s2624_s3 + $0x58] sm:$0xff]  ;;  %v1372_v10 = vld [vmem:[%s2625_s1 + $0x28] sm:$0xff]  ;;  %v1371_v11 = vld [vmem:[%s2625_s1 + $0x20] sm:$0xff]  ;;  %v240_v46 = vand.u32 127, %v239_v43 }
   0x4   :  { %175 = vmatpush.bf16.msra.mxu0 %v1374_v5  ;;  %1440 = vmatpush.bf16.msra.mxu1 %v1374_v5  ;;  %v1656_v9 = vld [vmem:[%s2624_s3 + $0x18] sm:$0xff]  ;;  %v1670_v12 = vld [vmem:[%s2624_s3 + $0x80] sm:$0xff]  ;;  %v1369_v15 = vld [vmem:[%s2625_s1 + $0x10] sm:$0xff] }
   0x5   :  { %1441 = vmatpush.bf16.msra.mxu2 %v1374_v5  ;;  %1442 = vmatpush.bf16.msra.mxu3 %v1374_v5  ;;  %v1675_v13 = vld [vmem:[%s2624_s3 + $0x40] sm:$0xff]  ;;  %v1370_v14 = vld [vmem:[%s2625_s1 + $0x18] sm:$0xff]  ;;  %v260_v16 = vld [vmem:[%s2624_s3 + $0x8] sm:$0xff]  ;;  %vm241_vm0 = vcmp.ge.s32.totalorder %v240_v46, 32  ;;  %vm244_vm1 = vcmp.lt.s32.totalorder %v240_v46, 32  ;;  %vm247_vm2 = vcmp.ge.s32.totalorder %v240_v46, 16 }
   0x6   :  { %v259_v17 = vld [vmem:[%s2624_s3] sm:$0xff]  ;;  %v1368_v18 = vld [vmem:[%s2625_s1 + $0x8] sm:$0xff]  ;;  %v1359_v23 = vld [vmem:[%s2626_s0 + $0x18] sm:$0xff]  ;;  %v1815_v51 = vsel %vm241_vm0, 1.0, %v1580_v50  ;;  %v1823_v54 = vsel %vm244_vm1, 1.0, %v1580_v50  ;;  %vm254_vm3 = vcmp.lt.s32.totalorder %v240_v46, 48 }
   0x7   :  { %v1367_v21 = vld [vmem:[%s2625_s1] sm:$0xff]  ;;  %v1357_v24 = vld [vmem:[%s2626_s0 + $0x8] sm:$0xff]  ;;  %v1358_v25 = vld [vmem:[%s2626_s0 + $0x10] sm:$0xff]  ;;  %vm249_vm5 = vcmp.ge.s32.totalorder %v240_v46, 48  ;;  %vm253_vm6 = vcmp.lt.s32.totalorder %v240_v46, 16 }
   0x8   :  { %176 = vmatpush.bf16.msra.mxu0 %v1373_v6  ;;  %1443 = vmatpush.bf16.msra.mxu1 %v1373_v6  ;;  %v1356_v22 = vld [vmem:[%s2626_s0] sm:$0xff]  ;;  %v265_v27 = vld [vmem:[%s2624_s3 + $0x30] sm:$0xff]  ;;  %v268_v28 = vld [vmem:[%s2624_s3 + $0x48] sm:$0xff] }
   0x9   :  { %1444 = vmatpush.bf16.msra.mxu2 %v1373_v6  ;;  %1445 = vmatpush.bf16.msra.mxu3 %v1373_v6  ;;  %v1360_v26 = vld [vmem:[%s2626_s0 + $0x20] sm:$0xff]  ;;  %v1361_v29 = vld [vmem:[%s2626_s0 + $0x28] sm:$0xff]  ;;  %v1750_v30 = vld [vmem:[%s2624_s3 + $0x50] sm:$0xff] }
   0xa   :  { %590 = vperm.xlu0 %1484, %v1646_v7   ;;  %v1759_v32 = vld [vmem:[%s2624_s3 + $0x78] sm:$0xff]  ;;  %v1768_v34 = vld [vmem:[%s2624_s3 + $0xa0] sm:$0xff]  ;;  %v1362_v38 = vld [vmem:[%s2626_s0 + $0x30] sm:$0xff] }
   0xb   :  { %308 = vperm.xlu2 %1470, %v1651_v8   ;;  %298 = vperm.xlu1 %1469, %v1656_v9   ;;  %v1364_v48 = vld [vmem:[%s2626_s0 + $0x40] sm:$0xff]  ;;  %v1363_v53 = vld [vmem:[%s2626_s0 + $0x38] sm:$0xff]  ;;  %v1841_v63 = vld [vmem:[%s2624_s3 + $0x68] sm:$0xff] }
   0xc   :  { %177 = vmatpush.bf16.msra.mxu0 %v1372_v10  ;;  %1446 = vmatpush.bf16.msra.mxu1 %v1372_v10  ;;  %v271_v59 = vld [vmem:[%s2624_s3 + $0x60] sm:$0xff]  ;;  %vm248_vm4 = vmand %vm247_vm2, %vm244_vm1 }
   0xd   :  { %1447 = vmatpush.bf16.msra.mxu2 %v1372_v10  ;;  %1448 = vmatpush.bf16.msra.mxu3 %v1372_v10  ;;  %vm255_vm7 = vmand %vm241_vm0, %vm254_vm3 }
   0xe   :  { %vm250_vm8 = vmor %vm248_vm4, %vm249_vm5 }
   0xf   :  { %vm256_vm9 = vmor %vm253_vm6, %vm255_vm7 }
  0x10   :  { %178 = vmatpush.bf16.msra.mxu0 %v1371_v11  ;;  %1449 = vmatpush.bf16.msra.mxu1 %v1371_v11 }
  0x11   :  { %1450 = vmatpush.bf16.msra.mxu2 %v1371_v11  ;;  %1451 = vmatpush.bf16.msra.mxu3 %v1371_v11  ;;  %v1860_v11 = vsel %vm250_vm8, 1.0, %v1580_v50 }
  0x12   :  { %610 = vperm.xlu0 %1484, %v1670_v12  }
  0x13   :  { %323 = vperm.xlu2 %1470, %v1675_v13   ;;  %318 = vperm.xlu1 %1469, %v1621_v2  }
  0x14   :  { %179 = vmatpush.bf16.msra.mxu0 %v1370_v14  ;;  %1452 = vmatpush.bf16.msra.mxu1 %v1370_v14 }
  0x15   :  { %1453 = vmatpush.bf16.msra.mxu2 %v1370_v14  ;;  %1454 = vmatpush.bf16.msra.mxu3 %v1370_v14  ;;  %v1865_v14 = vld [vmem:[%s2624_s3 + $0x70] sm:$0xff] }
  0x18   :  { %180 = vmatpush.bf16.msra.mxu0 %v1369_v15  ;;  %1455 = vmatpush.bf16.msra.mxu1 %v1369_v15 }
  0x19   :  { %1456 = vmatpush.bf16.msra.mxu2 %v1369_v15  ;;  %1457 = vmatpush.bf16.msra.mxu3 %v1369_v15 }
  0x1a   :  { %1511 = vset.pattern.permute.xlu0 %v1578_v19 }
  0x1b   :  { %1472 = vset.pattern.permute.xlu2 %v1579_v20  ;;  %1471 = vset.pattern.permute.xlu1 %v1579_v20 }
  0x1c   :  { %418 = vperm.xlu2 %1472, %v260_v16   ;;  %678 = vperm.xlu0 %1511, %v259_v17  }
  0x1d   :  { %414 = vperm.xlu1 %1471, %v259_v17   ;;  %181 = vmatpush.bf16.msra.mxu0 %v1368_v18 }
  0x1e   :  { %1458 = vmatpush.bf16.msra.mxu1 %v1368_v18  ;;  %1459 = vmatpush.bf16.msra.mxu2 %v1368_v18 }
  0x1f   :  { %1460 = vmatpush.bf16.msra.mxu3 %v1368_v18 }
  0x21   :  { %182 = vmatpush.bf16.msra.mxu0 %v1367_v21 }
  0x22   :  { %1461 = vmatpush.bf16.msra.mxu1 %v1367_v21  ;;  %1462 = vmatpush.bf16.msra.mxu2 %v1367_v21 }
  0x23   :  { %1463 = vmatpush.bf16.msra.mxu3 %v1367_v21 }
  0x24   :  { %1474 = vset.pattern.permute.xlu2 %v1576_v0  ;;  %694 = vperm.xlu0 %1511, %v1626_v3  }
  0x25   :  { %1473 = vset.pattern.permute.xlu1 %v1576_v0  ;;  %183 = vmatmul.bf16.vlgmr.msra.gmra.mxu0 %v1356_v22 }
  0x26   :  { %550 = vperm.xlu2 %1474, %v260_v16   ;;  %546 = vperm.xlu1 %1473, %v259_v17  }
  0x27   :  { %198 = vmatmul.bf16.vlgmr.msra.gmra.mxu1 %v1359_v23  ;;  %208 = vmatmul.bf16.vlgmr.msra.gmra.mxu2 %v1361_v29 }
  0x28   :  { %223 = vmatmul.bf16.vlgmr.msra.gmra.mxu3 %v1364_v48 }
  0x2c   :  { %722 = vperm.xlu0 %1511, %v1646_v7  }
  0x2e   :  { %554 = vperm.xlu2 %1474, %v1631_v4   ;;  %1475 = vset.pattern.permute.xlu1 %v1579_v20 }
  0x2f   :  { %426 = vperm.xlu1 %1475, %v1656_v9  }
  0x34   :  { %742 = vperm.xlu0 %1511, %v1670_v12  }
  0x35   :  { %188 = vmatmul.bf16.gmra.mxu0 %v1357_v24 }
  0x36   :  { %1477 = vset.pattern.permute.xlu2 %v1579_v20 }
  0x37   :  { %430 = vperm.xlu2 %1477, %v1626_v3   ;;  %1476 = vset.pattern.permute.xlu1 %v1578_v19 }
  0x38   :  { %682 = vperm.xlu1 %1476, %v260_v16   ;;  %203 = vmatmul.bf16.gmra.mxu1 %v1360_v26 }
  0x39   :  { %213 = vmatmul.bf16.gmra.mxu2 %v1362_v38 }
  0x3c   :  { %1516 = vset.pattern.permute.xlu0 %v1577_v1 }
  0x3d   :  { %283 = vperm.xlu0 %1516, %v259_v17   ;;  %v1869_v17 = vsel %vm256_vm9, 1.0, %v1580_v50 }
  0x3f   :  { %1479 = vset.pattern.permute.xlu2 %v1578_v19 }
  0x40   :  { %686 = vperm.xlu2 %1479, %v1631_v4   ;;  %1478 = vset.pattern.permute.xlu1 %v1576_v0 }
  0x41   :  { %558 = vperm.xlu1 %1478, %v1656_v9  }
  0x45   :  { %193 = vmatmul.bf16.gmra.mxu0 %v1358_v25  ;;  %288 = vperm.xlu0 %1516, %v260_v16  }
  0x48   :  { %690 = vperm.xlu2 %1479, %v1656_v9  }
  0x49   :  { %562 = vperm.xlu1 %1478, %v1626_v3   ;;  %218 = vmatmul.bf16.gmra.mxu2 %v1363_v53 }
  0x4d   :  { %313 = vperm.xlu0 %1516, %v265_v27  }
  0x50   :  { %1481 = vset.pattern.permute.xlu2 %v1576_v0 }
  0x51   :  { %566 = vperm.xlu2 %1481, %v1651_v8   ;;  %1480 = vset.pattern.permute.xlu1 %v1579_v20 }
  0x52   :  { %438 = vperm.xlu1 %1480, %v265_v27  }
  0x55   :  { %328 = vperm.xlu0 %1516, %v268_v28  }
  0x59   :  { %570 = vperm.xlu2 %1481, %v265_v27  }
  0x5a   :  { %442 = vperm.xlu1 %1480, %v1621_v2  }
  0x5d   :  { %333 = vperm.xlu0 %1516, %v1750_v30   ;;  %v304_v31 = vpop.permute.xlu2 %303 }
  0x5e   :  { %v395_v56 = vmax.f32 %v304_v31, %v1815_v51 }
  0x61   :  { %1483 = vset.pattern.permute.xlu2 %v1579_v20 }
  0x62   :  { %446 = vperm.xlu2 %1483, %v1675_v13   ;;  %1482 = vset.pattern.permute.xlu1 %v1578_v19 }
  0x63   :  { %698 = vperm.xlu1 %1482, %v1651_v8  }
  0x65   :  { %358 = vperm.xlu0 %1516, %v1759_v32   ;;  %v1763_v33 = vpop.permute.xlu2 %308 }
  0x6a   :  { %450 = vperm.xlu2 %1483, %v268_v28  }
  0x6b   :  { %702 = vperm.xlu1 %1482, %v265_v27  }
  0x6d   :  { %383 = vperm.xlu0 %1516, %v1768_v34   ;;  %v1771_v35 = vpop.permute.xlu2 %323 }
  0x72   :  { %1486 = vset.pattern.permute.xlu2 %v1578_v19 }
  0x73   :  { %706 = vperm.xlu2 %1486, %v1621_v2   ;;  %1485 = vset.pattern.permute.xlu1 %v1576_v0 }
  0x74   :  { %578 = vperm.xlu1 %1485, %v1675_v13   ;;  %v1777_v36 = vpop.permute.xlu0 %574 }
  0x75   :  { %v1779_v37 = vpop.permute.xlu1 %293  ;;  %1521 = vset.pattern.permute.xlu0 %v1579_v20 }
  0x76   :  { %422 = vperm.xlu0 %1521, %v1631_v4   ;;  %v1786_v39 = vpop.permute.xlu2 %418 }
  0x77   :  { %v502_v31 = vmax.f32 %v1786_v39, %v1823_v54 }
  0x7b   :  { %1488 = vset.pattern.permute.xlu2 %v1576_v0 }
  0x7c   :  { %582 = vperm.xlu2 %1488, %v268_v28   ;;  %1487 = vset.pattern.permute.xlu1 %v1579_v20  ;;  %v1790_v40 = vpop.permute.xlu0 %590 }
  0x7d   :  { %454 = vperm.xlu1 %1487, %v1750_v30   ;;  %v299_v41 = vpop.permute.xlu1 %298 }
  0x7e   :  { %434 = vperm.xlu0 %1521, %v1651_v8   ;;  %v394_v4 = vmax.f32 %v299_v41, %v1815_v51 }
  0x80   :  { %v1794_v42 = vpop.permute.xlu2 %550 }
  0x81   :  { %v634_v43 = vmax.f32 %v1794_v42, %v1860_v11  ;;  %v399_v42 = vmax.f32 %v1771_v35, %v1815_v51 }
  0x84   :  { %1490 = vset.pattern.permute.xlu2 %v1577_v1  ;;  %v1797_v44 = vpop.permute.xlu0 %610 }
  0x85   :  { %338 = vperm.xlu2 %1490, %v1646_v7   ;;  %1489 = vset.pattern.permute.xlu1 %v1578_v19  ;;  %v1801_v45 = vpop.permute.xlu1 %318 }
  0x86   :  { %710 = vperm.xlu1 %1489, %v1675_v13   ;;  %458 = vperm.xlu0 %1521, %v1646_v7  }
  0x88   :  { %v1805_v47 = vpop.permute.xlu2 %554 }
  0x8d   :  { %1492 = vset.pattern.permute.xlu2 %v1578_v19 }
  0x8e   :  { %714 = vperm.xlu2 %1492, %v268_v28   ;;  %1491 = vset.pattern.permute.xlu1 %v1576_v0  ;;  %v1812_v49 = vpop.permute.xlu0 %678 }
  0x8f   :  { %586 = vperm.xlu1 %1491, %v1750_v30   ;;  %v415_v52 = vpop.permute.xlu1 %414  ;;  %478 = vperm.xlu0 %1521, %v1670_v12   ;;  %v765_v18 = vmax.f32 %v1812_v49, %v1869_v17 }
  0x90   :  { %v501_v15 = vmax.f32 %v415_v52, %v1823_v54 }
  0x91   :  { %v431_v55 = vpop.permute.xlu2 %430 }
  0x92   :  { %v505_v57 = vmax.f32 %v431_v55, %v1823_v54 }
  0x94   :  { %v1827_v58 = vmul.f32 %v505_v57, %v395_v56 }
  0x96   :  { %1494 = vset.pattern.permute.xlu2 %v1579_v20  ;;  %v1833_v60 = vpop.permute.xlu0 %694 }
  0x97   :  { %462 = vperm.xlu2 %1494, %v271_v59   ;;  %1493 = vset.pattern.permute.xlu1 %v1577_v1  ;;  %v769_v49 = vmax.f32 %v1833_v60, %v1869_v17 }
  0x98   :  { %343 = vperm.xlu1 %1493, %v271_v59   ;;  %v547_v61 = vpop.permute.xlu1 %546 }
  0x99   :  { %v633_v21 = vmax.f32 %v547_v61, %v1860_v11 }
  0x9a   :  { %v1836_v62 = vpop.permute.xlu2 %686 }
  0x9e   :  { %v1843_v2 = vpop.permute.xlu0 %722 }
  0x9f   :  { %1496 = vset.pattern.permute.xlu2 %v1577_v1 }
  0xa0   :  { %348 = vperm.xlu2 %1496, %v1841_v63   ;;  %1495 = vset.pattern.permute.xlu1 %v1578_v19 }
  0xa1   :  { %718 = vperm.xlu1 %1495, %v1750_v30   ;;  %v427_v3 = vpop.permute.xlu1 %426 }
  0xa2   :  { %v504_v5 = vmax.f32 %v427_v3, %v1823_v54  ;;  %v691_v6 = vpop.permute.xlu2 %690 }
  0xa3   :  { %v768_v27 = vmax.f32 %v691_v6, %v1869_v17 }
  0xa4   :  { %v526_v7 = vmul.f32 %v504_v5, %v394_v4 }
  0xa6   :  { %v1851_v8 = vpop.permute.xlu0 %742 }
  0xa8   :  { %1498 = vset.pattern.permute.xlu2 %v1576_v0 }
  0xa9   :  { %594 = vperm.xlu2 %1498, %v271_v59   ;;  %1497 = vset.pattern.permute.xlu1 %v1579_v20 }
  0xaa   :  { %466 = vperm.xlu1 %1497, %v1841_v63   ;;  %v683_v9 = vpop.permute.xlu1 %682 }
  0xab   :  { %v1858_v10 = vpop.permute.xlu2 %566  ;;  %v766_v50 = vmax.f32 %v683_v9, %v1869_v17 }
  0xaf   :  { %v284_v13 = vpop.permute.xlu0 %283 }
  0xb0   :  { %v391_v16 = vmax.f32 %v284_v13, %v1815_v51 }
  0xb1   :  { %1500 = vset.pattern.permute.xlu2 %v1579_v20 }
  0xb2   :  { %v523_v22 = vmul.f32 %v501_v15, %v391_v16  ;;  %470 = vperm.xlu2 %1500, %v1865_v14   ;;  %1499 = vset.pattern.permute.xlu1 %v1577_v1  ;;  %v640_v15 = vmax.f32 %v1777_v36, %v1860_v11  ;;  %v398_v16 = vmax.f32 %v1801_v45, %v1815_v51  ;;  %v1365_v36 = vld [vmem:[%s2626_s0 + $0x48] sm:$0xff] }
  0xb3   :  { %353 = vperm.xlu1 %1499, %v1865_v14   ;;  %v559_v23 = vpop.permute.xlu1 %558  ;;  %v571_v24 = vpop.permute.xlu2 %570  ;;  %228 = vmatmul.bf16.gmra.mxu3 %v1365_v36 }
  0xb4   :  { %v655_v25 = vmul.f32 %v633_v21, %v523_v22  ;;  %v636_v26 = vmax.f32 %v559_v23, %v1860_v11 }
  0xb6   :  { %v1880_v28 = vmul.f32 %v765_v18, %v655_v25  ;;  %v658_v29 = vmul.f32 %v636_v26, %v526_v7 }
  0xb7   :  { %v289_v30 = vpop.permute.xlu0 %288 }
  0xb8   :  { %v392_v38 = vmax.f32 %v289_v30, %v1815_v51  ;;  %v1885_v41 = vmul.f32 %v768_v27, %v658_v29 }
  0xba   :  { %v524_v46 = vmul.f32 %v502_v31, %v392_v38  ;;  %1502 = vset.pattern.permute.xlu2 %v1578_v19 }
  0xbb   :  { %726 = vperm.xlu2 %1502, %v271_v59   ;;  %1501 = vset.pattern.permute.xlu1 %v1576_v0  ;;  %v563_v48 = vpop.permute.xlu1 %562 }
  0xbc   :  { %v656_v39 = vmul.f32 %v634_v43, %v524_v46  ;;  %v637_v52 = vmax.f32 %v563_v48, %v1860_v11  ;;  %v447_v53 = vpop.permute.xlu2 %446  ;;  %598 = vperm.xlu1 %1501, %v1841_v63   ;;  %v1942_v43 = vld [vmem:[%s2624_s3 + $0x88] sm:$0xff] }
  0xbd   :  { %v509_v55 = vmax.f32 %v447_v53, %v1823_v54 }
  0xbe   :  { %v1899_v56 = vmul.f32 %v766_v50, %v656_v39  ;;  %v659_v57 = vmul.f32 %v637_v52, %v1827_v58  ;;  %v639_v58 = vmax.f32 %v571_v24, %v1860_v11  ;;  %v1962_v52 = vld [vmem:[%s2624_s3 + $0x90] sm:$0xff] }
  0xbf   :  { %v1902_v59 = vmul.f32 %v509_v55, %v399_v42  ;;  %v314_v60 = vpop.permute.xlu0 %313 }
  0xc0   :  { %v1904_v61 = vmul.f32 %v769_v49, %v659_v57  ;;  %v397_v3 = vmax.f32 %v314_v60, %v1815_v51  ;;  %v393_v60 = vmax.f32 %v1779_v37, %v1815_v51  ;;  %v767_v37 = vmax.f32 %v1836_v62, %v1869_v17 }
  0xc1   :  { %v638_v62 = vmax.f32 %v1858_v10, %v1860_v11 }
  0xc3   :  { %1504 = vset.pattern.permute.xlu2 %v1576_v0 }
  0xc4   :  { %602 = vperm.xlu2 %1504, %v1865_v14   ;;  %1503 = vset.pattern.permute.xlu1 %v1579_v20  ;;  %v439_v35 = vpop.permute.xlu1 %438  ;;  %v451_v4 = vpop.permute.xlu2 %450 }
  0xc5   :  { %v507_v5 = vmax.f32 %v439_v35, %v1823_v54  ;;  %474 = vperm.xlu1 %1503, %v1759_v32   ;;  %v510_v45 = vmax.f32 %v451_v4, %v1823_v54 }
  0xc7   :  { %v529_v6 = vmul.f32 %v507_v5, %v397_v3  ;;  %v329_v7 = vpop.permute.xlu0 %328  ;;  %v635_v5 = vmax.f32 %v1805_v47, %v1860_v11  ;;  %v396_v47 = vmax.f32 %v1763_v33, %v1815_v51  ;;  %v278_v33 = vld [vmem:[%s2624_s3 + $0x98] sm:$0xff] }
  0xc8   :  { %v400_v25 = vmax.f32 %v329_v7, %v1815_v51  ;;  %v1366_v7 = vld [vmem:[%s2626_s0 + $0x50] sm:$0xff] }
  0xc9   :  { %v661_v9 = vmul.f32 %v639_v58, %v529_v6  ;;  %233 = vmatmul.bf16.gmra.mxu3 %v1366_v7 }
  0xca   :  { %v532_v27 = vmul.f32 %v510_v45, %v400_v25 }
  0xcc   :  { %1506 = vset.pattern.permute.xlu2 %v1577_v1  ;;  %v443_v13 = vpop.permute.xlu1 %442 }
  0xcd   :  { %v508_v18 = vmax.f32 %v443_v13, %v1823_v54  ;;  %363 = vperm.xlu2 %1506, %v1670_v12   ;;  %1505 = vset.pattern.permute.xlu1 %v1578_v19  ;;  %v707_v21 = vpop.permute.xlu2 %706 }
  0xce   :  { %730 = vperm.xlu1 %1505, %v1841_v63   ;;  %v772_v23 = vmax.f32 %v707_v21, %v1869_v17 }
  0xcf   :  { %v530_v22 = vmul.f32 %v508_v18, %v398_v16  ;;  %v1923_v24 = vpop.permute.xlu0 %333 }
  0xd1   :  { %v662_v26 = vmul.f32 %v640_v15, %v530_v22 }
  0xd3   :  { %v1930_v12 = vmul.f32 %v772_v23, %v662_v26  ;;  %v644_v26 = vmax.f32 %v1790_v40, %v1860_v11  ;;  %v401_v40 = vmax.f32 %v1923_v24, %v1815_v51 }
  0xd5   :  { %1508 = vset.pattern.permute.xlu2 %v1578_v19  ;;  %v699_v63 = vpop.permute.xlu1 %698 }
  0xd6   :  { %734 = vperm.xlu2 %1508, %v1865_v14   ;;  %1507 = vset.pattern.permute.xlu1 %v1576_v0  ;;  %v583_v29 = vpop.permute.xlu2 %582  ;;  %v1947_v14 = vld [vmem:[%s2624_s3 + $0xa8] sm:$0xff]  ;;  %v770_v21 = vmax.f32 %v699_v63, %v1869_v17 }
  0xd7   :  { %v642_v30 = vmax.f32 %v583_v29, %v1860_v11  ;;  %606 = vperm.xlu1 %1507, %v1759_v32   ;;  %v1937_v31 = vpop.permute.xlu0 %358  ;;  %498 = vperm.xlu0 %1521, %v1947_v14   ;;  %v776_v29 = vmax.f32 %v1843_v2, %v1869_v17 }
  0xd9   :  { %v664_v38 = vmul.f32 %v642_v30, %v532_v27 }
  0xdd   :  { %v703_v46 = vpop.permute.xlu1 %702 }
  0xde   :  { %v771_v48 = vmax.f32 %v703_v46, %v1869_v17  ;;  %1510 = vset.pattern.permute.xlu2 %v1579_v20 }
  0xdf   :  { %482 = vperm.xlu2 %1510, %v1942_v43   ;;  %1509 = vset.pattern.permute.xlu1 %v1577_v1  ;;  %v339_v49 = vpop.permute.xlu2 %338  ;;  %v1954_v50 = vpop.permute.xlu0 %383 }
  0xe0   :  { %v1956_v39 = vmul.f32 %v771_v48, %v661_v9  ;;  %368 = vperm.xlu1 %1509, %v1942_v43   ;;  %1528 = vset.pattern.permute.xlu0 %v1578_v19  ;;  %v402_v23 = vmax.f32 %v339_v49, %v1815_v51 }
  0xe1   :  { %762 = vperm.xlu0 %1528, %v1947_v14  }
  0xe6   :  { %v579_v53 = vpop.permute.xlu1 %578 }
  0xe7   :  { %v641_v42 = vmax.f32 %v579_v53, %v1860_v11  ;;  %1513 = vset.pattern.permute.xlu2 %v1577_v1 }
  0xe8   :  { %373 = vperm.xlu2 %1513, %v1962_v52   ;;  %v715_v55 = vpop.permute.xlu2 %714  ;;  %1512 = vset.pattern.permute.xlu1 %v1578_v19  ;;  %v423_v57 = vpop.permute.xlu0 %422 }
  0xe9   :  { %v663_v3 = vmul.f32 %v641_v42, %v1902_v59  ;;  %v774_v35 = vmax.f32 %v715_v55, %v1869_v17  ;;  %v503_v4 = vmax.f32 %v423_v57, %v1823_v54  ;;  %738 = vperm.xlu1 %1512, %v1759_v32  }
  0xeb   :  { %v1978_v58 = vmul.f32 %v774_v35, %v664_v38  ;;  %v525_v6 = vmul.f32 %v503_v4, %v393_v60 }
  0xed   :  { %v657_v59 = vmul.f32 %v635_v5, %v525_v6 }
  0xef   :  { %v1985_v9 = vmul.f32 %v767_v37, %v657_v59  ;;  %v455_v13 = vpop.permute.xlu1 %454 }
  0xf0   :  { %1515 = vset.pattern.permute.xlu2 %v1576_v0  ;;  %v435_v32 = vpop.permute.xlu0 %434  ;;  %v511_v48 = vmax.f32 %v455_v13, %v1823_v54 }
  0xf1   :  { %614 = vperm.xlu2 %1515, %v1942_v43   ;;  %v506_v15 = vmax.f32 %v435_v32, %v1823_v54  ;;  %1514 = vset.pattern.permute.xlu1 %v1579_v20  ;;  %v463_v16 = vpop.permute.xlu2 %462 }
  0xf2   :  { %486 = vperm.xlu1 %1514, %v1962_v52   ;;  %v533_v42 = vmul.f32 %v511_v48, %v401_v40  ;;  %v513_v24 = vmax.f32 %v463_v16, %v1823_v54 }
  0xf3   :  { %v528_v18 = vmul.f32 %v506_v15, %v396_v47 }
  0xf5   :  { %v660_v22 = vmul.f32 %v638_v62, %v528_v18 }
  0xf7   :  { %v1998_v36 = vmul.f32 %v770_v21, %v660_v22 }
  0xf8   :  { %v711_v45 = vpop.permute.xlu1 %710  ;;  %v459_v25 = vpop.permute.xlu0 %458 }
  0xf9   :  { %v773_v27 = vmax.f32 %v711_v45, %v1869_v17  ;;  %1518 = vset.pattern.permute.xlu2 %v1579_v20  ;;  %v512_v10 = vmax.f32 %v459_v25, %v1823_v54  ;;  %v649_v45 = vmax.f32 %v1797_v44, %v1860_v11 }
  0xfa   :  { %490 = vperm.xlu2 %1518, %v278_v33   ;;  %1517 = vset.pattern.permute.xlu1 %v1577_v1  ;;  %v349_v63 = vpop.permute.xlu2 %348 }
  0xfb   :  { %v2011_v30 = vmul.f32 %v773_v27, %v663_v3  ;;  %v534_v38 = vmul.f32 %v512_v10, %v402_v23  ;;  %378 = vperm.xlu1 %1517, %v278_v33   ;;  %v404_v47 = vmax.f32 %v349_v63, %v1815_v51  ;;  %v781_v27 = vmax.f32 %v1851_v8, %v1869_v17 }
  0xfd   :  { %v666_v46 = vmul.f32 %v644_v26, %v534_v38 }
  0xff   :  { %v2016_v49 = vmul.f32 %v776_v29, %v666_v46 }
 0x101   :  { %2635 = vst [vmem:[#allocation2_spill] sm:$0xff] %v2016_v49  ;;  %v587_v53 = vpop.permute.xlu1 %586  ;;  %v479_v62 = vpop.permute.xlu0 %478 }
 0x102   :  { %v643_v55 = vmax.f32 %v587_v53, %v1860_v11  ;;  %1520 = vset.pattern.permute.xlu2 %v1578_v19  ;;  %v517_v23 = vmax.f32 %v479_v62, %v1823_v54 }
 0x103   :  { %746 = vperm.xlu2 %1520, %v1942_v43   ;;  %1519 = vset.pattern.permute.xlu1 %v1576_v0  ;;  %v595_v2 = vpop.permute.xlu2 %594 }
 0x104   :  { %v665_v57 = vmul.f32 %v643_v55, %v533_v42  ;;  %618 = vperm.xlu1 %1519, %v1962_v52   ;;  %v645_v3 = vmax.f32 %v595_v2, %v1860_v11 }
 0x10a   :  { %v344_v60 = vpop.permute.xlu1 %343 }
 0x10b   :  { %v403_v35 = vmax.f32 %v344_v60, %v1815_v51  ;;  %1523 = vset.pattern.permute.xlu2 %v1576_v0 }
 0x10c   :  { %622 = vperm.xlu2 %1523, %v278_v33   ;;  %1522 = vset.pattern.permute.xlu1 %v1579_v20  ;;  %v471_v4 = vpop.permute.xlu2 %470 }
 0x10d   :  { %v535_v43 = vmul.f32 %v513_v24, %v403_v35  ;;  %494 = vperm.xlu1 %1522, %v1768_v34   ;;  %v515_v18 = vmax.f32 %v471_v4, %v1823_v54  ;;  %v2087_v4 = vpop.f32.mrf.mxu1 }
 0x10f   :  { %v667_v5 = vmul.f32 %v645_v3, %v535_v43 }
 0x113   :  { %v719_v6 = vpop.permute.xlu1 %718 }
 0x114   :  { %v775_v7 = vmax.f32 %v719_v6, %v1869_v17  ;;  %1525 = vset.pattern.permute.xlu2 %v1577_v1 }
 0x115   :  { %388 = vperm.xlu2 %1525, %v1947_v14   ;;  %v727_v37 = vpop.permute.xlu2 %726  ;;  %1524 = vset.pattern.permute.xlu1 %v1578_v19 }
 0x116   :  { %v2033_v59 = vmul.f32 %v775_v7, %v665_v57  ;;  %v777_v13 = vmax.f32 %v727_v37, %v1869_v17  ;;  %750 = vperm.xlu1 %1524, %v1962_v52  }
 0x118   :  { %v2037_v20 = vmul.f32 %v777_v13, %v667_v5  ;;  %v2091_v5 = vpop.f32.mrf.mxu2 }
 0x11a   :  { %2636 = vst [vmem:[#allocation3_spill] sm:$0xff] %v2037_v20 }
 0x11c   :  { %v467_v32 = vpop.permute.xlu1 %466 }
 0x11d   :  { %v514_v15 = vmax.f32 %v467_v32, %v1823_v54  ;;  %1527 = vset.pattern.permute.xlu2 %v1578_v19 }
 0x11e   :  { %754 = vperm.xlu2 %1527, %v278_v33   ;;  %1526 = vset.pattern.permute.xlu1 %v1576_v0  ;;  %v603_v1 = vpop.permute.xlu2 %602 }
 0x11f   :  { %v536_v16 = vmul.f32 %v514_v15, %v404_v47  ;;  %626 = vperm.xlu1 %1526, %v1768_v34   ;;  %v647_v21 = vmax.f32 %v603_v1, %v1860_v11 }
 0x125   :  { %v354_v52 = vpop.permute.xlu1 %353 }
 0x126   :  { %v405_v22 = vmax.f32 %v354_v52, %v1815_v51  ;;  %758 = vperm.xlu2 %1527, %v1768_v34   ;;  %v2109_v52 = vpop.f32.mrf.mxu2 }
 0x127   :  { %v364_v19 = vpop.permute.xlu2 %363  ;;  %630 = vperm.xlu1 %1526, %v1947_v14   ;;  %v2060_v14 = vpop.f32.mrf.mxu0 }
 0x128   :  { %v537_v0 = vmul.f32 %v515_v18, %v405_v22  ;;  %v407_v33 = vmax.f32 %v364_v19, %v1815_v51  ;;  %v809_v7 = vmul.f32 %v1880_v28, %v2060_v14 }
 0x12a   :  { %v539_v25 = vmul.f32 %v517_v23, %v407_v33  ;;  %v2053_v26 = vmul.f32 %v647_v21, %v537_v0 }
 0x12c   :  { %v671_v10 = vmul.f32 %v649_v45, %v539_v25  ;;  %v815_v45 = vmul.f32 %v1956_v39, %v2087_v4 }
 0x12e   :  { %v599_v63 = vpop.permute.xlu1 %598  ;;  %v2057_v29 = vmul.f32 %v781_v27, %v671_v10  ;;  %v2121_v25 = vpop.f32.mrf.mxu2 }
 0x12f   :  { %v646_v34 = vmax.f32 %v599_v63, %v1860_v11  ;;  %v2066_v44 = vpop.f32.mrf.mxu0  ;;  %v873_v63 = vld [vmem:[%s2627_s2 + $0x78] sm:$0xff] }
 0x130   :  { %v2064_v40 = vpop.permute.xlu2 %734  ;;  %v810_v43 = vmul.f32 %v1899_v56, %v2066_v44  ;;  %874 = vmatpush.msrb.mxu1 %v873_v63  ;;  %989 = vmatpush.msrb.mxu2 %v873_v63 }
 0x131   :  { %v668_v38 = vmul.f32 %v646_v34, %v536_v16  ;;  %v2105_v16 = vpop.f32.mrf.mxu1 }
 0x132   :  { %v831_v13 = vadd.f32 %v810_v43, %v809_v7  ;;  %v816_v34 = vmul.f32 %v1930_v12, %v2105_v16  ;;  %v871_v43 = vld [vmem:[%s2627_s2 + $0x68] sm:$0xff] }
 0x137   :  { %v2062_v46 = vpop.permute.xlu1 %474  ;;  %v2075_v2 = vpop.f32.mrf.mxu0 }
 0x138   :  { %v811_v37 = vmul.f32 %v1985_v9, %v2075_v2 }
 0x139   :  { %v2071_v8 = vpop.permute.xlu2 %482  ;;  %v2117_v33 = vpop.f32.mrf.mxu1 }
 0x13a   :  { %v832_v32 = vadd.f32 %v831_v13, %v811_v37  ;;  %v817_v37 = vmul.f32 %v2011_v30, %v2117_v33  ;;  %v2142_v13 = vpop.f32.mrf.mxu2 }
 0x13b   :  { %2638 = vst [vmem:[#allocation5_spill] sm:$0xff] %v2142_v13 }
 0x13f   :  { %v2081_v60 = vpop.f32.mrf.mxu0 }
 0x140   :  { %v731_v48 = vpop.permute.xlu1 %730  ;;  %v812_v15 = vmul.f32 %v1885_v41, %v2081_v60 }
 0x141   :  { %v778_v53 = vmax.f32 %v731_v48, %v1869_v17  ;;  %v872_v48 = vld [vmem:[%s2627_s2 + $0x70] sm:$0xff] }
 0x142   :  { %v2077_v57 = vpop.permute.xlu2 %373  ;;  %v833_v18 = vadd.f32 %v832_v32, %v812_v15  ;;  %875 = vmatpush.msrb.mxu1 %v872_v48  ;;  %990 = vmatpush.msrb.mxu2 %v872_v48  ;;  %v870_v15 = vld [vmem:[%s2627_s2 + $0x60] sm:$0xff] }
 0x143   :  { %v2069_v42 = vmul.f32 %v778_v53, %v668_v38  ;;  %v2130_v38 = vpop.f32.mrf.mxu3 }
 0x144   :  { %876 = vmatpush.msrb.mxu1 %v871_v43  ;;  %991 = vmatpush.msrb.mxu2 %v871_v43  ;;  %v866_v43 = vld [vmem:[%s2627_s2 + $0x40] sm:$0xff] }
 0x145   :  { %2637 = vst [vmem:[#allocation4_spill] sm:$0xff] %v2069_v42 }
 0x146   :  { %877 = vmatpush.msrb.mxu1 %v870_v15  ;;  %992 = vmatpush.msrb.mxu2 %v870_v15  ;;  %v516_v15 = vmax.f32 %v2062_v46, %v1823_v54  ;;  %v779_v46 = vmax.f32 %v2064_v40, %v1869_v17  ;;  %v822_v40 = vmul.f32 %v2069_v42, %v2142_v13  ;;  %v861_v42 = vld [vmem:[%s2627_s2 + $0x18] sm:$0xff] }
 0x147   :  { %v2093_v6 = vpop.f32.mrf.mxu0 }
 0x148   :  { %v813_v21 = vmul.f32 %v1904_v61, %v2093_v6 }
 0x149   :  { %v2073_v55 = vpop.permute.xlu1 %606 }
 0x14a   :  { %v834_v23 = vadd.f32 %v833_v18, %v813_v21  ;;  %v2149_v18 = vpop.f32.mrf.mxu1  ;;  %v869_v21 = vld [vmem:[%s2627_s2 + $0x58] sm:$0xff] }
 0x14b   :  { %v2083_v3 = vpop.permute.xlu2 %614  ;;  %878 = vmatpush.msrb.mxu1 %v869_v21  ;;  %993 = vmatpush.msrb.mxu2 %v869_v21  ;;  %v820_v21 = vmul.f32 %v2016_v49, %v2109_v52 }
 0x14f   :  { %v2107_v62 = vpop.f32.mrf.mxu0 }
 0x150   :  { %v814_v22 = vmul.f32 %v1998_v36, %v2107_v62 }
 0x152   :  { %v2079_v24 = vpop.permute.xlu1 %368  ;;  %v835_v19 = vadd.f32 %v834_v23, %v814_v22  ;;  %v818_v23 = vmul.f32 %v1978_v58, %v2149_v18 }
 0x154   :  { %v2103_v1 = vpop.permute.xlu2 %490  ;;  %v836_v10 = vadd.f32 %v835_v19, %v815_v45  ;;  %v819_v19 = vmul.f32 %v2033_v59, %v2091_v5  ;;  %v2158_v45 = vpop.f32.mrf.mxu3 }
 0x156   :  { %v837_v53 = vadd.f32 %v836_v10, %v816_v34  ;;  %v868_v10 = vld [vmem:[%s2627_s2 + $0x50] sm:$0xff]  ;;  %v867_v34 = vld [vmem:[%s2627_s2 + $0x48] sm:$0xff] }
 0x157   :  { %879 = vmatpush.msrb.mxu1 %v868_v10  ;;  %994 = vmatpush.msrb.mxu2 %v868_v10  ;;  %v648_v10 = vmax.f32 %v2073_v55, %v1860_v11  ;;  %v863_v55 = vld [vmem:[%s2627_s2 + $0x28] sm:$0xff] }
 0x158   :  { %v838_v22 = vadd.f32 %v837_v53, %v817_v37  ;;  %v406_v37 = vmax.f32 %v1937_v31, %v1815_v51 }
 0x159   :  { %880 = vmatpush.msrb.mxu1 %v867_v34  ;;  %995 = vmatpush.msrb.mxu2 %v867_v34  ;;  %v864_v34 = vld [vmem:[%s2627_s2 + $0x30] sm:$0xff] }
 0x15a   :  { %v839_v63 = vadd.f32 %v838_v22, %v818_v23  ;;  %v2177_v22 = vpop.f32.mrf.mxu2 }
 0x15b   :  { %v2085_v35 = vpop.permute.xlu1 %738  ;;  %881 = vmatpush.msrb.mxu1 %v866_v43  ;;  %996 = vmatpush.msrb.mxu2 %v866_v43  ;;  %v538_v43 = vmul.f32 %v516_v15, %v406_v37  ;;  %v2206_v15 = vmul.f32 %v779_v46, %v2053_v26  ;;  %v650_v46 = vmax.f32 %v2083_v3, %v1860_v11 }
 0x15c   :  { %v840_v48 = vadd.f32 %v839_v63, %v819_v19  ;;  %v865_v19 = vld [vmem:[%s2627_s2 + $0x38] sm:$0xff]  ;;  %v2188_v63 = vpop.f32.mrf.mxu3  ;;  %v780_v49 = vmax.f32 %v2085_v35, %v1869_v17 }
 0x15d   :  { %v2123_v27 = vpop.permute.xlu2 %746  ;;  %882 = vmatpush.msrb.mxu1 %v865_v19  ;;  %997 = vmatpush.msrb.mxu2 %v865_v19  ;;  %v670_v37 = vmul.f32 %v648_v10, %v538_v43  ;;  %v518_v19 = vmax.f32 %v2071_v8, %v1823_v54  ;;  %v860_v8 = vld [vmem:[%s2627_s2 + $0x10] sm:$0xff] }
 0x15e   :  { %v841_v31 = vadd.f32 %v840_v48, %v820_v21  ;;  %v821_v48 = vmul.f32 %v2037_v20, %v2121_v25  ;;  %v862_v21 = vld [vmem:[%s2627_s2 + $0x20] sm:$0xff]  ;;  %v782_v3 = vmax.f32 %v2123_v27, %v1869_v17  ;;  %v499_v27 = vpop.permute.xlu0 %498 }
 0x15f   :  { %883 = vmatpush.msrb.mxu1 %v864_v34  ;;  %998 = vmatpush.msrb.mxu2 %v864_v34  ;;  %v408_v34 = vmax.f32 %v2079_v24, %v1815_v51  ;;  %v2215_v20 = vmul.f32 %v780_v49, %v670_v37  ;;  %v823_v24 = vmul.f32 %v2206_v15, %v2177_v22 }
 0x160   :  { %v842_v35 = vadd.f32 %v841_v31, %v821_v48  ;;  %v409_v49 = vmax.f32 %v2077_v57, %v1815_v51  ;;  %v520_v57 = vmax.f32 %v2103_v1, %v1823_v54 }
 0x161   :  { %884 = vmatpush.msrb.mxu1 %v863_v55  ;;  %999 = vmatpush.msrb.mxu2 %v863_v55  ;;  %v540_v43 = vmul.f32 %v518_v19, %v408_v34 }
 0x162   :  { %v843_v10 = vadd.f32 %v842_v35, %v822_v40  ;;  %v2217_v31 = vpop.f32.mrf.mxu2  ;;  %v858_v35 = vld [vmem:[%s2627_s2] sm:$0xff] }
 0x163   :  { %885 = vmatpush.msrb.mxu1 %v862_v21  ;;  %1000 = vmatpush.msrb.mxu2 %v862_v21  ;;  %v824_v48 = vmul.f32 %v2215_v20, %v2217_v31  ;;  %v672_v1 = vmul.f32 %v650_v46, %v540_v43 }
 0x164   :  { %v2099_v47 = vpop.permute.xlu1 %486  ;;  %v844_v40 = vadd.f32 %v843_v10, %v823_v24  ;;  %v2241_v37 = vpop.f32.mrf.mxu3  ;;  %v411_v10 = vmax.f32 %v1954_v50, %v1815_v51  ;;  %v825_v24 = vmul.f32 %v2057_v29, %v2130_v38 }
 0x165   :  { %v519_v26 = vmax.f32 %v2099_v47, %v1823_v54  ;;  %886 = vmatpush.msrb.mxu1 %v861_v42  ;;  %1001 = vmatpush.msrb.mxu2 %v861_v42  ;;  %v859_v47 = vld [vmem:[%s2627_s2 + $0x8] sm:$0xff] }
 0x166   :  { %v2144_v32 = vpop.permute.xlu2 %622 }
 0x167   :  { %887 = vmatpush.msrb.mxu1 %v860_v8  ;;  %1002 = vmatpush.msrb.mxu2 %v860_v8  ;;  %v541_v21 = vmul.f32 %v519_v26, %v409_v49  ;;  %v845_v26 = vadd.f32 %v844_v40, %v824_v48 }
 0x169   :  { %888 = vmatpush.msrb.mxu1 %v859_v47  ;;  %1003 = vmatpush.msrb.mxu2 %v859_v47  ;;  %v846_v48 = vadd.f32 %v845_v26, %v825_v24 }
 0x16b   :  { %889 = vmatpush.msrb.mxu1 %v858_v35  ;;  %1004 = vmatpush.msrb.mxu2 %v858_v35 }
 0x16c   :  { %v2266_v35 = vpop.f32.mrf.mxu3 }
 0x16d   :  { %v2115_v0 = vpop.permute.xlu1 %378 }
 0x16e   :  { %v410_v19 = vmax.f32 %v2115_v0, %v1815_v51  ;;  %v2255_v0 = vmul.f32 %v782_v3, %v672_v1  ;;  %v522_v3 = vmax.f32 %v499_v27, %v1823_v54 }
 0x16f   :  { %v2179_v23 = vpop.permute.xlu2 %388 }
 0x170   :  { %v542_v49 = vmul.f32 %v520_v57, %v410_v19 }
 0x176   :  { %v2138_v7 = vpop.permute.xlu1 %618 }
 0x177   :  { %v651_v42 = vmax.f32 %v2138_v7, %v1860_v11 }
 0x178   :  { %v755_v55 = vpop.permute.xlu2 %754 }
 0x179   :  { %v673_v8 = vmul.f32 %v651_v42, %v541_v21  ;;  %v784_v42 = vmax.f32 %v755_v55, %v1869_v17  ;;  %v826_v21 = vmul.f32 %v2255_v0, %v2158_v45 }
 0x17b   :  { %v847_v1 = vadd.f32 %v846_v48, %v826_v21 }
 0x17f   :  { %v2166_v53 = vpop.permute.xlu1 %494 }
 0x180   :  { %v521_v7 = vmax.f32 %v2166_v53, %v1823_v54  ;;  %v652_v53 = vmax.f32 %v2144_v32, %v1860_v11  ;;  %v759_v50 = vpop.permute.xlu2 %758  ;;  %v412_v32 = vmax.f32 %v2179_v23, %v1815_v51 }
 0x182   :  { %v543_v47 = vmul.f32 %v521_v7, %v411_v10  ;;  %v674_v57 = vmul.f32 %v652_v53, %v542_v49  ;;  %v785_v7 = vmax.f32 %v759_v50, %v1869_v17 }
 0x184   :  { %v2273_v55 = vmul.f32 %v784_v42, %v674_v57 }
 0x186   :  { %v828_v51 = vmul.f32 %v2273_v55, %v2241_v37 }
 0x188   :  { %v751_v13 = vpop.permute.xlu1 %750 }
 0x189   :  { %v783_v34 = vmax.f32 %v751_v13, %v1869_v17 }
 0x18b   :  { %v2259_v46 = vmul.f32 %v783_v34, %v673_v8  ;;  %v763_v34 = vpop.permute.xlu0 %762  ;;  %v544_v8 = vmul.f32 %v522_v3, %v412_v32 }
 0x18c   :  { %v786_v24 = vmax.f32 %v763_v34, %v1869_v17 }
 0x18d   :  { %v827_v19 = vmul.f32 %v2259_v46, %v2188_v63 }
 0x18f   :  { %v848_v54 = vadd.f32 %v847_v1, %v827_v19 }
 0x191   :  { %v627_v13 = vpop.permute.xlu1 %626 }
 0x192   :  { %v653_v43 = vmax.f32 %v627_v13, %v1860_v11  ;;  %v849_v13 = vadd.f32 %v848_v54, %v828_v51 }
 0x194   :  { %v675_v40 = vmul.f32 %v653_v43, %v543_v47  ;;  %v2285_v47 = vpop.f32.mrf.mxu3 }
 0x196   :  { %v2275_v10 = vmul.f32 %v785_v7, %v675_v40 }
 0x198   :  { %v829_v23 = vmul.f32 %v2275_v10, %v2266_v35 }
 0x199   :  { %v631_v26 = vpop.permute.xlu1 %630 }
 0x19a   :  { %v654_v27 = vmax.f32 %v631_v26, %v1860_v11  ;;  %v850_v50 = vadd.f32 %v849_v13, %v829_v23 }
 0x19c   :  { %v676_v53 = vmul.f32 %v654_v27, %v544_v8 }
 0x19e   :  { %v2283_v49 = vmul.f32 %v786_v24, %v676_v53 }
 0x1a0   :  { %v830_v43 = vmul.f32 %v2283_v49, %v2285_v47 }
 0x1a2   :  { %v851_v48 = vadd.f32 %v850_v50, %v830_v43 }
 0x1a4   :  { %v852_v11 = vrot.slane %v851_v48, 4 }
 0x1a6   :  { %v853_v42 = vadd.f32 %v852_v11, %v851_v48 }
 0x1a8   :  { %v854_v17 = vrot.slane %v853_v42, 2 }
 0x1aa   :  { %v855_v40 = vadd.f32 %v854_v17, %v853_v42 }
 0x1ac   :  { %v856_v21 = vrot.slane %v855_v40, 1 }
 0x1ae   :  { %v857_v3 = vadd.f32 %v856_v21, %v855_v40 }
 0x1b0   :  { %890 = vmatmul.f32.vlgmr.msrb.gmra.mxu1 %v857_v3  ;;  %v2639_v3 = vld [vmem:[#allocation5_spill] sm:$0xff] }
 0x22d   :  { %v891_v32 = vpop.f32.mrf.mxu1 }
 0x22e   :  { %v894_v57 = vmul.f32 0.001953125, %v891_v32  ;;  %v2640_v32 = vld [vmem:[#allocation2_spill] sm:$0xff] }
 0x230   :  { %v2289_v19 = vperm.slane %v894_v57, 0 }
 0x232   :  { %v896_v7 = vsub.f32 %v2060_v14, %v2289_v19  ;;  %v897_v34 = vsub.f32 %v2066_v44, %v2289_v19  ;;  %v898_v1 = vsub.f32 %v2075_v2, %v2289_v19  ;;  %v899_v54 = vsub.f32 %v2081_v60, %v2289_v19 }
 0x233   :  { %v900_v27 = vsub.f32 %v2093_v6, %v2289_v19  ;;  %v902_v60 = vsub.f32 %v2087_v4, %v2289_v19  ;;  %v903_v51 = vsub.f32 %v2105_v16, %v2289_v19  ;;  %v904_v4 = vsub.f32 %v2117_v33, %v2289_v19 }
 0x234   :  { %v2298_v26 = vmul.f32 %v896_v7, %v1880_v28  ;;  %v2301_v8 = vmul.f32 %v897_v34, %v1899_v56  ;;  %v2308_v14 = vmul.f32 %v898_v1, %v1985_v9  ;;  %v901_v28 = vsub.f32 %v2107_v62, %v2289_v19  ;;  %v2641_v34 = vld [vmem:[#allocation3_spill] sm:$0xff] }
 0x235   :  { %v2317_v56 = vmul.f32 %v899_v54, %v1885_v41  ;;  %v2322_v6 = vmul.f32 %v900_v27, %v1904_v61  ;;  %v2336_v61 = vmul.f32 %v902_v60, %v1956_v39  ;;  %v905_v16 = vsub.f32 %v2149_v18, %v2289_v19 }
 0x236   :  { %v940_v44 = vmul.f32 %v2298_v26, %v2298_v26  ;;  %v941_v2 = vmul.f32 %v2301_v8, %v2301_v8  ;;  %v942_v9 = vmul.f32 %v2308_v14, %v2308_v14  ;;  %v2329_v23 = vmul.f32 %v901_v28, %v1998_v36 }
 0x237   :  { %v943_v41 = vmul.f32 %v2317_v56, %v2317_v56  ;;  %v944_v53 = vmul.f32 %v2322_v6, %v2322_v6  ;;  %v2343_v36 = vmul.f32 %v903_v51, %v1930_v12  ;;  %v906_v33 = vsub.f32 %v2091_v5, %v2289_v19 }
 0x238   :  { %v962_v24 = vadd.f32 %v941_v2, %v940_v44  ;;  %v945_v43 = vmul.f32 %v2329_v23, %v2329_v23  ;;  %v2350_v39 = vmul.f32 %v904_v4, %v2011_v30  ;;  %v946_v48 = vmul.f32 %v2336_v61, %v2336_v61  ;;  %v2642_v44 = vld [vmem:[#allocation4_spill] sm:$0xff] }
 0x239   :  { %v907_v18 = vsub.f32 %v2109_v52, %v2289_v19  ;;  %v2357_v12 = vmul.f32 %v905_v16, %v1978_v58  ;;  %v947_v42 = vmul.f32 %v2343_v36, %v2343_v36  ;;  %v908_v5 = vsub.f32 %v2121_v25, %v2289_v19 }
 0x23a   :  { %v963_v62 = vadd.f32 %v962_v24, %v942_v9  ;;  %v2364_v30 = vmul.f32 %v906_v33, %v2033_v59  ;;  %v948_v40 = vmul.f32 %v2350_v39, %v2350_v39  ;;  %v909_v52 = vsub.f32 %v2639_v3, %v2289_v19 }
 0x23b   :  { %v2371_v58 = vmul.f32 %v907_v18, %v2640_v32  ;;  %v949_v57 = vmul.f32 %v2357_v12, %v2357_v12  ;;  %v910_v25 = vsub.f32 %v2177_v22, %v2289_v19  ;;  %v2378_v59 = vmul.f32 %v908_v5, %v2641_v34 }
 0x23c   :  { %v964_v13 = vadd.f32 %v963_v62, %v943_v41  ;;  %v950_v1 = vmul.f32 %v2364_v30, %v2364_v30  ;;  %v911_v27 = vsub.f32 %v2217_v31, %v2289_v19  ;;  %v2385_v2 = vmul.f32 %v909_v52, %v2642_v44 }
 0x23d   :  { %v951_v28 = vmul.f32 %v2371_v58, %v2371_v58  ;;  %v912_v22 = vsub.f32 %v2130_v38, %v2289_v19  ;;  %v2392_v9 = vmul.f32 %v910_v25, %v2206_v15  ;;  %v952_v24 = vmul.f32 %v2378_v59, %v2378_v59 }
 0x23e   :  { %v965_v50 = vadd.f32 %v964_v13, %v944_v53  ;;  %v913_v31 = vsub.f32 %v2158_v45, %v2289_v19  ;;  %v2399_v41 = vmul.f32 %v911_v27, %v2215_v20  ;;  %v953_v62 = vmul.f32 %v2385_v2, %v2385_v2 }
 0x23f   :  { %v914_v38 = vsub.f32 %v2188_v63, %v2289_v19  ;;  %v2406_v15 = vmul.f32 %v912_v22, %v2057_v29  ;;  %v954_v53 = vmul.f32 %v2392_v9, %v2392_v9  ;;  %v915_v45 = vsub.f32 %v2241_v37, %v2289_v19  ;;  %v1010_v22 = vld [vmem:[%s2629_s4] sm:$0x1] }
 0x240   :  { %v966_v11 = vadd.f32 %v965_v50, %v945_v43  ;;  %v2413_v20 = vmul.f32 %v913_v31, %v2255_v0  ;;  %v955_v16 = vmul.f32 %v2399_v41, %v2399_v41  ;;  %v916_v63 = vsub.f32 %v2266_v35, %v2289_v19 }
 0x241   :  { %v936_v29 = vmul.f32 %v914_v38, %v2259_v46  ;;  %v956_v50 = vmul.f32 %v2406_v15, %v2406_v15  ;;  %v937_v37 = vmul.f32 %v915_v45, %v2273_v55 }
 0x242   :  { %v967_v17 = vadd.f32 %v966_v11, %v946_v48  ;;  %v917_v48 = vsub.f32 %v2285_v47, %v2289_v19  ;;  %v957_v0 = vmul.f32 %v2413_v20, %v2413_v20  ;;  %v938_v18 = vmul.f32 %v916_v63, %v2275_v10 }
 0x243   :  { %v959_v46 = vmul.f32 %v937_v37, %v937_v37 }
 0x244   :  { %v968_v21 = vadd.f32 %v967_v17, %v947_v42  ;;  %v958_v42 = vmul.f32 %v936_v29, %v936_v29  ;;  %v939_v35 = vmul.f32 %v917_v48, %v2283_v49 }
 0x246   :  { %v969_v7 = vadd.f32 %v968_v21, %v948_v40  ;;  %v960_v40 = vmul.f32 %v938_v18, %v938_v18  ;;  %v961_v3 = vmul.f32 %v939_v35, %v939_v35 }
 0x248   :  { %v970_v54 = vadd.f32 %v969_v7, %v949_v57 }
 0x24a   :  { %v971_v60 = vadd.f32 %v970_v54, %v950_v1 }
 0x24c   :  { %v972_v51 = vadd.f32 %v971_v60, %v951_v28 }
 0x24e   :  { %v973_v4 = vadd.f32 %v972_v51, %v952_v24 }
 0x250   :  { %v974_v13 = vadd.f32 %v973_v4, %v953_v62 }
 0x252   :  { %v975_v43 = vadd.f32 %v974_v13, %v954_v53 }
 0x254   :  { %v976_v33 = vadd.f32 %v975_v43, %v955_v16  ;;  %v1529_v16 = vld [vmem:[%s2628_s5] ss:$0 sm:$0xff] }
 0x256   :  { %v977_v11 = vadd.f32 %v976_v33, %v956_v50 }
 0x258   :  { %v978_v17 = vadd.f32 %v977_v11, %v957_v0 }
 0x25a   :  { %v979_v5 = vadd.f32 %v978_v17, %v958_v42 }
 0x25c   :  { %v980_v21 = vadd.f32 %v979_v5, %v959_v46 }
 0x25e   :  { %v981_v52 = vadd.f32 %v980_v21, %v960_v40 }
 0x260   :  { %v982_v32 = vadd.f32 %v981_v52, %v961_v3 }
 0x262   :  { %v983_v47 = vrot.slane %v982_v32, 4 }
 0x264   :  { %v984_v19 = vadd.f32 %v983_v47, %v982_v32 }
 0x266   :  { %v985_v55 = vrot.slane %v984_v19, 2 }
 0x268   :  { %v986_v57 = vadd.f32 %v985_v55, %v984_v19 }
 0x26a   :  { %v987_v7 = vrot.slane %v986_v57, 1 }
 0x26c   :  { %v988_v25 = vadd.f32 %v987_v7, %v986_v57 }
 0x26e   :  { %1005 = vmatmul.f32.vlgmr.msrb.gmra.mxu2 %v988_v25 }
 0x2f1   :  { %v1006_v34 = vpop.f32.mrf.mxu2 }
 0x2f2   :  { %v1009_v10 = vmul.f32 0.001953125, %v1006_v34 }
 0x2f4   :  { %v1011_v1 = vadd.f32 1e-05, %v1009_v10 }
 0x2f6   :  { %1530 = vrsqrt.f32 %v1011_v1  ;;  %vm1018_vm11 = vweird.f32 %v1011_v1 }
 0x2fc   :  { %v1531_v54 = vpop.eup %1530 }
 0x2fd   :  { %v1013_v49 = vmul.f32 %v1531_v54, %v1011_v1  ;;  %vm1019_vm10 = vweird.f32 %v1531_v54 }
 0x2fe   :  { %vm1020_vm12 = vmor %vm1018_vm11, %vm1019_vm10 }
 0x2ff   :  { %v1014_v27 = vmul.f32 %v1531_v54, %v1013_v49 }
 0x301   :  { %v1015_v44 = vmul.f32 0.5, %v1014_v27 }
 0x303   :  { %v1016_v28 = vsub.f32 1.5, %v1015_v44 }
 0x305   :  { %v1017_v60 = vmul.f32 %v1531_v54, %v1016_v28 }
 0x307   :  { %v1021_v24 = vsel %vm1020_vm12, %v1531_v54, %v1017_v60 }
 0x308   :  { %v1022_v51 = vmul.f32 %v1021_v24, %v1010_v22 }
 0x30a   :  { %v1024_v31 = vperm.slane %v1022_v51, 0 }
 0x30c   :  { %v1026_v62 = vmul.f32 %v1024_v31, %v2298_v26  ;;  %v1027_v4 = vmul.f32 %v1024_v31, %v2301_v8  ;;  %v1028_v38 = vmul.f32 %v1024_v31, %v2308_v14  ;;  %v1029_v53 = vmul.f32 %v1024_v31, %v2317_v56 }
 0x30d   :  { %v1030_v13 = vmul.f32 %v1024_v31, %v2322_v6  ;;  %v1031_v45 = vmul.f32 %v1024_v31, %v2329_v23  ;;  %v1032_v43 = vmul.f32 %v1024_v31, %v2336_v61  ;;  %v1033_v63 = vmul.f32 %v1024_v31, %v2343_v36 }
 0x30e   :  { %v1034_v26 = vmul.f32 %v1024_v31, %v2350_v39  ;;  %v1035_v8 = vmul.f32 %v1024_v31, %v2357_v12  ;;  %v1036_v14 = vmul.f32 %v1024_v31, %v2364_v30  ;;  %v1037_v56 = vmul.f32 %v1024_v31, %v2371_v58 }
 0x30f   :  { %v1038_v6 = vmul.f32 %v1024_v31, %v2378_v59  ;;  %v1039_v23 = vmul.f32 %v1024_v31, %v2385_v2  ;;  %v1040_v50 = vmul.f32 %v1024_v31, %v2392_v9  ;;  %v1041_v33 = vmul.f32 %v1024_v31, %v2399_v41 }
 0x310   :  { %v1042_v61 = vmul.f32 %v1024_v31, %v2406_v15  ;;  %v1043_v36 = vmul.f32 %v1024_v31, %v2413_v20  ;;  %v1044_v48 = vmul.f32 %v1024_v31, %v936_v29  ;;  %v2453_v39 = vadd.f32 %v1529_v16, %v1026_v62 }
 0x311   :  { %v2455_v12 = vadd.f32 %v1529_v16, %v1027_v4  ;;  %v2457_v30 = vadd.f32 %v1529_v16, %v1028_v38  ;;  %v1045_v58 = vmul.f32 %v1024_v31, %v937_v37  ;;  %v1046_v0 = vmul.f32 %v1024_v31, %v938_v18 }
 0x312   :  { %v1047_v59 = vmul.f32 %v1024_v31, %v939_v35  ;;  %v2459_v11 = vadd.f32 %v1529_v16, %v1029_v53  ;;  %v2461_v2 = vadd.f32 %v1529_v16, %v1030_v13  ;;  %v2463_v9 = vadd.f32 %v1529_v16, %v1031_v45 }
 0x313   :  { %v2465_v41 = vadd.f32 %v1529_v16, %v1032_v43  ;;  %v2467_v15 = vadd.f32 %v1529_v16, %v1033_v63  ;;  %v2469_v20 = vadd.f32 %v1529_v16, %v1034_v26  ;;  %v2471_v29 = vadd.f32 %v1529_v16, %v1035_v8 }
 0x314   :  { %v2473_v42 = vadd.f32 %v1529_v16, %v1036_v14  ;;  %v2475_v17 = vadd.f32 %v1529_v16, %v1037_v56  ;;  %v2477_v37 = vadd.f32 %v1529_v16, %v1038_v6  ;;  %v1096_v18 = vmin.f32 %v2453_v39, 0.0 }
 0x315   :  { %v1097_v35 = vmin.f32 %v2455_v12, 0.0  ;;  %v1098_v46 = vmin.f32 %v2457_v30, 0.0  ;;  %v2482_v5 = vadd.f32 %v1529_v16, %v1039_v23  ;;  %v2484_v40 = vadd.f32 %v1529_v16, %v1040_v50 }
 0x316   :  { %v2486_v21 = vadd.f32 %v1529_v16, %v1041_v33  ;;  %v1099_v3 = vmin.f32 %v2459_v11, 0.0  ;;  %v2489_v52 = vadd.f32 %v1529_v16, %v1042_v61  ;;  %v2491_v32 = vadd.f32 %v1529_v16, %v1043_v36 }
 0x317   :  { %v2493_v47 = vadd.f32 %v1529_v16, %v1044_v48  ;;  %v1100_v19 = vmin.f32 %v2461_v2, 0.0  ;;  %v2496_v55 = vadd.f32 %v1529_v16, %v1045_v58  ;;  %v2498_v57 = vadd.f32 %v1529_v16, %v1046_v0 }
 0x318   :  { %v1101_v7 = vmin.f32 %v2463_v9, 0.0  ;;  %v1102_v25 = vmin.f32 %v2465_v41, 0.0  ;;  %v2502_v34 = vadd.f32 %v1529_v16, %v1047_v59  ;;  %v1118_v10 = vmul.f32 1.442695, %v1096_v18 }
 0x319   :  { %v1120_v1 = vmul.f32 1.442695, %v1097_v35  ;;  %v1122_v54 = vmul.f32 1.442695, %v1098_v46  ;;  %v1103_v49 = vmin.f32 %v2467_v15, 0.0  ;;  %v1104_v27 = vmin.f32 %v2469_v20, 0.0 }
 0x31a   :  { %v1105_v44 = vmin.f32 %v2471_v29, 0.0  ;;  %v1124_v28 = vmul.f32 1.442695, %v1099_v3  ;;  %vm1074_vm13 = vcmp.gt.f32.partialorder %v2453_v39, 0.0  ;;  %v1106_v60 = vmin.f32 %v2473_v42, 0.0 }
 0x31b   :  { %v1107_v22 = vmin.f32 %v2475_v17, 0.0  ;;  %1532 = vpow2.f32 %v1118_v10  ;;  %v1126_v24 = vmul.f32 1.442695, %v1100_v19  ;;  %vm1075_vm14 = vcmp.gt.f32.partialorder %v2455_v12, 0.0 }
 0x31c   :  { %v1108_v51 = vmin.f32 %v2477_v37, 0.0  ;;  %v1109_v31 = vmin.f32 %v2482_v5, 0.0  ;;  %1534 = vpow2.f32 %v1120_v1  ;;  %v1128_v62 = vmul.f32 1.442695, %v1101_v7 }
 0x31d   :  { %vm1076_vm15 = vcmp.gt.f32.partialorder %v2457_v30, 0.0  ;;  %v1110_v4 = vmin.f32 %v2484_v40, 0.0  ;;  %v1111_v38 = vmin.f32 %v2486_v21, 0.0  ;;  %1536 = vpow2.f32 %v1122_v54 }
 0x31e   :  { %v1130_v53 = vmul.f32 1.442695, %v1102_v25  ;;  %vm1077_vm0 = vcmp.gt.f32.partialorder %v2459_v11, 0.0  ;;  %v1112_v13 = vmin.f32 %v2489_v52, 0.0  ;;  %v1113_v45 = vmin.f32 %v2491_v32, 0.0 }
 0x31f   :  { %1538 = vpow2.f32 %v1124_v28  ;;  %v1132_v16 = vmul.f32 1.442695, %v1103_v49  ;;  %vm1078_vm1 = vcmp.gt.f32.partialorder %v2461_v2, 0.0  ;;  %v1114_v43 = vmin.f32 %v2493_v47, 0.0 }
 0x320   :  { %v1115_v63 = vmin.f32 %v2496_v55, 0.0  ;;  %1540 = vpow2.f32 %v1126_v24  ;;  %v1134_v26 = vmul.f32 1.442695, %v1104_v27  ;;  %vm1079_vm2 = vcmp.gt.f32.partialorder %v2463_v9, 0.0 }
 0x321   :  { %v1116_v8 = vmin.f32 %v2498_v57, 0.0  ;;  %v1117_v14 = vmin.f32 %v2502_v34, 0.0  ;;  %1542 = vpow2.f32 %v1128_v62  ;;  %v1136_v56 = vmul.f32 1.442695, %v1105_v44  ;;  %v1533_v6 = vpop.eup %1532 }
 0x322   :  { %vm1080_vm3 = vcmp.gt.f32.partialorder %v2465_v41, 0.0  ;;  %1544 = vpow2.f32 %v1130_v53  ;;  %v1138_v23 = vmul.f32 1.442695, %v1106_v60  ;;  %v1140_v50 = vmul.f32 1.442695, %v1107_v22  ;;  %v1535_v61 = vpop.eup %1534 }
 0x323   :  { %v1142_v33 = vmul.f32 1.442695, %v1108_v51  ;;  %vm1081_vm4 = vcmp.gt.f32.partialorder %v2467_v15, 0.0  ;;  %1546 = vpow2.f32 %v1132_v16  ;;  %v1144_v36 = vmul.f32 1.442695, %v1109_v31  ;;  %v1537_v0 = vpop.eup %1536 }
 0x324   :  { %v1146_v48 = vmul.f32 1.442695, %v1110_v4  ;;  %v1334_v58 = vadd.f32 -1.0, %v1533_v6  ;;  %vm1082_vm5 = vcmp.gt.f32.partialorder %v2469_v20, 0.0  ;;  %1548 = vpow2.f32 %v1134_v26 }
 0x325   :  { %v1148_v59 = vmul.f32 1.442695, %v1111_v38  ;;  %v1150_v18 = vmul.f32 1.442695, %v1112_v13  ;;  %v1335_v35 = vadd.f32 -1.0, %v1535_v61  ;;  %v1539_v46 = vpop.eup %1538  ;;  %vm1083_vm6 = vcmp.gt.f32.partialorder %v2471_v29, 0.0 }
 0x326   :  { %1550 = vpow2.f32 %v1136_v56  ;;  %v1152_v3 = vmul.f32 1.442695, %v1113_v45  ;;  %v1336_v19 = vadd.f32 -1.0, %v1537_v0  ;;  %v1184_v7 = vsel %vm1074_vm13, %v2453_v39, %v1334_v58  ;;  %v1541_v25 = vpop.eup %1540 }
 0x327   :  { %vm1084_vm7 = vcmp.gt.f32.partialorder %v2473_v42, 0.0  ;;  %1552 = vpow2.f32 %v1138_v23  ;;  %v1154_v10 = vmul.f32 1.442695, %v1114_v43  ;;  %v1337_v1 = vadd.f32 -1.0, %v1539_v46  ;;  %v1543_v49 = vpop.eup %1542 }
 0x328   :  { %v1185_v54 = vsel %vm1075_vm14, %v2455_v12, %v1335_v35  ;;  %vm1085_vm8 = vcmp.gt.f32.partialorder %v2475_v17, 0.0  ;;  %1554 = vpow2.f32 %v1140_v50  ;;  %v1338_v27 = vadd.f32 -1.0, %v1541_v25  ;;  %v1545_v28 = vpop.eup %1544 }
 0x329   :  { %v1186_v44 = vsel %vm1076_vm15, %v2457_v30, %v1336_v19  ;;  %v1378_v39 = vpack.c.bf16 %v1185_v54, %v1184_v7  ;;  %1556 = vpow2.f32 %v1142_v33  ;;  %v1156_v60 = vmul.f32 1.442695, %v1115_v63  ;;  %v1547_v51 = vpop.eup %1546 }
 0x32a   :  { %v1339_v22 = vadd.f32 -1.0, %v1543_v49  ;;  %v1187_v24 = vsel %vm1077_vm0, %v2459_v11, %v1337_v1  ;;  %1558 = vpow2.f32 %v1144_v36  ;;  %v1340_v12 = vadd.f32 -1.0, %v1545_v28  ;;  %v1549_v62 = vpop.eup %1548 }
 0x32b   :  { %v1188_v31 = vsel %vm1078_vm1, %v2461_v2, %v1338_v27  ;;  %1379 = vst [vmem:[%s2630_s6] sm:$0xff] %v1378_v39   ;;  %v1383_v30 = vpack.c.bf16 %v1187_v24, %v1186_v44  ;;  %1560 = vpow2.f32 %v1146_v48  ;;  %v1158_v4 = vmul.f32 1.442695, %v1116_v8 }
 0x32c   :  { %v1341_v38 = vadd.f32 -1.0, %v1547_v51  ;;  %v1189_v11 = vsel %vm1079_vm2, %v2463_v9, %v1339_v22  ;;  %v1551_v53 = vpop.eup %1550  ;;  %1562 = vpow2.f32 %v1148_v59  ;;  %v1342_v13 = vadd.f32 -1.0, %v1549_v62 }
 0x32d   :  { %v1190_v2 = vsel %vm1080_vm3, %v2465_v41, %v1340_v12  ;;  %1430 = vst [vmem:[%s2630_s6 + $0x8] sm:$0xff] %v1383_v30   ;;  %v1388_v45 = vpack.c.bf16 %v1189_v11, %v1188_v31  ;;  %v1553_v16 = vpop.eup %1552  ;;  %1564 = vpow2.f32 %v1150_v18  ;;  %v1160_v43 = vmul.f32 1.442695, %v1117_v14 }
 0x32e   :  { %v1343_v63 = vadd.f32 -1.0, %v1551_v53  ;;  %v1191_v9 = vsel %vm1081_vm4, %v2467_v15, %v1341_v38  ;;  %v1555_v26 = vpop.eup %1554  ;;  %1566 = vpow2.f32 %v1152_v3  ;;  %v1344_v8 = vadd.f32 -1.0, %v1553_v16 }
 0x32f   :  { %v1192_v41 = vsel %vm1082_vm5, %v2469_v20, %v1342_v13  ;;  %1431 = vst [vmem:[%s2630_s6 + $0x10] sm:$0xff] %v1388_v45   ;;  %v1393_v56 = vpack.c.bf16 %v1191_v9, %v1190_v2  ;;  %v1557_v6 = vpop.eup %1556  ;;  %vm1086_vm9 = vcmp.gt.f32.partialorder %v2477_v37, 0.0  ;;  %1568 = vpow2.f32 %v1154_v10 }
 0x330   :  { %v1345_v14 = vadd.f32 -1.0, %v1555_v26  ;;  %v1193_v15 = vsel %vm1083_vm6, %v2471_v29, %v1343_v63  ;;  %v1559_v23 = vpop.eup %1558  ;;  %1570 = vpow2.f32 %v1156_v60  ;;  %v1346_v50 = vadd.f32 -1.0, %v1557_v6 }
 0x331   :  { %v1194_v20 = vsel %vm1084_vm7, %v2473_v42, %v1344_v8  ;;  %1432 = vst [vmem:[%s2630_s6 + $0x18] sm:$0xff] %v1393_v56   ;;  %v1398_v33 = vpack.c.bf16 %v1193_v15, %v1192_v41  ;;  %v1561_v61 = vpop.eup %1560  ;;  %vm1087_vm10 = vcmp.gt.f32.partialorder %v2482_v5, 0.0  ;;  %1572 = vpow2.f32 %v1158_v4 }
 0x332   :  { %v1347_v36 = vadd.f32 -1.0, %v1559_v23  ;;  %v1195_v29 = vsel %vm1085_vm8, %v2475_v17, %v1345_v14  ;;  %v1563_v48 = vpop.eup %1562  ;;  %1574 = vpow2.f32 %v1160_v43  ;;  %v1348_v58 = vadd.f32 -1.0, %v1561_v61 }
 0x333   :  { %v1196_v42 = vsel %vm1086_vm9, %v2477_v37, %v1346_v50  ;;  %1433 = vst [vmem:[%s2630_s6 + $0x20] sm:$0xff] %v1398_v33   ;;  %v1403_v0 = vpack.c.bf16 %v1195_v29, %v1194_v20  ;;  %v1565_v59 = vpop.eup %1564  ;;  %vm1088_vm11 = vcmp.gt.f32.partialorder %v2484_v40, 0.0  ;;  %v1349_v18 = vadd.f32 -1.0, %v1563_v48 }
 0x334   :  { %v1197_v35 = vsel %vm1087_vm10, %v2482_v5, %v1347_v36  ;;  %v1567_v46 = vpop.eup %1566  ;;  %vm1089_vm12 = vcmp.gt.f32.partialorder %v2486_v21, 0.0  ;;  %v1350_v17 = vadd.f32 -1.0, %v1565_v59  ;;  %v1198_v3 = vsel %vm1088_vm11, %v2484_v40, %v1348_v58 }
 0x335   :  { %1434 = vst [vmem:[%s2630_s6 + $0x28] sm:$0xff] %v1403_v0   ;;  %v1408_v37 = vpack.c.bf16 %v1197_v35, %v1196_v42  ;;  %v1569_v19 = vpop.eup %1568  ;;  %vm1090_vm13 = vcmp.gt.f32.partialorder %v2489_v52, 0.0  ;;  %v1351_v7 = vadd.f32 -1.0, %v1567_v46  ;;  %v1199_v25 = vsel %vm1089_vm12, %v2486_v21, %v1349_v18 }
 0x336   :  { %v1571_v10 = vpop.eup %1570  ;;  %vm1091_vm14 = vcmp.gt.f32.partialorder %v2491_v32, 0.0  ;;  %v1352_v5 = vadd.f32 -1.0, %v1569_v19  ;;  %v1200_v1 = vsel %vm1090_vm13, %v2489_v52, %v1350_v17  ;;  %v1413_v40 = vpack.c.bf16 %v1199_v25, %v1198_v3 }
 0x337   :  { %1435 = vst [vmem:[%s2630_s6 + $0x30] sm:$0xff] %v1408_v37   ;;  %v1573_v54 = vpop.eup %1572  ;;  %vm1092_vm15 = vcmp.gt.f32.partialorder %v2493_v47, 0.0  ;;  %v1353_v49 = vadd.f32 -1.0, %v1571_v10  ;;  %v1201_v27 = vsel %vm1091_vm14, %v2491_v32, %v1351_v7  ;;  %vm1093_vm0 = vcmp.gt.f32.partialorder %v2496_v55, 0.0 }
 0x338   :  { %v1575_v44 = vpop.eup %1574  ;;  %v1354_v21 = vadd.f32 -1.0, %v1573_v54  ;;  %v1202_v39 = vsel %vm1092_vm15, %v2493_v47, %v1352_v5  ;;  %1436 = vst [vmem:[%s2630_s6 + $0x38] sm:$0xff] %v1413_v40   ;;  %v1418_v52 = vpack.c.bf16 %v1201_v27, %v1200_v1  ;;  %vm1094_vm1 = vcmp.gt.f32.partialorder %v2498_v57, 0.0 }
 0x339   :  { %v1355_v28 = vadd.f32 -1.0, %v1575_v44  ;;  %v1203_v60 = vsel %vm1093_vm0, %v2496_v55, %v1353_v49  ;;  %vm1095_vm2 = vcmp.gt.f32.partialorder %v2502_v34, 0.0 }
 0x33a   :  { %v1204_v32 = vsel %vm1094_vm1, %v2498_v57, %v1354_v21  ;;  %1437 = vst [vmem:[%s2630_s6 + $0x40] sm:$0xff] %v1418_v52   ;;  %v1423_v22 = vpack.c.bf16 %v1203_v60, %v1202_v39 }
 0x33b   :  { %v1205_v47 = vsel %vm1095_vm2, %v2502_v34, %v1355_v28 }
 0x33c   :  { %1438 = vst [vmem:[%s2630_s6 + $0x48] sm:$0xff] %v1423_v22   ;;  %v1428_v24 = vpack.c.bf16 %v1205_v47, %v1204_v32 }
 0x33e   :  { %1439 = vst [vmem:[%s2630_s6 + $0x50] sm:$0xff] %v1428_v24  }

// kernel: gang_forward.7
= control target key start
LH: loop header
LB: loop body
LE: loop exit
PB: predicated region body
PF: predicated region fallthrough
CT: control target
= control target key end

     0   :  { %vm303_vm0 = vcmask 523264   ;;  %s1560_s1 = inlined_call_operand.vmem [shape: bf16[64,128], index: 1, kind: input, shape index: {}]   ;;  %s1561_s0 = inlined_call_operand.vmem [shape: bf16[592,64], index: 0, kind: input, shape index: {}]   ;;  %s1562_s2 = inlined_call_operand.vmem [shape: f32[592,128], index: 2, kind: output, shape index: {}]  }
   0x1   :  { %v1002_v0 = vld [vmem:[%s1560_s1 + $0x18] sm:$0xff]  ;;  %v1001_v1 = vld [vmem:[%s1560_s1 + $0x10] sm:$0xff]  ;;  %v1000_v2 = vld [vmem:[%s1560_s1 + $0x8] sm:$0xff] }
   0x2   :  { %1004 = vmatpush.bf16.msra.mxu2 %v1002_v0  ;;  %1005 = vmatpush.bf16.msra.mxu3 %v1002_v0  ;;  %v999_v3 = vld [vmem:[%s1560_s1] sm:$0xff]  ;;  %v980_v4 = vld [vmem:[%s1561_s0 + $0x90] sm:$0xff]  ;;  %v971_v7 = vld [vmem:[%s1561_s0 + $0x48] sm:$0xff] }
   0x3   :  { %419 = vmatpush.bf16.msra.mxu0 %v1002_v0  ;;  %1003 = vmatpush.bf16.msra.mxu1 %v1002_v0  ;;  %v990_v5 = vld [vmem:[%s1561_s0 + $0xe0] sm:$0xff]  ;;  %v981_v8 = vld [vmem:[%s1561_s0 + $0x98] sm:$0xff]  ;;  %v991_v9 = vld [vmem:[%s1561_s0 + $0xe8] sm:$0xff] }
   0x4   :  { %v962_v6 = vld [vmem:[%s1561_s0] sm:$0xff]  ;;  %v963_v10 = vld [vmem:[%s1561_s0 + $0x8] sm:$0xff]  ;;  %v972_v11 = vld [vmem:[%s1561_s0 + $0x50] sm:$0xff] }
   0x5   :  { %v982_v12 = vld [vmem:[%s1561_s0 + $0xa0] sm:$0xff]  ;;  %v992_v13 = vld [vmem:[%s1561_s0 + $0xf0] sm:$0xff]  ;;  %v973_v15 = vld [vmem:[%s1561_s0 + $0x58] sm:$0xff] }
   0x6   :  { %1007 = vmatpush.bf16.msra.mxu2 %v1001_v1  ;;  %1008 = vmatpush.bf16.msra.mxu3 %v1001_v1  ;;  %v964_v14 = vld [vmem:[%s1561_s0 + $0x10] sm:$0xff]  ;;  %v983_v16 = vld [vmem:[%s1561_s0 + $0xa8] sm:$0xff]  ;;  %v993_v17 = vld [vmem:[%s1561_s0 + $0xf8] sm:$0xff] }
   0x7   :  { %420 = vmatpush.bf16.msra.mxu0 %v1001_v1  ;;  %1006 = vmatpush.bf16.msra.mxu1 %v1001_v1  ;;  %v965_v18 = vld [vmem:[%s1561_s0 + $0x18] sm:$0xff]  ;;  %v974_v19 = vld [vmem:[%s1561_s0 + $0x60] sm:$0xff]  ;;  %v984_v20 = vld [vmem:[%s1561_s0 + $0xb0] sm:$0xff] }
   0x8   :  { %v994_v21 = vld [vmem:[%s1561_s0 + $0x100] sm:$0xff]  ;;  %v975_v23 = vld [vmem:[%s1561_s0 + $0x68] sm:$0xff]  ;;  %v985_v24 = vld [vmem:[%s1561_s0 + $0xb8] sm:$0xff] }
   0x9   :  { %v966_v22 = vld [vmem:[%s1561_s0 + $0x20] sm:$0xff]  ;;  %v995_v25 = vld [vmem:[%s1561_s0 + $0x108] sm:$0xff]  ;;  %v976_v27 = vld [vmem:[%s1561_s0 + $0x70] sm:$0xff] }
   0xa   :  { %1010 = vmatpush.bf16.msra.mxu2 %v1000_v2  ;;  %1011 = vmatpush.bf16.msra.mxu3 %v1000_v2  ;;  %v967_v26 = vld [vmem:[%s1561_s0 + $0x28] sm:$0xff]  ;;  %v986_v28 = vld [vmem:[%s1561_s0 + $0xc0] sm:$0xff]  ;;  %v996_v29 = vld [vmem:[%s1561_s0 + $0x110] sm:$0xff] }
   0xb   :  { %421 = vmatpush.bf16.msra.mxu0 %v1000_v2  ;;  %1009 = vmatpush.bf16.msra.mxu1 %v1000_v2  ;;  %v968_v30 = vld [vmem:[%s1561_s0 + $0x30] sm:$0xff]  ;;  %v977_v31 = vld [vmem:[%s1561_s0 + $0x78] sm:$0xff]  ;;  %v987_v32 = vld [vmem:[%s1561_s0 + $0xc8] sm:$0xff] }
   0xc   :  { %v997_v33 = vld [vmem:[%s1561_s0 + $0x118] sm:$0xff]  ;;  %v978_v35 = vld [vmem:[%s1561_s0 + $0x80] sm:$0xff]  ;;  %v988_v36 = vld [vmem:[%s1561_s0 + $0xd0] sm:$0xff] }
   0xd   :  { %v969_v34 = vld [vmem:[%s1561_s0 + $0x38] sm:$0xff]  ;;  %v998_v37 = vld [vmem:[%s1561_s0 + $0x120] sm:$0xff]  ;;  %v979_v39 = vld [vmem:[%s1561_s0 + $0x88] sm:$0xff] }
   0xe   :  { %1013 = vmatpush.bf16.msra.mxu2 %v999_v3  ;;  %1014 = vmatpush.bf16.msra.mxu3 %v999_v3  ;;  %v970_v38 = vld [vmem:[%s1561_s0 + $0x40] sm:$0xff]  ;;  %v989_v52 = vld [vmem:[%s1561_s0 + $0xd8] sm:$0xff] }
   0xf   :  { %422 = vmatpush.bf16.msra.mxu0 %v999_v3  ;;  %1012 = vmatpush.bf16.msra.mxu1 %v999_v3 }
  0x11   :  { %943 = vmatmul.msk.bf16.vlgmr.msra.gmra.mxu2 %vm303_vm0, %v980_v4  ;;  %953 = vmatmul.msk.bf16.vlgmr.msra.gmra.mxu3 %vm303_vm0, %v990_v5 }
  0x12   :  { %925 = vmatmul.msk.bf16.vlgmr.msra.gmra.mxu0 %vm303_vm0, %v962_v6  ;;  %934 = vmatmul.msk.bf16.vlgmr.msra.gmra.mxu1 %vm303_vm0, %v971_v7 }
  0x21   :  { %944 = vmatmul.msk.bf16.gmra.mxu2 %vm303_vm0, %v981_v8  ;;  %954 = vmatmul.msk.bf16.gmra.mxu3 %vm303_vm0, %v991_v9 }
  0x22   :  { %926 = vmatmul.msk.bf16.gmra.mxu0 %vm303_vm0, %v963_v10  ;;  %935 = vmatmul.msk.bf16.gmra.mxu1 %vm303_vm0, %v972_v11 }
  0x31   :  { %945 = vmatmul.msk.bf16.gmra.mxu2 %vm303_vm0, %v982_v12  ;;  %955 = vmatmul.msk.bf16.gmra.mxu3 %vm303_vm0, %v992_v13 }
  0x32   :  { %927 = vmatmul.msk.bf16.gmra.mxu0 %vm303_vm0, %v964_v14  ;;  %936 = vmatmul.msk.bf16.gmra.mxu1 %vm303_vm0, %v973_v15 }
  0x41   :  { %946 = vmatmul.msk.bf16.gmra.mxu2 %vm303_vm0, %v983_v16  ;;  %956 = vmatmul.msk.bf16.gmra.mxu3 %vm303_vm0, %v993_v17 }
  0x42   :  { %928 = vmatmul.msk.bf16.gmra.mxu0 %vm303_vm0, %v965_v18  ;;  %937 = vmatmul.msk.bf16.gmra.mxu1 %vm303_vm0, %v974_v19 }
  0x51   :  { %947 = vmatmul.msk.bf16.gmra.mxu2 %vm303_vm0, %v984_v20  ;;  %957 = vmatmul.msk.bf16.gmra.mxu3 %vm303_vm0, %v994_v21 }
  0x52   :  { %929 = vmatmul.msk.bf16.gmra.mxu0 %vm303_vm0, %v966_v22  ;;  %938 = vmatmul.msk.bf16.gmra.mxu1 %vm303_vm0, %v975_v23 }
  0x61   :  { %948 = vmatmul.msk.bf16.gmra.mxu2 %vm303_vm0, %v985_v24  ;;  %958 = vmatmul.msk.bf16.gmra.mxu3 %vm303_vm0, %v995_v25 }
  0x62   :  { %930 = vmatmul.msk.bf16.gmra.mxu0 %vm303_vm0, %v967_v26  ;;  %939 = vmatmul.msk.bf16.gmra.mxu1 %vm303_vm0, %v976_v27 }
  0x71   :  { %949 = vmatmul.msk.bf16.gmra.mxu2 %vm303_vm0, %v986_v28  ;;  %959 = vmatmul.msk.bf16.gmra.mxu3 %vm303_vm0, %v996_v29 }
  0x72   :  { %931 = vmatmul.msk.bf16.gmra.mxu0 %vm303_vm0, %v968_v30  ;;  %940 = vmatmul.msk.bf16.gmra.mxu1 %vm303_vm0, %v977_v31 }
  0x81   :  { %950 = vmatmul.msk.bf16.gmra.mxu2 %vm303_vm0, %v987_v32  ;;  %960 = vmatmul.msk.bf16.gmra.mxu3 %vm303_vm0, %v997_v33 }
  0x82   :  { %932 = vmatmul.msk.bf16.gmra.mxu0 %vm303_vm0, %v969_v34  ;;  %941 = vmatmul.msk.bf16.gmra.mxu1 %vm303_vm0, %v978_v35 }
  0x8f   :  { %v424_v40 = vpop.f32.mrf.mxu0  ;;  %v469_v41 = vpop.f32.mrf.mxu1 }
  0x90   :  { %1015 = vtanh.f32 %v424_v40 }
  0x91   :  { %951 = vmatmul.msk.bf16.gmra.mxu2 %vm303_vm0, %v988_v36  ;;  %961 = vmatmul.msk.bf16.gmra.mxu3 %vm303_vm0, %v998_v37  ;;  %1017 = vtanh.f32 %v469_v41 }
  0x92   :  { %933 = vmatmul.msk.bf16.gmra.mxu0 %vm303_vm0, %v970_v38  ;;  %942 = vmatmul.msk.bf16.gmra.mxu1 %vm303_vm0, %v979_v39 }
  0x94   :  { %v514_v42 = vpop.f32.mrf.mxu2  ;;  %v564_v43 = vpop.f32.mrf.mxu3 }
  0x95   :  { %1019 = vtanh.f32 %v514_v42 }
  0x96   :  { %v1016_v44 = vpop.eup %1015  ;;  %1021 = vtanh.f32 %v564_v43 }
  0x97   :  { %v1018_v45 = vpop.eup %1017  ;;  %683 = vst [vmem:[%s1562_s2] sm:$0xff] %v1016_v44  ;;  %v426_v46 = vpop.f32.mrf.mxu0 }
  0x98   :  { %v471_v47 = vpop.f32.mrf.mxu1  ;;  %701 = vst [vmem:[%s1562_s2 + $0x90] sm:$0xff] %v1018_v45  ;;  %1023 = vtanh.f32 %v426_v46 }
  0x99   :  { %1025 = vtanh.f32 %v471_v47 }
  0x9b   :  { %v1020_v48 = vpop.eup %1019 }
  0x9c   :  { %v1022_v49 = vpop.eup %1021  ;;  %719 = vst [vmem:[%s1562_s2 + $0x120] sm:$0xff] %v1020_v48  ;;  %v516_v50 = vpop.f32.mrf.mxu2 }
  0x9d   :  { %v566_v51 = vpop.f32.mrf.mxu3  ;;  %1027 = vtanh.f32 %v516_v50  ;;  %739 = vst [vmem:[%s1562_s2 + $0x1c0] sm:$0xff] %v1022_v49 }
  0x9e   :  { %v1024_v53 = vpop.eup %1023  ;;  %1029 = vtanh.f32 %v566_v51 }
  0x9f   :  { %v1026_v54 = vpop.eup %1025  ;;  %684 = vst [vmem:[%s1562_s2 + $0x8] sm:$0xff] %v1024_v53  ;;  %v429_v55 = vpop.f32.mrf.mxu0 }
  0xa0   :  { %v474_v56 = vpop.f32.mrf.mxu1  ;;  %702 = vst [vmem:[%s1562_s2 + $0x98] sm:$0xff] %v1026_v54  ;;  %1031 = vtanh.f32 %v429_v55 }
  0xa1   :  { %952 = vmatmul.msk.bf16.gmra.mxu2 %vm303_vm0, %v989_v52  ;;  %1033 = vtanh.f32 %v474_v56 }
  0xa3   :  { %v1028_v57 = vpop.eup %1027 }
  0xa4   :  { %v1030_v58 = vpop.eup %1029  ;;  %720 = vst [vmem:[%s1562_s2 + $0x128] sm:$0xff] %v1028_v57  ;;  %v519_v59 = vpop.f32.mrf.mxu2 }
  0xa5   :  { %v569_v60 = vpop.f32.mrf.mxu3  ;;  %1035 = vtanh.f32 %v519_v59  ;;  %740 = vst [vmem:[%s1562_s2 + $0x1c8] sm:$0xff] %v1030_v58 }
  0xa6   :  { %v1032_v61 = vpop.eup %1031  ;;  %1037 = vtanh.f32 %v569_v60 }
  0xa7   :  { %v1034_v62 = vpop.eup %1033  ;;  %685 = vst [vmem:[%s1562_s2 + $0x10] sm:$0xff] %v1032_v61  ;;  %v431_v63 = vpop.f32.mrf.mxu0 }
  0xa8   :  { %v476_v0 = vpop.f32.mrf.mxu1  ;;  %703 = vst [vmem:[%s1562_s2 + $0xa0] sm:$0xff] %v1034_v62  ;;  %1039 = vtanh.f32 %v431_v63 }
  0xa9   :  { %1041 = vtanh.f32 %v476_v0 }
  0xab   :  { %v1036_v1 = vpop.eup %1035 }
  0xac   :  { %v1038_v2 = vpop.eup %1037  ;;  %721 = vst [vmem:[%s1562_s2 + $0x130] sm:$0xff] %v1036_v1  ;;  %v521_v3 = vpop.f32.mrf.mxu2 }
  0xad   :  { %v571_v4 = vpop.f32.mrf.mxu3  ;;  %1043 = vtanh.f32 %v521_v3  ;;  %741 = vst [vmem:[%s1562_s2 + $0x1d0] sm:$0xff] %v1038_v2 }
  0xae   :  { %v1040_v5 = vpop.eup %1039  ;;  %1045 = vtanh.f32 %v571_v4 }
  0xaf   :  { %v1042_v6 = vpop.eup %1041  ;;  %686 = vst [vmem:[%s1562_s2 + $0x18] sm:$0xff] %v1040_v5  ;;  %v434_v7 = vpop.f32.mrf.mxu0 }
  0xb0   :  { %v479_v8 = vpop.f32.mrf.mxu1  ;;  %704 = vst [vmem:[%s1562_s2 + $0xa8] sm:$0xff] %v1042_v6  ;;  %1047 = vtanh.f32 %v434_v7 }
  0xb1   :  { %1049 = vtanh.f32 %v479_v8 }
  0xb3   :  { %v1044_v9 = vpop.eup %1043 }
  0xb4   :  { %v1046_v10 = vpop.eup %1045  ;;  %722 = vst [vmem:[%s1562_s2 + $0x138] sm:$0xff] %v1044_v9  ;;  %v524_v11 = vpop.f32.mrf.mxu2 }
  0xb5   :  { %v574_v12 = vpop.f32.mrf.mxu3  ;;  %1051 = vtanh.f32 %v524_v11  ;;  %742 = vst [vmem:[%s1562_s2 + $0x1d8] sm:$0xff] %v1046_v10 }
  0xb6   :  { %v1048_v13 = vpop.eup %1047  ;;  %1053 = vtanh.f32 %v574_v12 }
  0xb7   :  { %v1050_v14 = vpop.eup %1049  ;;  %687 = vst [vmem:[%s1562_s2 + $0x20] sm:$0xff] %v1048_v13  ;;  %v436_v15 = vpop.f32.mrf.mxu0 }
  0xb8   :  { %v481_v16 = vpop.f32.mrf.mxu1  ;;  %705 = vst [vmem:[%s1562_s2 + $0xb0] sm:$0xff] %v1050_v14  ;;  %1055 = vtanh.f32 %v436_v15 }
  0xb9   :  { %1057 = vtanh.f32 %v481_v16 }
  0xbb   :  { %v1052_v17 = vpop.eup %1051 }
  0xbc   :  { %v1054_v18 = vpop.eup %1053  ;;  %723 = vst [vmem:[%s1562_s2 + $0x140] sm:$0xff] %v1052_v17  ;;  %v526_v19 = vpop.f32.mrf.mxu2 }
  0xbd   :  { %v576_v20 = vpop.f32.mrf.mxu3  ;;  %1059 = vtanh.f32 %v526_v19  ;;  %743 = vst [vmem:[%s1562_s2 + $0x1e0] sm:$0xff] %v1054_v18 }
  0xbe   :  { %v1056_v21 = vpop.eup %1055  ;;  %1061 = vtanh.f32 %v576_v20 }
  0xbf   :  { %v1058_v22 = vpop.eup %1057  ;;  %688 = vst [vmem:[%s1562_s2 + $0x28] sm:$0xff] %v1056_v21  ;;  %v439_v23 = vpop.f32.mrf.mxu0 }
  0xc0   :  { %v484_v24 = vpop.f32.mrf.mxu1  ;;  %706 = vst [vmem:[%s1562_s2 + $0xb8] sm:$0xff] %v1058_v22  ;;  %1063 = vtanh.f32 %v439_v23 }
  0xc1   :  { %1065 = vtanh.f32 %v484_v24 }
  0xc3   :  { %v1060_v25 = vpop.eup %1059 }
  0xc4   :  { %v1062_v26 = vpop.eup %1061  ;;  %724 = vst [vmem:[%s1562_s2 + $0x148] sm:$0xff] %v1060_v25  ;;  %v529_v27 = vpop.f32.mrf.mxu2 }
  0xc5   :  { %v579_v28 = vpop.f32.mrf.mxu3  ;;  %1067 = vtanh.f32 %v529_v27  ;;  %744 = vst [vmem:[%s1562_s2 + $0x1e8] sm:$0xff] %v1062_v26 }
  0xc6   :  { %v1064_v29 = vpop.eup %1063  ;;  %1069 = vtanh.f32 %v579_v28 }
  0xc7   :  { %v1066_v30 = vpop.eup %1065  ;;  %689 = vst [vmem:[%s1562_s2 + $0x30] sm:$0xff] %v1064_v29  ;;  %v441_v31 = vpop.f32.mrf.mxu0 }
  0xc8   :  { %v486_v32 = vpop.f32.mrf.mxu1  ;;  %707 = vst [vmem:[%s1562_s2 + $0xc0] sm:$0xff] %v1066_v30  ;;  %1071 = vtanh.f32 %v441_v31 }
  0xc9   :  { %1073 = vtanh.f32 %v486_v32 }
  0xcb   :  { %v1068_v33 = vpop.eup %1067 }
  0xcc   :  { %v1070_v34 = vpop.eup %1069  ;;  %725 = vst [vmem:[%s1562_s2 + $0x150] sm:$0xff] %v1068_v33  ;;  %v531_v35 = vpop.f32.mrf.mxu2 }
  0xcd   :  { %v581_v36 = vpop.f32.mrf.mxu3  ;;  %1075 = vtanh.f32 %v531_v35  ;;  %745 = vst [vmem:[%s1562_s2 + $0x1f0] sm:$0xff] %v1070_v34 }
  0xce   :  { %v1072_v37 = vpop.eup %1071  ;;  %1077 = vtanh.f32 %v581_v36 }
  0xcf   :  { %v1074_v38 = vpop.eup %1073  ;;  %690 = vst [vmem:[%s1562_s2 + $0x38] sm:$0xff] %v1072_v37  ;;  %v444_v39 = vpop.f32.mrf.mxu0 }
  0xd0   :  { %v489_v40 = vpop.f32.mrf.mxu1  ;;  %708 = vst [vmem:[%s1562_s2 + $0xc8] sm:$0xff] %v1074_v38  ;;  %1079 = vtanh.f32 %v444_v39 }
  0xd1   :  { %1081 = vtanh.f32 %v489_v40 }
  0xd3   :  { %v1076_v41 = vpop.eup %1075 }
  0xd4   :  { %v1078_v42 = vpop.eup %1077  ;;  %726 = vst [vmem:[%s1562_s2 + $0x158] sm:$0xff] %v1076_v41  ;;  %v534_v43 = vpop.f32.mrf.mxu2 }
  0xd5   :  { %v584_v44 = vpop.f32.mrf.mxu3  ;;  %1083 = vtanh.f32 %v534_v43  ;;  %746 = vst [vmem:[%s1562_s2 + $0x1f8] sm:$0xff] %v1078_v42 }
  0xd6   :  { %v1080_v45 = vpop.eup %1079  ;;  %1085 = vtanh.f32 %v584_v44 }
  0xd7   :  { %v1082_v46 = vpop.eup %1081  ;;  %691 = vst [vmem:[%s1562_s2 + $0x40] sm:$0xff] %v1080_v45  ;;  %v446_v47 = vpop.f32.mrf.mxu0 }
  0xd8   :  { %v491_v48 = vpop.f32.mrf.mxu1  ;;  %709 = vst [vmem:[%s1562_s2 + $0xd0] sm:$0xff] %v1082_v46  ;;  %1087 = vtanh.f32 %v446_v47 }
  0xd9   :  { %1089 = vtanh.f32 %v491_v48 }
  0xdb   :  { %v1084_v49 = vpop.eup %1083 }
  0xdc   :  { %v1086_v50 = vpop.eup %1085  ;;  %727 = vst [vmem:[%s1562_s2 + $0x160] sm:$0xff] %v1084_v49  ;;  %v536_v51 = vpop.f32.mrf.mxu2 }
  0xdd   :  { %v586_v52 = vpop.f32.mrf.mxu3  ;;  %1091 = vtanh.f32 %v536_v51  ;;  %747 = vst [vmem:[%s1562_s2 + $0x200] sm:$0xff] %v1086_v50 }
  0xde   :  { %v1088_v53 = vpop.eup %1087  ;;  %1093 = vtanh.f32 %v586_v52 }
  0xdf   :  { %v1090_v54 = vpop.eup %1089  ;;  %692 = vst [vmem:[%s1562_s2 + $0x48] sm:$0xff] %v1088_v53  ;;  %v449_v55 = vpop.f32.mrf.mxu0 }
  0xe0   :  { %v494_v56 = vpop.f32.mrf.mxu1  ;;  %710 = vst [vmem:[%s1562_s2 + $0xd8] sm:$0xff] %v1090_v54  ;;  %1095 = vtanh.f32 %v449_v55 }
  0xe1   :  { %1097 = vtanh.f32 %v494_v56 }
  0xe3   :  { %v1092_v57 = vpop.eup %1091 }
  0xe4   :  { %v1094_v58 = vpop.eup %1093  ;;  %728 = vst [vmem:[%s1562_s2 + $0x168] sm:$0xff] %v1092_v57  ;;  %v539_v59 = vpop.f32.mrf.mxu2 }
  0xe5   :  { %v589_v60 = vpop.f32.mrf.mxu3  ;;  %1099 = vtanh.f32 %v539_v59  ;;  %748 = vst [vmem:[%s1562_s2 + $0x208] sm:$0xff] %v1094_v58 }
  0xe6   :  { %v1096_v61 = vpop.eup %1095  ;;  %1101 = vtanh.f32 %v589_v60 }
  0xe7   :  { %v1098_v62 = vpop.eup %1097  ;;  %693 = vst [vmem:[%s1562_s2 + $0x50] sm:$0xff] %v1096_v61  ;;  %v451_v63 = vpop.f32.mrf.mxu0 }
  0xe8   :  { %v496_v0 = vpop.f32.mrf.mxu1  ;;  %711 = vst [vmem:[%s1562_s2 + $0xe0] sm:$0xff] %v1098_v62  ;;  %1103 = vtanh.f32 %v451_v63 }
  0xe9   :  { %1105 = vtanh.f32 %v496_v0 }
  0xeb   :  { %v1100_v1 = vpop.eup %1099 }
  0xec   :  { %v1102_v2 = vpop.eup %1101  ;;  %729 = vst [vmem:[%s1562_s2 + $0x170] sm:$0xff] %v1100_v1  ;;  %v541_v3 = vpop.f32.mrf.mxu2 }
  0xed   :  { %v591_v4 = vpop.f32.mrf.mxu3  ;;  %1107 = vtanh.f32 %v541_v3  ;;  %749 = vst [vmem:[%s1562_s2 + $0x210] sm:$0xff] %v1102_v2 }
  0xee   :  { %v1104_v5 = vpop.eup %1103  ;;  %1109 = vtanh.f32 %v591_v4 }
  0xef   :  { %v1106_v6 = vpop.eup %1105  ;;  %694 = vst [vmem:[%s1562_s2 + $0x58] sm:$0xff] %v1104_v5  ;;  %v454_v7 = vpop.f32.mrf.mxu0 }
  0xf0   :  { %v499_v8 = vpop.f32.mrf.mxu1  ;;  %712 = vst [vmem:[%s1562_s2 + $0xe8] sm:$0xff] %v1106_v6  ;;  %1111 = vtanh.f32 %v454_v7 }
  0xf1   :  { %1113 = vtanh.f32 %v499_v8 }
  0xf3   :  { %v1108_v9 = vpop.eup %1107 }
  0xf4   :  { %v1110_v10 = vpop.eup %1109  ;;  %730 = vst [vmem:[%s1562_s2 + $0x178] sm:$0xff] %v1108_v9  ;;  %v544_v11 = vpop.f32.mrf.mxu2 }
  0xf5   :  { %v594_v12 = vpop.f32.mrf.mxu3  ;;  %1115 = vtanh.f32 %v544_v11  ;;  %750 = vst [vmem:[%s1562_s2 + $0x218] sm:$0xff] %v1110_v10 }
  0xf6   :  { %v1112_v13 = vpop.eup %1111  ;;  %1117 = vtanh.f32 %v594_v12 }
  0xf7   :  { %v1114_v14 = vpop.eup %1113  ;;  %695 = vst [vmem:[%s1562_s2 + $0x60] sm:$0xff] %v1112_v13  ;;  %v456_v15 = vpop.f32.mrf.mxu0 }
  0xf8   :  { %v501_v16 = vpop.f32.mrf.mxu1  ;;  %713 = vst [vmem:[%s1562_s2 + $0xf0] sm:$0xff] %v1114_v14  ;;  %1119 = vtanh.f32 %v456_v15 }
  0xf9   :  { %1121 = vtanh.f32 %v501_v16 }
  0xfb   :  { %v1116_v17 = vpop.eup %1115 }
  0xfc   :  { %v1118_v18 = vpop.eup %1117  ;;  %731 = vst [vmem:[%s1562_s2 + $0x180] sm:$0xff] %v1116_v17  ;;  %v546_v19 = vpop.f32.mrf.mxu2 }
  0xfd   :  { %v596_v20 = vpop.f32.mrf.mxu3  ;;  %1123 = vtanh.f32 %v546_v19  ;;  %751 = vst [vmem:[%s1562_s2 + $0x220] sm:$0xff] %v1118_v18 }
  0xfe   :  { %v1120_v21 = vpop.eup %1119  ;;  %1125 = vtanh.f32 %v596_v20 }
  0xff   :  { %v1122_v22 = vpop.eup %1121  ;;  %696 = vst [vmem:[%s1562_s2 + $0x68] sm:$0xff] %v1120_v21  ;;  %v459_v23 = vpop.f32.mrf.mxu0 }
 0x100   :  { %v504_v24 = vpop.f32.mrf.mxu1  ;;  %714 = vst [vmem:[%s1562_s2 + $0xf8] sm:$0xff] %v1122_v22  ;;  %1127 = vtanh.f32 %v459_v23 }
 0x101   :  { %1129 = vtanh.f32 %v504_v24 }
 0x103   :  { %v1124_v25 = vpop.eup %1123 }
 0x104   :  { %v1126_v26 = vpop.eup %1125  ;;  %732 = vst [vmem:[%s1562_s2 + $0x188] sm:$0xff] %v1124_v25  ;;  %v549_v27 = vpop.f32.mrf.mxu2 }
 0x105   :  { %v599_v28 = vpop.f32.mrf.mxu3  ;;  %1131 = vtanh.f32 %v549_v27  ;;  %752 = vst [vmem:[%s1562_s2 + $0x228] sm:$0xff] %v1126_v26 }
 0x106   :  { %v1128_v29 = vpop.eup %1127  ;;  %1133 = vtanh.f32 %v599_v28 }
 0x107   :  { %v1130_v30 = vpop.eup %1129  ;;  %697 = vst [vmem:[%s1562_s2 + $0x70] sm:$0xff] %v1128_v29  ;;  %v461_v31 = vpop.f32.mrf.mxu0 }
 0x108   :  { %v506_v32 = vpop.f32.mrf.mxu1  ;;  %715 = vst [vmem:[%s1562_s2 + $0x100] sm:$0xff] %v1130_v30  ;;  %1135 = vtanh.f32 %v461_v31 }
 0x109   :  { %1137 = vtanh.f32 %v506_v32 }
 0x10b   :  { %v1132_v33 = vpop.eup %1131 }
 0x10c   :  { %v1134_v34 = vpop.eup %1133  ;;  %733 = vst [vmem:[%s1562_s2 + $0x190] sm:$0xff] %v1132_v33  ;;  %v551_v35 = vpop.f32.mrf.mxu2 }
 0x10d   :  { %v601_v36 = vpop.f32.mrf.mxu3  ;;  %1139 = vtanh.f32 %v551_v35  ;;  %753 = vst [vmem:[%s1562_s2 + $0x230] sm:$0xff] %v1134_v34 }
 0x10e   :  { %v1136_v37 = vpop.eup %1135  ;;  %1141 = vtanh.f32 %v601_v36 }
 0x10f   :  { %v1138_v38 = vpop.eup %1137  ;;  %698 = vst [vmem:[%s1562_s2 + $0x78] sm:$0xff] %v1136_v37  ;;  %v464_v39 = vpop.f32.mrf.mxu0 }
 0x110   :  { %v509_v40 = vpop.f32.mrf.mxu1  ;;  %716 = vst [vmem:[%s1562_s2 + $0x108] sm:$0xff] %v1138_v38  ;;  %1143 = vtanh.f32 %v464_v39 }
 0x111   :  { %1145 = vtanh.f32 %v509_v40 }
 0x113   :  { %v1140_v41 = vpop.eup %1139 }
 0x114   :  { %v1142_v42 = vpop.eup %1141  ;;  %734 = vst [vmem:[%s1562_s2 + $0x198] sm:$0xff] %v1140_v41  ;;  %v554_v43 = vpop.f32.mrf.mxu2 }
 0x115   :  { %v604_v44 = vpop.f32.mrf.mxu3  ;;  %1147 = vtanh.f32 %v554_v43  ;;  %754 = vst [vmem:[%s1562_s2 + $0x238] sm:$0xff] %v1142_v42 }
 0x116   :  { %v1144_v45 = vpop.eup %1143  ;;  %1149 = vtanh.f32 %v604_v44 }
 0x117   :  { %v1146_v46 = vpop.eup %1145  ;;  %699 = vst [vmem:[%s1562_s2 + $0x80] sm:$0xff] %v1144_v45  ;;  %v466_v47 = vpop.f32.mrf.mxu0 }
 0x118   :  { %v511_v48 = vpop.f32.mrf.mxu1  ;;  %717 = vst [vmem:[%s1562_s2 + $0x110] sm:$0xff] %v1146_v46  ;;  %1151 = vtanh.f32 %v466_v47 }
 0x119   :  { %1153 = vtanh.f32 %v511_v48 }
 0x11b   :  { %v1148_v49 = vpop.eup %1147 }
 0x11c   :  { %v1150_v50 = vpop.eup %1149  ;;  %735 = vst [vmem:[%s1562_s2 + $0x1a0] sm:$0xff] %v1148_v49  ;;  %v556_v51 = vpop.f32.mrf.mxu2 }
 0x11d   :  { %v606_v52 = vpop.f32.mrf.mxu3  ;;  %1155 = vtanh.f32 %v556_v51  ;;  %755 = vst [vmem:[%s1562_s2 + $0x240] sm:$0xff] %v1150_v50 }
 0x11e   :  { %v1152_v53 = vpop.eup %1151  ;;  %1157 = vtanh.f32 %v606_v52 }
 0x11f   :  { %v1154_v54 = vpop.eup %1153  ;;  %700 = vst [vmem:[%s1562_s2 + $0x88] sm:$0xff] %v1152_v53 }
 0x120   :  { %718 = vst [vmem:[%s1562_s2 + $0x118] sm:$0xff] %v1154_v54 }
 0x123   :  { %v1156_v55 = vpop.eup %1155 }
 0x124   :  { %v1158_v56 = vpop.eup %1157  ;;  %736 = vst [vmem:[%s1562_s2 + $0x1a8] sm:$0xff] %v1156_v55  ;;  %v559_v57 = vpop.f32.mrf.mxu2 }
 0x125   :  { %1159 = vtanh.f32 %v559_v57  ;;  %756 = vst [vmem:[%s1562_s2 + $0x248] sm:$0xff] %v1158_v56 }
 0x12b   :  { %v1160_v58 = vpop.eup %1159 }
 0x12c   :  { %737 = vst [vmem:[%s1562_s2 + $0x1b0] sm:$0xff] %v1160_v58  ;;  %v561_v59 = vpop.f32.mrf.mxu2 }
 0x12d   :  { %1161 = vtanh.f32 %v561_v59 }
 0x133   :  { %v1162_v60 = vpop.eup %1161 }
 0x134   :  { %738 = vst [vmem:[%s1562_s2 + $0x1b8] sm:$0xff] %v1162_v60 }

</bundles_post_ra>
